<compile_context>
chip_gen: v5e
topology: v5e:2x2
jax: 0.10.0
libtpu: 0.0.40
codegen_flags: <defaults>
</compile_context>

<pallas_src>
import math

import numpy as np
import jax
import jax.numpy as jnp
from jax import lax
from jax.experimental import pallas as pl
from jax.experimental.pallas import tpu as pltpu

decay = 0.2   # membrane decay  (module-level global in the reference source)
thresh = 0.5  # spike threshold (module-level global in the reference source)


def scnn1_forward(x, w0, b0, w1, b1):
    """x: (B, 2, H, W, T) float32, PyTorch layout. Returns (B, 16*(H//16)*(W//16), T)."""
    B, CIN, H, W, T = x.shape
    K0, _, _, C0 = w0.shape
    K1, _, _, C1 = w1.shape
    P0 = (K0 - 1) // 2
    P1 = (K1 - 1) // 2
    Hp, Wp = H // 4, W // 4
    Hq, Wq = Hp // 4, Wp // 4
    assert H % 16 == 0 and W % 16 == 0
    # the in-kernel output flatten + global second pool match PyTorch exactly
    # when the final spatial map is 1x1 (true for H=W=16)
    assert Hq == 1 and Wq == 1
    assert K1 == 3
    Wpad = W + 2 * P0

    BH, WC0 = B * H, W * C0
    BHp, WpC0, WpC1 = B * Hp, Wp * C0, Wp * C1
    KIN0 = K0 * Wpad * CIN

    xf = x.astype(jnp.float32)
    w0f = w0.astype(jnp.float32)
    w1f = w1.astype(jnp.float32)

    # ---- row-im2col of the input (conv0 zero padding baked in), flattened over
    #      time so conv0 is a single (T*B*H, K0*Wpad*CIN) matmul:
    #      A[(t*B+b)*H+h, ky*Wpad*CIN + wp*CIN + ci] = x_pad[t, b, h+ky, wp, ci]
    xt = jnp.transpose(xf, (4, 0, 2, 3, 1))                           # (T,B,H,W,CIN)
    xp = jnp.pad(xt, ((0, 0), (0, 0), (P0, P0), (P0, P0), (0, 0)))    # (T,B,H+2P0,Wpad,CIN)
    rows = jnp.stack([xp[:, :, ky:ky + H] for ky in range(K0)], axis=3)  # (T,B,H,K0,Wpad,CIN)
    A = rows.reshape(T * BH, KIN0)                                    # (256, 200)

    # ---- conv0 banded weight matrix: (K0*Wpad*CIN, W*C0) ----
    kx_i = np.arange(K0)[:, None, None]
    wp_i = np.arange(Wpad)[None, :, None]
    w_i = np.arange(W)[None, None, :]
    sel0 = (wp_i == w_i + kx_i).astype(np.float32)                    # (K0, Wpad, W)
    Wmat0 = jnp.einsum('yxio,xpw->ypiwo', w0f, sel0).reshape(KIN0, WC0)
    b0row = jnp.tile(b0.astype(jnp.float32), (W,)).reshape(1, WC0)

    # ---- first 4x4 avg pool as left/right constant matrices (1/16 folded into L0) ----
    L0 = np.zeros((BHp, BH), np.float32)
    for b in range(B):
        for hp in range(Hp):
            L0[b * Hp + hp, b * H + 4 * hp:b * H + 4 * hp + 4] = 1.0 / 16.0
    R0 = np.zeros((WC0, WpC0), np.float32)
    for w_ in range(W):
        for c in range(C0):
            R0[w_ * C0 + c, (w_ // 4) * C0 + c] = 1.0

    # ---- conv1 banded column matrices, fused along N as [ky=P1, ky=0, ky=2] ----
    kx1 = np.arange(K1)[:, None, None]
    wi_i = np.arange(Wp)[None, :, None]
    wo_i = np.arange(Wp)[None, None, :]
    sel1 = (wi_i == wo_i + kx1 - P1).astype(np.float32)               # (K1, Wp, Wp)
    Wk1 = jnp.einsum('yxio,xvw->yviwo', w1f, sel1).reshape(K1, WpC0, WpC1)
    Wk1cat = jnp.concatenate([Wk1[P1], Wk1[0], Wk1[2]], axis=1)       # (WpC0, 3*WpC1)
    b1row = jnp.tile(b1.astype(jnp.float32), (Wp,)).reshape(1, WpC1)

    # ---- final (global, since Hq=Wq=1) 4x4 avg pool (1/16 folded into L1) ----
    L1 = np.zeros((B, BHp), np.float32)
    for b in range(B):
        L1[b, b * Hp:(b + 1) * Hp] = 1.0 / 16.0
    R1 = np.tile(np.eye(C1, dtype=np.float32), (Wp, 1))               # (Wp*C1, C1)

    def kernel(a_ref, wm0_ref, b0_ref, l0_ref, r0_ref, wk1_ref, b1_ref,
               l1_ref, r1_ref, out_ref, z0_ref):
        def mxu(a, b):
            return jnp.dot(a, b, preferred_element_type=jnp.float32)

        # conv0 for ALL timesteps at once (state independent): one MXU matmul
        # with full M occupancy, hoisted off the serial recurrence.
        z0_ref[...] = mxu(a_ref[...], wm0_ref[...]) + b0_ref[...]

        # Hoist weights / constant matrices / broadcasts out of the time loop.
        l0 = l0_ref[...]
        r0 = r0_ref[...]
        wk1 = wk1_ref[...]
        l1 = l1_ref[...]
        r1 = r1_ref[...]
        b1b = jnp.broadcast_to(b1_ref[...], (BHp, WpC1))
        row = lax.broadcasted_iota(jnp.int32, (BHp, WpC1), 0)
        not_top = (row % Hp) != 0          # rows with a valid in-batch row above
        not_bot = (row % Hp) != (Hp - 1)   # rows with a valid in-batch row below
        zero = jnp.zeros((BHp, WpC1), jnp.float32)

        c0_mem = jnp.zeros((BH, WC0), jnp.float32)
        c0_spk = jnp.zeros((BH, WC0), jnp.float32)
        p0_mem = jnp.zeros((BHp, WpC0), jnp.float32)
        p0_spk = jnp.zeros((BHp, WpC0), jnp.float32)
        c1_mem = jnp.zeros((BHp, WpC1), jnp.float32)
        c1_spk = jnp.zeros((BHp, WpC1), jnp.float32)
        p1_mem = jnp.zeros((B, C1), jnp.float32)
        p1_spk = jnp.zeros((B, C1), jnp.float32)

        for t in range(T):     # tiny T: fully unrolled, every slice is static
            # ---- conv0 membrane update (conv itself precomputed above) ----
            z0 = z0_ref[pl.ds(t * BH, BH), :]
            c0_mem = c0_mem * (decay * (1.0 - c0_spk)) + z0
            c0_spk = (c0_mem > thresh).astype(jnp.float32)

            # ---- avg_pool2d(4): two constant matmuls (1/16 folded into l0) ----
            pooled0 = mxu(mxu(l0, c0_spk), r0)         # (B*Hp, Wp*C0)
            p0_mem = p0_mem * (decay * (1.0 - p0_spk)) + pooled0
            p0_spk = (p0_mem > thresh).astype(jnp.float32)
            # TODO(synk): F.dropout(p=0.5) defaults to training mode (stochastic)
            # in the reference; applied as identity (eval mode) for determinism.

            # ---- conv1: ONE fused column matmul; the ky row shifts run on the
            #      XLU (sublane roll) + VPU mask instead of three MXU matmuls ----
            pw = mxu(p0_spk, wk1)                      # (B*Hp, 3*Wp*C1)
            z1 = b1b + pw[:, :WpC1]                                              # ky = P1
            z1 = z1 + jnp.where(
                not_top, pltpu.roll(pw[:, WpC1:2 * WpC1], shift=1, axis=0), zero)        # ky = 0
            z1 = z1 + jnp.where(
                not_bot, pltpu.roll(pw[:, 2 * WpC1:], shift=BHp - 1, axis=0), zero)      # ky = 2
            c1_mem = c1_mem * (decay * (1.0 - c1_spk)) + z1
            c1_spk = (c1_mem > thresh).astype(jnp.float32)

            # ---- final global avg pool (1/16 folded into l1) ----
            pooled1 = mxu(mxu(l1, c1_spk), r1)         # (B, C1)
            p1_mem = p1_mem * (decay * (1.0 - p1_spk)) + pooled1
            p1_spk = (p1_mem > thresh).astype(jnp.float32)
            # TODO(synk): second F.dropout(p=0.5) also treated as identity.

            out_ref[t] = p1_spk   # tiny VMEM store; HBM writeback happens once

    flops = (2 * (T * BH) * KIN0 * WC0
             + T * 2 * (BHp * BH * WC0 + BHp * WC0 * WpC0
                        + BHp * WpC0 * (K1 * WpC1)
                        + B * BHp * WpC1 + B * WpC1 * C1))
    bytes_accessed = 4 * (A.size + Wmat0.size + b0row.size + L0.size + R0.size
                          + Wk1cat.size + b1row.size + L1.size + R1.size
                          + T * B * C1)

    # NOTE: total VMEM footprint is ~1.5 MiB, far under every generation's
    # limit; if T or B grow, tile time on the grid and move state to scratch.
    out = pl.pallas_call(
        kernel,
        out_shape=jax.ShapeDtypeStruct((T, B, C1), jnp.float32),
        grid_spec=pltpu.PrefetchScalarGridSpec(
            num_scalar_prefetch=0,
            grid=(1,),   # serial time recurrence lives inside the kernel
            in_specs=[
                pl.BlockSpec((T * BH, KIN0), lambda i: (0, 0)),
                pl.BlockSpec((KIN0, WC0), lambda i: (0, 0)),
                pl.BlockSpec((1, WC0), lambda i: (0, 0)),
                pl.BlockSpec((BHp, BH), lambda i: (0, 0)),
                pl.BlockSpec((WC0, WpC0), lambda i: (0, 0)),
                pl.BlockSpec((WpC0, K1 * WpC1), lambda i: (0, 0)),
                pl.BlockSpec((1, WpC1), lambda i: (0, 0)),
                pl.BlockSpec((B, BHp), lambda i: (0, 0)),
                pl.BlockSpec((WpC1, C1), lambda i: (0, 0)),
            ],
            out_specs=pl.BlockSpec((T, B, C1), lambda i: (0, 0, 0)),
            scratch_shapes=[pltpu.VMEM((T * BH, WC0), jnp.float32)],
        ),
        compiler_params=pltpu.CompilerParams(
            dimension_semantics=("arbitrary",)),
        cost_estimate=pl.CostEstimate(flops=flops, transcendentals=0,
                                      bytes_accessed=bytes_accessed),
    )(A, Wmat0, b0row,
      jnp.asarray(L0), jnp.asarray(R0),
      Wk1cat, b1row,
      jnp.asarray(L1), jnp.asarray(R1))

    # (T, B, C1) -> (B, C1*Hq*Wq, T)  (channel-major; matches .view(B,-1) for 1x1 maps)
    return jnp.transpose(out, (1, 2, 0))


def scnn1_reference(x, w0, b0, w1, b1):
    """Pure-JAX reference of the PyTorch forward (dropout as identity)."""
    B, CIN, H, W, T = x.shape
    C0, C1 = b0.shape[0], b1.shape[0]
    Hp, Wp, Hq, Wq = H // 4, W // 4, H // 16, W // 16
    dn = ('NHWC', 'HWIO', 'NHWC')

    def avg_pool4(y):
        b, h, w, c = y.shape
        return y.reshape(b, h // 4, 4, w // 4, 4, c).mean(axis=(2, 4))

    c0_mem = c0_spk = jnp.zeros((B, H, W, C0), jnp.float32)
    p0_mem = p0_spk = jnp.zeros((B, Hp, Wp, C0), jnp.float32)
    c1_mem = c1_spk = jnp.zeros((B, Hp, Wp, C1), jnp.float32)
    p1_mem = p1_spk = jnp.zeros((B, Hq, Wq, C1), jnp.float32)
    outs = []
    for t in range(T):
        xt = jnp.transpose(x[..., t], (0, 2, 3, 1))
        z0 = lax.conv_general_dilated(xt, w0, (1, 1), 'SAME',
                                      dimension_numbers=dn) + b0
        c0_mem = c0_mem * decay * (1 - c0_spk) + z0
        c0_spk = (c0_mem > thresh).astype(jnp.float32)
        p0_mem = p0_mem * decay * (1 - p0_spk) + avg_pool4(c0_spk)
        p0_spk = (p0_mem > thresh).astype(jnp.float32)
        z1 = lax.conv_general_dilated(p0_spk, w1, (1, 1), 'SAME',
                                      dimension_numbers=dn) + b1
        c1_mem = c1_mem * decay * (1 - c1_spk) + z1
        c1_spk = (c1_mem > thresh).astype(jnp.float32)
        p1_mem = p1_mem * decay * (1 - p1_spk) + avg_pool4(c1_spk)
        p1_spk = (p1_mem > thresh).astype(jnp.float32)
        outs.append(jnp.transpose(p1_spk, (0, 3, 1, 2)).reshape(B, -1))
    return jnp.stack(outs, axis=-1)


if __name__ == "__main__":
    B, CIN, H, W, T = 2, 2, 16, 16, 8

    key = jax.random.PRNGKey(0)
    k1, k2, k3, k4, k5 = jax.random.split(key, 5)

    # Deterministic parameter init (same fan-in scaling PyTorch uses), HWIO layout.
    bound0 = 1.0 / math.sqrt(CIN * 5 * 5)
    w0 = jax.random.uniform(k1, (5, 5, CIN, 8), jnp.float32, -bound0, bound0)
    b0 = jax.random.uniform(k2, (8,), jnp.float32, -bound0, bound0)
    bound1 = 1.0 / math.sqrt(8 * 3 * 3)
    w1 = jax.random.uniform(k3, (3, 3, 8, 16), jnp.float32, -bound1, bound1)
    b1 = jax.random.uniform(k4, (16,), jnp.float32, -bound1, bound1)

    # Input in PyTorch layout (B, C, H, W, T)
    x = jax.random.uniform(k5, (B, CIN, H, W, T), jnp.float32)

    out = scnn1_forward(x, w0, b0, w1, b1)
    out = jax.block_until_ready(out)

    assert out.shape == (B, 16 * (H // 16) * (W // 16), T)
    assert bool(jnp.all(jnp.isfinite(out)))

    # Compare with the pure-JAX reference. Outputs are binary spikes; allow a
    # small mismatch budget for values landing at the threshold (MXU vs XLA
    # conv accumulation order differs slightly and flips can propagate).
    ref = scnn1_reference(x, w0, b0, w1, b1)
    mismatch_frac = float(jnp.mean(jnp.abs(out - ref) > 1e-3))
    assert mismatch_frac < 0.02, f"mismatch fraction too high: {mismatch_frac}"

    print("KERNEL_OK")
</pallas_src>

<mosaic_0001>
module attributes {stable_mosaic.version = 11 : i64} {
  func.func @kernel(%arg0: i32, %arg1: memref<256x200xf32, #tpu.memory_space<vmem>>, %arg2: memref<200x128xf32, #tpu.memory_space<vmem>>, %arg3: memref<1x128xf32, #tpu.memory_space<vmem>>, %arg4: memref<8x32xf32, #tpu.memory_space<vmem>>, %arg5: memref<128x32xf32, #tpu.memory_space<vmem>>, %arg6: memref<32x192xf32, #tpu.memory_space<vmem>>, %arg7: memref<1x64xf32, #tpu.memory_space<vmem>>, %arg8: memref<2x8xf32, #tpu.memory_space<vmem>>, %arg9: memref<64x16xf32, #tpu.memory_space<vmem>>, %arg10: memref<8x2x16xf32, #tpu.memory_space<vmem>>, %arg11: memref<256x128xf32, #tpu.memory_space<vmem>>) attributes {dimension_semantics = [#tpu.dimension_semantics<arbitrary>], iteration_bounds = array<i64: 1>, scalar_prefetch = 0 : i64, scratch_operands = 1 : i64, tpu.core_type = #tpu.core_type<tc>, window_params = [{pipeline_mode = #tpu.pipeline_mode<synchronous>, transform_indices = @transform_0, window_bounds = array<i64: 256, 200>}, {pipeline_mode = #tpu.pipeline_mode<synchronous>, transform_indices = @transform_1, window_bounds = array<i64: 200, 128>}, {pipeline_mode = #tpu.pipeline_mode<synchronous>, transform_indices = @transform_2, window_bounds = array<i64: 1, 128>}, {pipeline_mode = #tpu.pipeline_mode<synchronous>, transform_indices = @transform_3, window_bounds = array<i64: 8, 32>}, {pipeline_mode = #tpu.pipeline_mode<synchronous>, transform_indices = @transform_4, window_bounds = array<i64: 128, 32>}, {pipeline_mode = #tpu.pipeline_mode<synchronous>, transform_indices = @transform_5, window_bounds = array<i64: 32, 192>}, {pipeline_mode = #tpu.pipeline_mode<synchronous>, transform_indices = @transform_6, window_bounds = array<i64: 1, 64>}, {pipeline_mode = #tpu.pipeline_mode<synchronous>, transform_indices = @transform_7, window_bounds = array<i64: 2, 8>}, {pipeline_mode = #tpu.pipeline_mode<synchronous>, transform_indices = @transform_8, window_bounds = array<i64: 64, 16>}, {pipeline_mode = #tpu.pipeline_mode<synchronous>, transform_indices = @transform_9, window_bounds = array<i64: 8, 2, 16>}]} {
    %c0 = arith.constant 0 : index
    %c0_0 = arith.constant 0 : index
    %0 = vector.load %arg1[%c0, %c0_0] : memref<256x200xf32, #tpu.memory_space<vmem>>, vector<256x200xf32>
    %c0_1 = arith.constant 0 : index
    %c0_2 = arith.constant 0 : index
    %1 = vector.load %arg2[%c0_1, %c0_2] : memref<200x128xf32, #tpu.memory_space<vmem>>, vector<200x128xf32>
    %cst = arith.constant dense<0.000000e+00> : vector<256x128xf32>
    %2 = tpu.matmul %0, %1, %cst {dimension_numbers = #tpu.dot_dimension_numbers<[1], [0], [0], [1], [0, 0, 1, 1], [], []>} : vector<256x200xf32>, vector<200x128xf32>, vector<256x128xf32> -> vector<256x128xf32>
    %c0_3 = arith.constant 0 : index
    %c0_4 = arith.constant 0 : index
    %3 = vector.load %arg3[%c0_3, %c0_4] : memref<1x128xf32, #tpu.memory_space<vmem>>, vector<1x128xf32>
    %4 = vector.broadcast %3 : vector<1x128xf32> to vector<256x128xf32>
    %5 = arith.addf %2, %4 : vector<256x128xf32>
    %c0_5 = arith.constant 0 : index
    %c0_6 = arith.constant 0 : index
    %6 = vector.load %arg11[%c0_5, %c0_6] : memref<256x128xf32, #tpu.memory_space<vmem>>, vector<256x128xf32>
    tpu.vector_store %arg11[%c0_5, %c0_6], %5 {strides = array<i32>} : memref<256x128xf32, #tpu.memory_space<vmem>>, vector<256x128xf32>,
    %c0_7 = arith.constant 0 : index
    %c0_8 = arith.constant 0 : index
    %7 = vector.load %arg4[%c0_7, %c0_8] : memref<8x32xf32, #tpu.memory_space<vmem>>, vector<8x32xf32>
    %c0_9 = arith.constant 0 : index
    %c0_10 = arith.constant 0 : index
    %8 = vector.load %arg5[%c0_9, %c0_10] : memref<128x32xf32, #tpu.memory_space<vmem>>, vector<128x32xf32>
    %c0_11 = arith.constant 0 : index
    %c0_12 = arith.constant 0 : index
    %9 = vector.load %arg6[%c0_11, %c0_12] : memref<32x192xf32, #tpu.memory_space<vmem>>, vector<32x192xf32>
    %c0_13 = arith.constant 0 : index
    %c0_14 = arith.constant 0 : index
    %10 = vector.load %arg8[%c0_13, %c0_14] : memref<2x8xf32, #tpu.memory_space<vmem>>, vector<2x8xf32>
    %c0_15 = arith.constant 0 : index
    %c0_16 = arith.constant 0 : index
    %11 = vector.load %arg9[%c0_15, %c0_16] : memref<64x16xf32, #tpu.memory_space<vmem>>, vector<64x16xf32>
    %c0_17 = arith.constant 0 : index
    %c0_18 = arith.constant 0 : index
    %12 = vector.load %arg7[%c0_17, %c0_18] : memref<1x64xf32, #tpu.memory_space<vmem>>, vector<1x64xf32>
    %13 = vector.shape_cast %12 : vector<1x64xf32> to vector<1x64xf32>
    %14 = vector.broadcast %13 : vector<1x64xf32> to vector<8x64xf32>
    %15 = tpu.iota {dimensions = array<i32: 0>} : vector<8x64xi32>
    %c4_i32 = arith.constant 4 : i32
    %c0_i32 = arith.constant 0 : i32
    %16 = arith.cmpi eq, %c4_i32, %c0_i32 : i32
    %c1_i32 = arith.constant 1 : i32
    %17 = arith.select %16, %c1_i32, %c4_i32 : i32
    %18 = vector.broadcast %17 : i32 to vector<8x64xi32>
    %19 = arith.remsi %15, %18 : vector<8x64xi32>
    %c0_i32_19 = arith.constant 0 : i32
    %20 = vector.broadcast %c0_i32_19 : i32 to vector<8x64xi32>
    %21 = arith.cmpi ne, %19, %20 : vector<8x64xi32>
    %c0_i32_20 = arith.constant 0 : i32
    %22 = vector.broadcast %c0_i32_20 : i32 to vector<8x64xi32>
    %23 = arith.cmpi slt, %19, %22 : vector<8x64xi32>
    %c0_i32_21 = arith.constant 0 : i32
    %24 = arith.cmpi slt, %17, %c0_i32_21 : i32
    %25 = vector.broadcast %24 : i1 to vector<8x64xi1>
    %26 = vector.broadcast %25 : vector<8x64xi1> to vector<8x64xi1>
    %27 = arith.xori %23, %26 : vector<8x64xi1>
    %28 = arith.andi %27, %21 : vector<8x64xi1>
    %29 = vector.broadcast %17 : i32 to vector<8x64xi32>
    %30 = arith.addi %19, %29 : vector<8x64xi32>
    %31 = arith.select %28, %30, %19 : vector<8x64xi1>, vector<8x64xi32>
    %c0_i32_22 = arith.constant 0 : i32
    %32 = vector.broadcast %c0_i32_22 : i32 to vector<8x64xi32>
    %33 = arith.cmpi ne, %31, %32 : vector<8x64xi32>
    %c4_i32_23 = arith.constant 4 : i32
    %c0_i32_24 = arith.constant 0 : i32
    %34 = arith.cmpi eq, %c4_i32_23, %c0_i32_24 : i32
    %c1_i32_25 = arith.constant 1 : i32
    %35 = arith.select %34, %c1_i32_25, %c4_i32_23 : i32
    %36 = vector.broadcast %35 : i32 to vector<8x64xi32>
    %37 = arith.remsi %15, %36 : vector<8x64xi32>
    %c0_i32_26 = arith.constant 0 : i32
    %38 = vector.broadcast %c0_i32_26 : i32 to vector<8x64xi32>
    %39 = arith.cmpi ne, %37, %38 : vector<8x64xi32>
    %c0_i32_27 = arith.constant 0 : i32
    %40 = vector.broadcast %c0_i32_27 : i32 to vector<8x64xi32>
    %41 = arith.cmpi slt, %37, %40 : vector<8x64xi32>
    %c0_i32_28 = arith.constant 0 : i32
    %42 = arith.cmpi slt, %35, %c0_i32_28 : i32
    %43 = vector.broadcast %42 : i1 to vector<8x64xi1>
    %44 = vector.broadcast %43 : vector<8x64xi1> to vector<8x64xi1>
    %45 = arith.xori %41, %44 : vector<8x64xi1>
    %46 = arith.andi %45, %39 : vector<8x64xi1>
    %47 = vector.broadcast %35 : i32 to vector<8x64xi32>
    %48 = arith.addi %37, %47 : vector<8x64xi32>
    %49 = arith.select %46, %48, %37 : vector<8x64xi1>, vector<8x64xi32>
    %c3_i32 = arith.constant 3 : i32
    %50 = vector.broadcast %c3_i32 : i32 to vector<8x64xi32>
    %51 = arith.cmpi ne, %49, %50 : vector<8x64xi32>
    %cst_29 = arith.constant 0.000000e+00 : f32
    %52 = vector.broadcast %cst_29 : f32 to vector<8x64xf32>
    %cst_30 = arith.constant 0.000000e+00 : f32
    %53 = vector.broadcast %cst_30 : f32 to vector<32x128xf32>
    %cst_31 = arith.constant 0.000000e+00 : f32
    %54 = vector.broadcast %cst_31 : f32 to vector<32x128xf32>
    %cst_32 = arith.constant 0.000000e+00 : f32
    %55 = vector.broadcast %cst_32 : f32 to vector<8x32xf32>
    %cst_33 = arith.constant 0.000000e+00 : f32
    %56 = vector.broadcast %cst_33 : f32 to vector<8x32xf32>
    %cst_34 = arith.constant 0.000000e+00 : f32
    %57 = vector.broadcast %cst_34 : f32 to vector<8x64xf32>
    %cst_35 = arith.constant 0.000000e+00 : f32
    %58 = vector.broadcast %cst_35 : f32 to vector<8x64xf32>
    %cst_36 = arith.constant 0.000000e+00 : f32
    %59 = vector.broadcast %cst_36 : f32 to vector<2x16xf32>
    %cst_37 = arith.constant 0.000000e+00 : f32
    %60 = vector.broadcast %cst_37 : f32 to vector<2x16xf32>
    %c0_38 = arith.constant 0 : index
    %c0_39 = arith.constant 0 : index
    %61 = vector.load %arg11[%c0_38, %c0_39] : memref<256x128xf32, #tpu.memory_space<vmem>>, vector<32x128xf32>
    %cst_40 = arith.constant 1.000000e+00 : f32
    %62 = vector.broadcast %cst_40 : f32 to vector<32x128xf32>
    %63 = arith.subf %62, %54 : vector<32x128xf32>
    %cst_41 = arith.constant 2.000000e-01 : f32
    %64 = vector.broadcast %cst_41 : f32 to vector<32x128xf32>
    %65 = arith.mulf %64, %63 : vector<32x128xf32>
    %66 = arith.mulf %53, %65 : vector<32x128xf32>
    %67 = arith.addf %66, %61 : vector<32x128xf32>
    %cst_42 = arith.constant 5.000000e-01 : f32
    %68 = vector.broadcast %cst_42 : f32 to vector<32x128xf32>
    %69 = arith.cmpf ogt, %67, %68 : vector<32x128xf32>
    %70 = arith.extui %69 : vector<32x128xi1> to vector<32x128xi32>
    %71 = arith.sitofp %70 : vector<32x128xi32> to vector<32x128xf32>
    %cst_43 = arith.constant dense<0.000000e+00> : vector<8x128xf32>
    %72 = tpu.matmul %7, %71, %cst_43 {dimension_numbers = #tpu.dot_dimension_numbers<[1], [0], [0], [1], [0, 0, 1, 1], [], []>} : vector<8x32xf32>, vector<32x128xf32>, vector<8x128xf32> -> vector<8x128xf32>
    %cst_44 = arith.constant dense<0.000000e+00> : vector<8x32xf32>
    %73 = tpu.matmul %72, %8, %cst_44 {dimension_numbers = #tpu.dot_dimension_numbers<[1], [0], [0], [1], [0, 0, 1, 1], [], []>} : vector<8x128xf32>, vector<128x32xf32>, vector<8x32xf32> -> vector<8x32xf32>
    %cst_45 = arith.constant 1.000000e+00 : f32
    %74 = vector.broadcast %cst_45 : f32 to vector<8x32xf32>
    %75 = arith.subf %74, %56 : vector<8x32xf32>
    %cst_46 = arith.constant 2.000000e-01 : f32
    %76 = vector.broadcast %cst_46 : f32 to vector<8x32xf32>
    %77 = arith.mulf %76, %75 : vector<8x32xf32>
    %78 = arith.mulf %55, %77 : vector<8x32xf32>
    %79 = arith.addf %78, %73 : vector<8x32xf32>
    %cst_47 = arith.constant 5.000000e-01 : f32
    %80 = vector.broadcast %cst_47 : f32 to vector<8x32xf32>
    %81 = arith.cmpf ogt, %79, %80 : vector<8x32xf32>
    %82 = arith.extui %81 : vector<8x32xi1> to vector<8x32xi32>
    %83 = arith.sitofp %82 : vector<8x32xi32> to vector<8x32xf32>
    %cst_48 = arith.constant dense<0.000000e+00> : vector<8x192xf32>
    %84 = tpu.matmul %83, %9, %cst_48 {dimension_numbers = #tpu.dot_dimension_numbers<[1], [0], [0], [1], [0, 0, 1, 1], [], []>} : vector<8x32xf32>, vector<32x192xf32>, vector<8x192xf32> -> vector<8x192xf32>
    %85 = vector.extract_strided_slice %84 {offsets = [0, 0], sizes = [8, 64], strides = [1, 1]} : vector<8x192xf32> to vector<8x64xf32>
    %86 = arith.addf %14, %85 : vector<8x64xf32>
    %87 = vector.extract_strided_slice %84 {offsets = [0, 64], sizes = [8, 64], strides = [1, 1]} : vector<8x192xf32> to vector<8x64xf32>
    %c1_i32_49 = arith.constant 1 : i32
    %88 = tpu.dynamic_rotate %87 by %c1_i32_49 dim 0 : vector<8x64xf32>, i32 -> vector<8x64xf32>
    %89 = arith.select %33, %88, %52 : vector<8x64xi1>, vector<8x64xf32>
    %90 = arith.addf %86, %89 : vector<8x64xf32>
    %91 = vector.extract_strided_slice %84 {offsets = [0, 128], sizes = [8, 64], strides = [1, 1]} : vector<8x192xf32> to vector<8x64xf32>
    %c7_i32 = arith.constant 7 : i32
    %92 = tpu.dynamic_rotate %91 by %c7_i32 dim 0 : vector<8x64xf32>, i32 -> vector<8x64xf32>
    %93 = arith.select %51, %92, %52 : vector<8x64xi1>, vector<8x64xf32>
    %94 = arith.addf %90, %93 : vector<8x64xf32>
    %cst_50 = arith.constant 1.000000e+00 : f32
    %95 = vector.broadcast %cst_50 : f32 to vector<8x64xf32>
    %96 = arith.subf %95, %58 : vector<8x64xf32>
    %cst_51 = arith.constant 2.000000e-01 : f32
    %97 = vector.broadcast %cst_51 : f32 to vector<8x64xf32>
    %98 = arith.mulf %97, %96 : vector<8x64xf32>
    %99 = arith.mulf %57, %98 : vector<8x64xf32>
    %100 = arith.addf %99, %94 : vector<8x64xf32>
    %cst_52 = arith.constant 5.000000e-01 : f32
    %101 = vector.broadcast %cst_52 : f32 to vector<8x64xf32>
    %102 = arith.cmpf ogt, %100, %101 : vector<8x64xf32>
    %103 = arith.extui %102 : vector<8x64xi1> to vector<8x64xi32>
    %104 = arith.sitofp %103 : vector<8x64xi32> to vector<8x64xf32>
    %cst_53 = arith.constant dense<0.000000e+00> : vector<2x64xf32>
    %105 = tpu.matmul %10, %104, %cst_53 {dimension_numbers = #tpu.dot_dimension_numbers<[1], [0], [0], [1], [0, 0, 1, 1], [], []>} : vector<2x8xf32>, vector<8x64xf32>, vector<2x64xf32> -> vector<2x64xf32>
    %cst_54 = arith.constant dense<0.000000e+00> : vector<2x16xf32>
    %106 = tpu.matmul %105, %11, %cst_54 {dimension_numbers = #tpu.dot_dimension_numbers<[1], [0], [0], [1], [0, 0, 1, 1], [], []>} : vector<2x64xf32>, vector<64x16xf32>, vector<2x16xf32> -> vector<2x16xf32>
    %cst_55 = arith.constant 1.000000e+00 : f32
    %107 = vector.broadcast %cst_55 : f32 to vector<2x16xf32>
    %108 = arith.subf %107, %60 : vector<2x16xf32>
    %cst_56 = arith.constant 2.000000e-01 : f32
    %109 = vector.broadcast %cst_56 : f32 to vector<2x16xf32>
    %110 = arith.mulf %109, %108 : vector<2x16xf32>
    %111 = arith.mulf %59, %110 : vector<2x16xf32>
    %112 = arith.addf %111, %106 : vector<2x16xf32>
    %cst_57 = arith.constant 5.000000e-01 : f32
    %113 = vector.broadcast %cst_57 : f32 to vector<2x16xf32>
    %114 = arith.cmpf ogt, %112, %113 : vector<2x16xf32>
    %115 = arith.extui %114 : vector<2x16xi1> to vector<2x16xi32>
    %116 = arith.sitofp %115 : vector<2x16xi32> to vector<2x16xf32>
    %c0_58 = arith.constant 0 : index
    %c0_59 = arith.constant 0 : index
    %c0_60 = arith.constant 0 : index
    %117 = vector.load %arg10[%c0_58, %c0_59, %c0_60] : memref<8x2x16xf32, #tpu.memory_space<vmem>>, vector<1x2x16xf32>
    %118 = vector.shape_cast %117 : vector<1x2x16xf32> to vector<2x16xf32>
    %119 = vector.shape_cast %116 : vector<2x16xf32> to vector<1x2x16xf32>
    tpu.vector_store %arg10[%c0_58, %c0_59, %c0_60], %119 {strides = array<i32>} : memref<8x2x16xf32, #tpu.memory_space<vmem>>, vector<1x2x16xf32>,
    %c32 = arith.constant 32 : index
    %c0_61 = arith.constant 0 : index
    %120 = vector.load %arg11[%c32, %c0_61] : memref<256x128xf32, #tpu.memory_space<vmem>>, vector<32x128xf32>
    %cst_62 = arith.constant 1.000000e+00 : f32
    %121 = vector.broadcast %cst_62 : f32 to vector<32x128xf32>
    %122 = arith.subf %121, %71 : vector<32x128xf32>
    %cst_63 = arith.constant 2.000000e-01 : f32
    %123 = vector.broadcast %cst_63 : f32 to vector<32x128xf32>
    %124 = arith.mulf %123, %122 : vector<32x128xf32>
    %125 = arith.mulf %67, %124 : vector<32x128xf32>
    %126 = arith.addf %125, %120 : vector<32x128xf32>
    %cst_64 = arith.constant 5.000000e-01 : f32
    %127 = vector.broadcast %cst_64 : f32 to vector<32x128xf32>
    %128 = arith.cmpf ogt, %126, %127 : vector<32x128xf32>
    %129 = arith.extui %128 : vector<32x128xi1> to vector<32x128xi32>
    %130 = arith.sitofp %129 : vector<32x128xi32> to vector<32x128xf32>
    %cst_65 = arith.constant dense<0.000000e+00> : vector<8x128xf32>
    %131 = tpu.matmul %7, %130, %cst_65 {dimension_numbers = #tpu.dot_dimension_numbers<[1], [0], [0], [1], [0, 0, 1, 1], [], []>} : vector<8x32xf32>, vector<32x128xf32>, vector<8x128xf32> -> vector<8x128xf32>
    %cst_66 = arith.constant dense<0.000000e+00> : vector<8x32xf32>
    %132 = tpu.matmul %131, %8, %cst_66 {dimension_numbers = #tpu.dot_dimension_numbers<[1], [0], [0], [1], [0, 0, 1, 1], [], []>} : vector<8x128xf32>, vector<128x32xf32>, vector<8x32xf32> -> vector<8x32xf32>
    %cst_67 = arith.constant 1.000000e+00 : f32
    %133 = vector.broadcast %cst_67 : f32 to vector<8x32xf32>
    %134 = arith.subf %133, %83 : vector<8x32xf32>
    %cst_68 = arith.constant 2.000000e-01 : f32
    %135 = vector.broadcast %cst_68 : f32 to vector<8x32xf32>
    %136 = arith.mulf %135, %134 : vector<8x32xf32>
    %137 = arith.mulf %79, %136 : vector<8x32xf32>
    %138 = arith.addf %137, %132 : vector<8x32xf32>
    %cst_69 = arith.constant 5.000000e-01 : f32
    %139 = vector.broadcast %cst_69 : f32 to vector<8x32xf32>
    %140 = arith.cmpf ogt, %138, %139 : vector<8x32xf32>
    %141 = arith.extui %140 : vector<8x32xi1> to vector<8x32xi32>
    %142 = arith.sitofp %141 : vector<8x32xi32> to vector<8x32xf32>
    %cst_70 = arith.constant dense<0.000000e+00> : vector<8x192xf32>
    %143 = tpu.matmul %142, %9, %cst_70 {dimension_numbers = #tpu.dot_dimension_numbers<[1], [0], [0], [1], [0, 0, 1, 1], [], []>} : vector<8x32xf32>, vector<32x192xf32>, vector<8x192xf32> -> vector<8x192xf32>
    %144 = vector.extract_strided_slice %143 {offsets = [0, 0], sizes = [8, 64], strides = [1, 1]} : vector<8x192xf32> to vector<8x64xf32>
    %145 = arith.addf %14, %144 : vector<8x64xf32>
    %146 = vector.extract_strided_slice %143 {offsets = [0, 64], sizes = [8, 64], strides = [1, 1]} : vector<8x192xf32> to vector<8x64xf32>
    %c1_i32_71 = arith.constant 1 : i32
    %147 = tpu.dynamic_rotate %146 by %c1_i32_71 dim 0 : vector<8x64xf32>, i32 -> vector<8x64xf32>
    %148 = arith.select %33, %147, %52 : vector<8x64xi1>, vector<8x64xf32>
    %149 = arith.addf %145, %148 : vector<8x64xf32>
    %150 = vector.extract_strided_slice %143 {offsets = [0, 128], sizes = [8, 64], strides = [1, 1]} : vector<8x192xf32> to vector<8x64xf32>
    %c7_i32_72 = arith.constant 7 : i32
    %151 = tpu.dynamic_rotate %150 by %c7_i32_72 dim 0 : vector<8x64xf32>, i32 -> vector<8x64xf32>
    %152 = arith.select %51, %151, %52 : vector<8x64xi1>, vector<8x64xf32>
    %153 = arith.addf %149, %152 : vector<8x64xf32>
    %cst_73 = arith.constant 1.000000e+00 : f32
    %154 = vector.broadcast %cst_73 : f32 to vector<8x64xf32>
    %155 = arith.subf %154, %104 : vector<8x64xf32>
    %cst_74 = arith.constant 2.000000e-01 : f32
    %156 = vector.broadcast %cst_74 : f32 to vector<8x64xf32>
    %157 = arith.mulf %156, %155 : vector<8x64xf32>
    %158 = arith.mulf %100, %157 : vector<8x64xf32>
    %159 = arith.addf %158, %153 : vector<8x64xf32>
    %cst_75 = arith.constant 5.000000e-01 : f32
    %160 = vector.broadcast %cst_75 : f32 to vector<8x64xf32>
    %161 = arith.cmpf ogt, %159, %160 : vector<8x64xf32>
    %162 = arith.extui %161 : vector<8x64xi1> to vector<8x64xi32>
    %163 = arith.sitofp %162 : vector<8x64xi32> to vector<8x64xf32>
    %cst_76 = arith.constant dense<0.000000e+00> : vector<2x64xf32>
    %164 = tpu.matmul %10, %163, %cst_76 {dimension_numbers = #tpu.dot_dimension_numbers<[1], [0], [0], [1], [0, 0, 1, 1], [], []>} : vector<2x8xf32>, vector<8x64xf32>, vector<2x64xf32> -> vector<2x64xf32>
    %cst_77 = arith.constant dense<0.000000e+00> : vector<2x16xf32>
    %165 = tpu.matmul %164, %11, %cst_77 {dimension_numbers = #tpu.dot_dimension_numbers<[1], [0], [0], [1], [0, 0, 1, 1], [], []>} : vector<2x64xf32>, vector<64x16xf32>, vector<2x16xf32> -> vector<2x16xf32>
    %cst_78 = arith.constant 1.000000e+00 : f32
    %166 = vector.broadcast %cst_78 : f32 to vector<2x16xf32>
    %167 = arith.subf %166, %116 : vector<2x16xf32>
    %cst_79 = arith.constant 2.000000e-01 : f32
    %168 = vector.broadcast %cst_79 : f32 to vector<2x16xf32>
    %169 = arith.mulf %168, %167 : vector<2x16xf32>
    %170 = arith.mulf %112, %169 : vector<2x16xf32>
    %171 = arith.addf %170, %165 : vector<2x16xf32>
    %cst_80 = arith.constant 5.000000e-01 : f32
    %172 = vector.broadcast %cst_80 : f32 to vector<2x16xf32>
    %173 = arith.cmpf ogt, %171, %172 : vector<2x16xf32>
    %174 = arith.extui %173 : vector<2x16xi1> to vector<2x16xi32>
    %175 = arith.sitofp %174 : vector<2x16xi32> to vector<2x16xf32>
    %c1 = arith.constant 1 : index
    %c0_81 = arith.constant 0 : index
    %c0_82 = arith.constant 0 : index
    %176 = vector.load %arg10[%c1, %c0_81, %c0_82] : memref<8x2x16xf32, #tpu.memory_space<vmem>>, vector<1x2x16xf32>
    %177 = vector.shape_cast %176 : vector<1x2x16xf32> to vector<2x16xf32>
    %178 = vector.shape_cast %175 : vector<2x16xf32> to vector<1x2x16xf32>
    tpu.vector_store %arg10[%c1, %c0_81, %c0_82], %178 {strides = array<i32>} : memref<8x2x16xf32, #tpu.memory_space<vmem>>, vector<1x2x16xf32>,
    %c64 = arith.constant 64 : index
    %c0_83 = arith.constant 0 : index
    %179 = vector.load %arg11[%c64, %c0_83] : memref<256x128xf32, #tpu.memory_space<vmem>>, vector<32x128xf32>
    %cst_84 = arith.constant 1.000000e+00 : f32
    %180 = vector.broadcast %cst_84 : f32 to vector<32x128xf32>
    %181 = arith.subf %180, %130 : vector<32x128xf32>
    %cst_85 = arith.constant 2.000000e-01 : f32
    %182 = vector.broadcast %cst_85 : f32 to vector<32x128xf32>
    %183 = arith.mulf %182, %181 : vector<32x128xf32>
    %184 = arith.mulf %126, %183 : vector<32x128xf32>
    %185 = arith.addf %184, %179 : vector<32x128xf32>
    %cst_86 = arith.constant 5.000000e-01 : f32
    %186 = vector.broadcast %cst_86 : f32 to vector<32x128xf32>
    %187 = arith.cmpf ogt, %185, %186 : vector<32x128xf32>
    %188 = arith.extui %187 : vector<32x128xi1> to vector<32x128xi32>
    %189 = arith.sitofp %188 : vector<32x128xi32> to vector<32x128xf32>
    %cst_87 = arith.constant dense<0.000000e+00> : vector<8x128xf32>
    %190 = tpu.matmul %7, %189, %cst_87 {dimension_numbers = #tpu.dot_dimension_numbers<[1], [0], [0], [1], [0, 0, 1, 1], [], []>} : vector<8x32xf32>, vector<32x128xf32>, vector<8x128xf32> -> vector<8x128xf32>
    %cst_88 = arith.constant dense<0.000000e+00> : vector<8x32xf32>
    %191 = tpu.matmul %190, %8, %cst_88 {dimension_numbers = #tpu.dot_dimension_numbers<[1], [0], [0], [1], [0, 0, 1, 1], [], []>} : vector<8x128xf32>, vector<128x32xf32>, vector<8x32xf32> -> vector<8x32xf32>
    %cst_89 = arith.constant 1.000000e+00 : f32
    %192 = vector.broadcast %cst_89 : f32 to vector<8x32xf32>
    %193 = arith.subf %192, %142 : vector<8x32xf32>
    %cst_90 = arith.constant 2.000000e-01 : f32
    %194 = vector.broadcast %cst_90 : f32 to vector<8x32xf32>
    %195 = arith.mulf %194, %193 : vector<8x32xf32>
    %196 = arith.mulf %138, %195 : vector<8x32xf32>
    %197 = arith.addf %196, %191 : vector<8x32xf32>
    %cst_91 = arith.constant 5.000000e-01 : f32
    %198 = vector.broadcast %cst_91 : f32 to vector<8x32xf32>
    %199 = arith.cmpf ogt, %197, %198 : vector<8x32xf32>
    %200 = arith.extui %199 : vector<8x32xi1> to vector<8x32xi32>
    %201 = arith.sitofp %200 : vector<8x32xi32> to vector<8x32xf32>
    %cst_92 = arith.constant dense<0.000000e+00> : vector<8x192xf32>
    %202 = tpu.matmul %201, %9, %cst_92 {dimension_numbers = #tpu.dot_dimension_numbers<[1], [0], [0], [1], [0, 0, 1, 1], [], []>} : vector<8x32xf32>, vector<32x192xf32>, vector<8x192xf32> -> vector<8x192xf32>
    %203 = vector.extract_strided_slice %202 {offsets = [0, 0], sizes = [8, 64], strides = [1, 1]} : vector<8x192xf32> to vector<8x64xf32>
    %204 = arith.addf %14, %203 : vector<8x64xf32>
    %205 = vector.extract_strided_slice %202 {offsets = [0, 64], sizes = [8, 64], strides = [1, 1]} : vector<8x192xf32> to vector<8x64xf32>
    %c1_i32_93 = arith.constant 1 : i32
    %206 = tpu.dynamic_rotate %205 by %c1_i32_93 dim 0 : vector<8x64xf32>, i32 -> vector<8x64xf32>
    %207 = arith.select %33, %206, %52 : vector<8x64xi1>, vector<8x64xf32>
    %208 = arith.addf %204, %207 : vector<8x64xf32>
    %209 = vector.extract_strided_slice %202 {offsets = [0, 128], sizes = [8, 64], strides = [1, 1]} : vector<8x192xf32> to vector<8x64xf32>
    %c7_i32_94 = arith.constant 7 : i32
    %210 = tpu.dynamic_rotate %209 by %c7_i32_94 dim 0 : vector<8x64xf32>, i32 -> vector<8x64xf32>
    %211 = arith.select %51, %210, %52 : vector<8x64xi1>, vector<8x64xf32>
    %212 = arith.addf %208, %211 : vector<8x64xf32>
    %cst_95 = arith.constant 1.000000e+00 : f32
    %213 = vector.broadcast %cst_95 : f32 to vector<8x64xf32>
    %214 = arith.subf %213, %163 : vector<8x64xf32>
    %cst_96 = arith.constant 2.000000e-01 : f32
    %215 = vector.broadcast %cst_96 : f32 to vector<8x64xf32>
    %216 = arith.mulf %215, %214 : vector<8x64xf32>
    %217 = arith.mulf %159, %216 : vector<8x64xf32>
    %218 = arith.addf %217, %212 : vector<8x64xf32>
    %cst_97 = arith.constant 5.000000e-01 : f32
    %219 = vector.broadcast %cst_97 : f32 to vector<8x64xf32>
    %220 = arith.cmpf ogt, %218, %219 : vector<8x64xf32>
    %221 = arith.extui %220 : vector<8x64xi1> to vector<8x64xi32>
    %222 = arith.sitofp %221 : vector<8x64xi32> to vector<8x64xf32>
    %cst_98 = arith.constant dense<0.000000e+00> : vector<2x64xf32>
    %223 = tpu.matmul %10, %222, %cst_98 {dimension_numbers = #tpu.dot_dimension_numbers<[1], [0], [0], [1], [0, 0, 1, 1], [], []>} : vector<2x8xf32>, vector<8x64xf32>, vector<2x64xf32> -> vector<2x64xf32>
    %cst_99 = arith.constant dense<0.000000e+00> : vector<2x16xf32>
    %224 = tpu.matmul %223, %11, %cst_99 {dimension_numbers = #tpu.dot_dimension_numbers<[1], [0], [0], [1], [0, 0, 1, 1], [], []>} : vector<2x64xf32>, vector<64x16xf32>, vector<2x16xf32> -> vector<2x16xf32>
    %cst_100 = arith.constant 1.000000e+00 : f32
    %225 = vector.broadcast %cst_100 : f32 to vector<2x16xf32>
    %226 = arith.subf %225, %175 : vector<2x16xf32>
    %cst_101 = arith.constant 2.000000e-01 : f32
    %227 = vector.broadcast %cst_101 : f32 to vector<2x16xf32>
    %228 = arith.mulf %227, %226 : vector<2x16xf32>
    %229 = arith.mulf %171, %228 : vector<2x16xf32>
    %230 = arith.addf %229, %224 : vector<2x16xf32>
    %cst_102 = arith.constant 5.000000e-01 : f32
    %231 = vector.broadcast %cst_102 : f32 to vector<2x16xf32>
    %232 = arith.cmpf ogt, %230, %231 : vector<2x16xf32>
    %233 = arith.extui %232 : vector<2x16xi1> to vector<2x16xi32>
    %234 = arith.sitofp %233 : vector<2x16xi32> to vector<2x16xf32>
    %c2 = arith.constant 2 : index
    %c0_103 = arith.constant 0 : index
    %c0_104 = arith.constant 0 : index
    %235 = vector.load %arg10[%c2, %c0_103, %c0_104] : memref<8x2x16xf32, #tpu.memory_space<vmem>>, vector<1x2x16xf32>
    %236 = vector.shape_cast %235 : vector<1x2x16xf32> to vector<2x16xf32>
    %237 = vector.shape_cast %234 : vector<2x16xf32> to vector<1x2x16xf32>
    tpu.vector_store %arg10[%c2, %c0_103, %c0_104], %237 {strides = array<i32>} : memref<8x2x16xf32, #tpu.memory_space<vmem>>, vector<1x2x16xf32>,
    %c96 = arith.constant 96 : index
    %c0_105 = arith.constant 0 : index
    %238 = vector.load %arg11[%c96, %c0_105] : memref<256x128xf32, #tpu.memory_space<vmem>>, vector<32x128xf32>
    %cst_106 = arith.constant 1.000000e+00 : f32
    %239 = vector.broadcast %cst_106 : f32 to vector<32x128xf32>
    %240 = arith.subf %239, %189 : vector<32x128xf32>
    %cst_107 = arith.constant 2.000000e-01 : f32
    %241 = vector.broadcast %cst_107 : f32 to vector<32x128xf32>
    %242 = arith.mulf %241, %240 : vector<32x128xf32>
    %243 = arith.mulf %185, %242 : vector<32x128xf32>
    %244 = arith.addf %243, %238 : vector<32x128xf32>
    %cst_108 = arith.constant 5.000000e-01 : f32
    %245 = vector.broadcast %cst_108 : f32 to vector<32x128xf32>
    %246 = arith.cmpf ogt, %244, %245 : vector<32x128xf32>
    %247 = arith.extui %246 : vector<32x128xi1> to vector<32x128xi32>
    %248 = arith.sitofp %247 : vector<32x128xi32> to vector<32x128xf32>
    %cst_109 = arith.constant dense<0.000000e+00> : vector<8x128xf32>
    %249 = tpu.matmul %7, %248, %cst_109 {dimension_numbers = #tpu.dot_dimension_numbers<[1], [0], [0], [1], [0, 0, 1, 1], [], []>} : vector<8x32xf32>, vector<32x128xf32>, vector<8x128xf32> -> vector<8x128xf32>
    %cst_110 = arith.constant dense<0.000000e+00> : vector<8x32xf32>
    %250 = tpu.matmul %249, %8, %cst_110 {dimension_numbers = #tpu.dot_dimension_numbers<[1], [0], [0], [1], [0, 0, 1, 1], [], []>} : vector<8x128xf32>, vector<128x32xf32>, vector<8x32xf32> -> vector<8x32xf32>
    %cst_111 = arith.constant 1.000000e+00 : f32
    %251 = vector.broadcast %cst_111 : f32 to vector<8x32xf32>
    %252 = arith.subf %251, %201 : vector<8x32xf32>
    %cst_112 = arith.constant 2.000000e-01 : f32
    %253 = vector.broadcast %cst_112 : f32 to vector<8x32xf32>
    %254 = arith.mulf %253, %252 : vector<8x32xf32>
    %255 = arith.mulf %197, %254 : vector<8x32xf32>
    %256 = arith.addf %255, %250 : vector<8x32xf32>
    %cst_113 = arith.constant 5.000000e-01 : f32
    %257 = vector.broadcast %cst_113 : f32 to vector<8x32xf32>
    %258 = arith.cmpf ogt, %256, %257 : vector<8x32xf32>
    %259 = arith.extui %258 : vector<8x32xi1> to vector<8x32xi32>
    %260 = arith.sitofp %259 : vector<8x32xi32> to vector<8x32xf32>
    %cst_114 = arith.constant dense<0.000000e+00> : vector<8x192xf32>
    %261 = tpu.matmul %260, %9, %cst_114 {dimension_numbers = #tpu.dot_dimension_numbers<[1], [0], [0], [1], [0, 0, 1, 1], [], []>} : vector<8x32xf32>, vector<32x192xf32>, vector<8x192xf32> -> vector<8x192xf32>
    %262 = vector.extract_strided_slice %261 {offsets = [0, 0], sizes = [8, 64], strides = [1, 1]} : vector<8x192xf32> to vector<8x64xf32>
    %263 = arith.addf %14, %262 : vector<8x64xf32>
    %264 = vector.extract_strided_slice %261 {offsets = [0, 64], sizes = [8, 64], strides = [1, 1]} : vector<8x192xf32> to vector<8x64xf32>
    %c1_i32_115 = arith.constant 1 : i32
    %265 = tpu.dynamic_rotate %264 by %c1_i32_115 dim 0 : vector<8x64xf32>, i32 -> vector<8x64xf32>
    %266 = arith.select %33, %265, %52 : vector<8x64xi1>, vector<8x64xf32>
    %267 = arith.addf %263, %266 : vector<8x64xf32>
    %268 = vector.extract_strided_slice %261 {offsets = [0, 128], sizes = [8, 64], strides = [1, 1]} : vector<8x192xf32> to vector<8x64xf32>
    %c7_i32_116 = arith.constant 7 : i32
    %269 = tpu.dynamic_rotate %268 by %c7_i32_116 dim 0 : vector<8x64xf32>, i32 -> vector<8x64xf32>
    %270 = arith.select %51, %269, %52 : vector<8x64xi1>, vector<8x64xf32>
    %271 = arith.addf %267, %270 : vector<8x64xf32>
    %cst_117 = arith.constant 1.000000e+00 : f32
    %272 = vector.broadcast %cst_117 : f32 to vector<8x64xf32>
    %273 = arith.subf %272, %222 : vector<8x64xf32>
    %cst_118 = arith.constant 2.000000e-01 : f32
    %274 = vector.broadcast %cst_118 : f32 to vector<8x64xf32>
    %275 = arith.mulf %274, %273 : vector<8x64xf32>
    %276 = arith.mulf %218, %275 : vector<8x64xf32>
    %277 = arith.addf %276, %271 : vector<8x64xf32>
    %cst_119 = arith.constant 5.000000e-01 : f32
    %278 = vector.broadcast %cst_119 : f32 to vector<8x64xf32>
    %279 = arith.cmpf ogt, %277, %278 : vector<8x64xf32>
    %280 = arith.extui %279 : vector<8x64xi1> to vector<8x64xi32>
    %281 = arith.sitofp %280 : vector<8x64xi32> to vector<8x64xf32>
    %cst_120 = arith.constant dense<0.000000e+00> : vector<2x64xf32>
    %282 = tpu.matmul %10, %281, %cst_120 {dimension_numbers = #tpu.dot_dimension_numbers<[1], [0], [0], [1], [0, 0, 1, 1], [], []>} : vector<2x8xf32>, vector<8x64xf32>, vector<2x64xf32> -> vector<2x64xf32>
    %cst_121 = arith.constant dense<0.000000e+00> : vector<2x16xf32>
    %283 = tpu.matmul %282, %11, %cst_121 {dimension_numbers = #tpu.dot_dimension_numbers<[1], [0], [0], [1], [0, 0, 1, 1], [], []>} : vector<2x64xf32>, vector<64x16xf32>, vector<2x16xf32> -> vector<2x16xf32>
    %cst_122 = arith.constant 1.000000e+00 : f32
    %284 = vector.broadcast %cst_122 : f32 to vector<2x16xf32>
    %285 = arith.subf %284, %234 : vector<2x16xf32>
    %cst_123 = arith.constant 2.000000e-01 : f32
    %286 = vector.broadcast %cst_123 : f32 to vector<2x16xf32>
    %287 = arith.mulf %286, %285 : vector<2x16xf32>
    %288 = arith.mulf %230, %287 : vector<2x16xf32>
    %289 = arith.addf %288, %283 : vector<2x16xf32>
    %cst_124 = arith.constant 5.000000e-01 : f32
    %290 = vector.broadcast %cst_124 : f32 to vector<2x16xf32>
    %291 = arith.cmpf ogt, %289, %290 : vector<2x16xf32>
    %292 = arith.extui %291 : vector<2x16xi1> to vector<2x16xi32>
    %293 = arith.sitofp %292 : vector<2x16xi32> to vector<2x16xf32>
    %c3 = arith.constant 3 : index
    %c0_125 = arith.constant 0 : index
    %c0_126 = arith.constant 0 : index
    %294 = vector.load %arg10[%c3, %c0_125, %c0_126] : memref<8x2x16xf32, #tpu.memory_space<vmem>>, vector<1x2x16xf32>
    %295 = vector.shape_cast %294 : vector<1x2x16xf32> to vector<2x16xf32>
    %296 = vector.shape_cast %293 : vector<2x16xf32> to vector<1x2x16xf32>
    tpu.vector_store %arg10[%c3, %c0_125, %c0_126], %296 {strides = array<i32>} : memref<8x2x16xf32, #tpu.memory_space<vmem>>, vector<1x2x16xf32>,
    %c128 = arith.constant 128 : index
    %c0_127 = arith.constant 0 : index
    %297 = vector.load %arg11[%c128, %c0_127] : memref<256x128xf32, #tpu.memory_space<vmem>>, vector<32x128xf32>
    %cst_128 = arith.constant 1.000000e+00 : f32
    %298 = vector.broadcast %cst_128 : f32 to vector<32x128xf32>
    %299 = arith.subf %298, %248 : vector<32x128xf32>
    %cst_129 = arith.constant 2.000000e-01 : f32
    %300 = vector.broadcast %cst_129 : f32 to vector<32x128xf32>
    %301 = arith.mulf %300, %299 : vector<32x128xf32>
    %302 = arith.mulf %244, %301 : vector<32x128xf32>
    %303 = arith.addf %302, %297 : vector<32x128xf32>
    %cst_130 = arith.constant 5.000000e-01 : f32
    %304 = vector.broadcast %cst_130 : f32 to vector<32x128xf32>
    %305 = arith.cmpf ogt, %303, %304 : vector<32x128xf32>
    %306 = arith.extui %305 : vector<32x128xi1> to vector<32x128xi32>
    %307 = arith.sitofp %306 : vector<32x128xi32> to vector<32x128xf32>
    %cst_131 = arith.constant dense<0.000000e+00> : vector<8x128xf32>
    %308 = tpu.matmul %7, %307, %cst_131 {dimension_numbers = #tpu.dot_dimension_numbers<[1], [0], [0], [1], [0, 0, 1, 1], [], []>} : vector<8x32xf32>, vector<32x128xf32>, vector<8x128xf32> -> vector<8x128xf32>
    %cst_132 = arith.constant dense<0.000000e+00> : vector<8x32xf32>
    %309 = tpu.matmul %308, %8, %cst_132 {dimension_numbers = #tpu.dot_dimension_numbers<[1], [0], [0], [1], [0, 0, 1, 1], [], []>} : vector<8x128xf32>, vector<128x32xf32>, vector<8x32xf32> -> vector<8x32xf32>
    %cst_133 = arith.constant 1.000000e+00 : f32
    %310 = vector.broadcast %cst_133 : f32 to vector<8x32xf32>
    %311 = arith.subf %310, %260 : vector<8x32xf32>
    %cst_134 = arith.constant 2.000000e-01 : f32
    %312 = vector.broadcast %cst_134 : f32 to vector<8x32xf32>
    %313 = arith.mulf %312, %311 : vector<8x32xf32>
    %314 = arith.mulf %256, %313 : vector<8x32xf32>
    %315 = arith.addf %314, %309 : vector<8x32xf32>
    %cst_135 = arith.constant 5.000000e-01 : f32
    %316 = vector.broadcast %cst_135 : f32 to vector<8x32xf32>
    %317 = arith.cmpf ogt, %315, %316 : vector<8x32xf32>
    %318 = arith.extui %317 : vector<8x32xi1> to vector<8x32xi32>
    %319 = arith.sitofp %318 : vector<8x32xi32> to vector<8x32xf32>
    %cst_136 = arith.constant dense<0.000000e+00> : vector<8x192xf32>
    %320 = tpu.matmul %319, %9, %cst_136 {dimension_numbers = #tpu.dot_dimension_numbers<[1], [0], [0], [1], [0, 0, 1, 1], [], []>} : vector<8x32xf32>, vector<32x192xf32>, vector<8x192xf32> -> vector<8x192xf32>
    %321 = vector.extract_strided_slice %320 {offsets = [0, 0], sizes = [8, 64], strides = [1, 1]} : vector<8x192xf32> to vector<8x64xf32>
    %322 = arith.addf %14, %321 : vector<8x64xf32>
    %323 = vector.extract_strided_slice %320 {offsets = [0, 64], sizes = [8, 64], strides = [1, 1]} : vector<8x192xf32> to vector<8x64xf32>
    %c1_i32_137 = arith.constant 1 : i32
    %324 = tpu.dynamic_rotate %323 by %c1_i32_137 dim 0 : vector<8x64xf32>, i32 -> vector<8x64xf32>
    %325 = arith.select %33, %324, %52 : vector<8x64xi1>, vector<8x64xf32>
    %326 = arith.addf %322, %325 : vector<8x64xf32>
    %327 = vector.extract_strided_slice %320 {offsets = [0, 128], sizes = [8, 64], strides = [1, 1]} : vector<8x192xf32> to vector<8x64xf32>
    %c7_i32_138 = arith.constant 7 : i32
    %328 = tpu.dynamic_rotate %327 by %c7_i32_138 dim 0 : vector<8x64xf32>, i32 -> vector<8x64xf32>
    %329 = arith.select %51, %328, %52 : vector<8x64xi1>, vector<8x64xf32>
    %330 = arith.addf %326, %329 : vector<8x64xf32>
    %cst_139 = arith.constant 1.000000e+00 : f32
    %331 = vector.broadcast %cst_139 : f32 to vector<8x64xf32>
    %332 = arith.subf %331, %281 : vector<8x64xf32>
    %cst_140 = arith.constant 2.000000e-01 : f32
    %333 = vector.broadcast %cst_140 : f32 to vector<8x64xf32>
    %334 = arith.mulf %333, %332 : vector<8x64xf32>
    %335 = arith.mulf %277, %334 : vector<8x64xf32>
    %336 = arith.addf %335, %330 : vector<8x64xf32>
    %cst_141 = arith.constant 5.000000e-01 : f32
    %337 = vector.broadcast %cst_141 : f32 to vector<8x64xf32>
    %338 = arith.cmpf ogt, %336, %337 : vector<8x64xf32>
    %339 = arith.extui %338 : vector<8x64xi1> to vector<8x64xi32>
    %340 = arith.sitofp %339 : vector<8x64xi32> to vector<8x64xf32>
    %cst_142 = arith.constant dense<0.000000e+00> : vector<2x64xf32>
    %341 = tpu.matmul %10, %340, %cst_142 {dimension_numbers = #tpu.dot_dimension_numbers<[1], [0], [0], [1], [0, 0, 1, 1], [], []>} : vector<2x8xf32>, vector<8x64xf32>, vector<2x64xf32> -> vector<2x64xf32>
    %cst_143 = arith.constant dense<0.000000e+00> : vector<2x16xf32>
    %342 = tpu.matmul %341, %11, %cst_143 {dimension_numbers = #tpu.dot_dimension_numbers<[1], [0], [0], [1], [0, 0, 1, 1], [], []>} : vector<2x64xf32>, vector<64x16xf32>, vector<2x16xf32> -> vector<2x16xf32>
    %cst_144 = arith.constant 1.000000e+00 : f32
    %343 = vector.broadcast %cst_144 : f32 to vector<2x16xf32>
    %344 = arith.subf %343, %293 : vector<2x16xf32>
    %cst_145 = arith.constant 2.000000e-01 : f32
    %345 = vector.broadcast %cst_145 : f32 to vector<2x16xf32>
    %346 = arith.mulf %345, %344 : vector<2x16xf32>
    %347 = arith.mulf %289, %346 : vector<2x16xf32>
    %348 = arith.addf %347, %342 : vector<2x16xf32>
    %cst_146 = arith.constant 5.000000e-01 : f32
    %349 = vector.broadcast %cst_146 : f32 to vector<2x16xf32>
    %350 = arith.cmpf ogt, %348, %349 : vector<2x16xf32>
    %351 = arith.extui %350 : vector<2x16xi1> to vector<2x16xi32>
    %352 = arith.sitofp %351 : vector<2x16xi32> to vector<2x16xf32>
    %c4 = arith.constant 4 : index
    %c0_147 = arith.constant 0 : index
    %c0_148 = arith.constant 0 : index
    %353 = vector.load %arg10[%c4, %c0_147, %c0_148] : memref<8x2x16xf32, #tpu.memory_space<vmem>>, vector<1x2x16xf32>
    %354 = vector.shape_cast %353 : vector<1x2x16xf32> to vector<2x16xf32>
    %355 = vector.shape_cast %352 : vector<2x16xf32> to vector<1x2x16xf32>
    tpu.vector_store %arg10[%c4, %c0_147, %c0_148], %355 {strides = array<i32>} : memref<8x2x16xf32, #tpu.memory_space<vmem>>, vector<1x2x16xf32>,
    %c160 = arith.constant 160 : index
    %c0_149 = arith.constant 0 : index
    %356 = vector.load %arg11[%c160, %c0_149] : memref<256x128xf32, #tpu.memory_space<vmem>>, vector<32x128xf32>
    %cst_150 = arith.constant 1.000000e+00 : f32
    %357 = vector.broadcast %cst_150 : f32 to vector<32x128xf32>
    %358 = arith.subf %357, %307 : vector<32x128xf32>
    %cst_151 = arith.constant 2.000000e-01 : f32
    %359 = vector.broadcast %cst_151 : f32 to vector<32x128xf32>
    %360 = arith.mulf %359, %358 : vector<32x128xf32>
    %361 = arith.mulf %303, %360 : vector<32x128xf32>
    %362 = arith.addf %361, %356 : vector<32x128xf32>
    %cst_152 = arith.constant 5.000000e-01 : f32
    %363 = vector.broadcast %cst_152 : f32 to vector<32x128xf32>
    %364 = arith.cmpf ogt, %362, %363 : vector<32x128xf32>
    %365 = arith.extui %364 : vector<32x128xi1> to vector<32x128xi32>
    %366 = arith.sitofp %365 : vector<32x128xi32> to vector<32x128xf32>
    %cst_153 = arith.constant dense<0.000000e+00> : vector<8x128xf32>
    %367 = tpu.matmul %7, %366, %cst_153 {dimension_numbers = #tpu.dot_dimension_numbers<[1], [0], [0], [1], [0, 0, 1, 1], [], []>} : vector<8x32xf32>, vector<32x128xf32>, vector<8x128xf32> -> vector<8x128xf32>
    %cst_154 = arith.constant dense<0.000000e+00> : vector<8x32xf32>
    %368 = tpu.matmul %367, %8, %cst_154 {dimension_numbers = #tpu.dot_dimension_numbers<[1], [0], [0], [1], [0, 0, 1, 1], [], []>} : vector<8x128xf32>, vector<128x32xf32>, vector<8x32xf32> -> vector<8x32xf32>
    %cst_155 = arith.constant 1.000000e+00 : f32
    %369 = vector.broadcast %cst_155 : f32 to vector<8x32xf32>
    %370 = arith.subf %369, %319 : vector<8x32xf32>
    %cst_156 = arith.constant 2.000000e-01 : f32
    %371 = vector.broadcast %cst_156 : f32 to vector<8x32xf32>
    %372 = arith.mulf %371, %370 : vector<8x32xf32>
    %373 = arith.mulf %315, %372 : vector<8x32xf32>
    %374 = arith.addf %373, %368 : vector<8x32xf32>
    %cst_157 = arith.constant 5.000000e-01 : f32
    %375 = vector.broadcast %cst_157 : f32 to vector<8x32xf32>
    %376 = arith.cmpf ogt, %374, %375 : vector<8x32xf32>
    %377 = arith.extui %376 : vector<8x32xi1> to vector<8x32xi32>
    %378 = arith.sitofp %377 : vector<8x32xi32> to vector<8x32xf32>
    %cst_158 = arith.constant dense<0.000000e+00> : vector<8x192xf32>
    %379 = tpu.matmul %378, %9, %cst_158 {dimension_numbers = #tpu.dot_dimension_numbers<[1], [0], [0], [1], [0, 0, 1, 1], [], []>} : vector<8x32xf32>, vector<32x192xf32>, vector<8x192xf32> -> vector<8x192xf32>
    %380 = vector.extract_strided_slice %379 {offsets = [0, 0], sizes = [8, 64], strides = [1, 1]} : vector<8x192xf32> to vector<8x64xf32>
    %381 = arith.addf %14, %380 : vector<8x64xf32>
    %382 = vector.extract_strided_slice %379 {offsets = [0, 64], sizes = [8, 64], strides = [1, 1]} : vector<8x192xf32> to vector<8x64xf32>
    %c1_i32_159 = arith.constant 1 : i32
    %383 = tpu.dynamic_rotate %382 by %c1_i32_159 dim 0 : vector<8x64xf32>, i32 -> vector<8x64xf32>
    %384 = arith.select %33, %383, %52 : vector<8x64xi1>, vector<8x64xf32>
    %385 = arith.addf %381, %384 : vector<8x64xf32>
    %386 = vector.extract_strided_slice %379 {offsets = [0, 128], sizes = [8, 64], strides = [1, 1]} : vector<8x192xf32> to vector<8x64xf32>
    %c7_i32_160 = arith.constant 7 : i32
    %387 = tpu.dynamic_rotate %386 by %c7_i32_160 dim 0 : vector<8x64xf32>, i32 -> vector<8x64xf32>
    %388 = arith.select %51, %387, %52 : vector<8x64xi1>, vector<8x64xf32>
    %389 = arith.addf %385, %388 : vector<8x64xf32>
    %cst_161 = arith.constant 1.000000e+00 : f32
    %390 = vector.broadcast %cst_161 : f32 to vector<8x64xf32>
    %391 = arith.subf %390, %340 : vector<8x64xf32>
    %cst_162 = arith.constant 2.000000e-01 : f32
    %392 = vector.broadcast %cst_162 : f32 to vector<8x64xf32>
    %393 = arith.mulf %392, %391 : vector<8x64xf32>
    %394 = arith.mulf %336, %393 : vector<8x64xf32>
    %395 = arith.addf %394, %389 : vector<8x64xf32>
    %cst_163 = arith.constant 5.000000e-01 : f32
    %396 = vector.broadcast %cst_163 : f32 to vector<8x64xf32>
    %397 = arith.cmpf ogt, %395, %396 : vector<8x64xf32>
    %398 = arith.extui %397 : vector<8x64xi1> to vector<8x64xi32>
    %399 = arith.sitofp %398 : vector<8x64xi32> to vector<8x64xf32>
    %cst_164 = arith.constant dense<0.000000e+00> : vector<2x64xf32>
    %400 = tpu.matmul %10, %399, %cst_164 {dimension_numbers = #tpu.dot_dimension_numbers<[1], [0], [0], [1], [0, 0, 1, 1], [], []>} : vector<2x8xf32>, vector<8x64xf32>, vector<2x64xf32> -> vector<2x64xf32>
    %cst_165 = arith.constant dense<0.000000e+00> : vector<2x16xf32>
    %401 = tpu.matmul %400, %11, %cst_165 {dimension_numbers = #tpu.dot_dimension_numbers<[1], [0], [0], [1], [0, 0, 1, 1], [], []>} : vector<2x64xf32>, vector<64x16xf32>, vector<2x16xf32> -> vector<2x16xf32>
    %cst_166 = arith.constant 1.000000e+00 : f32
    %402 = vector.broadcast %cst_166 : f32 to vector<2x16xf32>
    %403 = arith.subf %402, %352 : vector<2x16xf32>
    %cst_167 = arith.constant 2.000000e-01 : f32
    %404 = vector.broadcast %cst_167 : f32 to vector<2x16xf32>
    %405 = arith.mulf %404, %403 : vector<2x16xf32>
    %406 = arith.mulf %348, %405 : vector<2x16xf32>
    %407 = arith.addf %406, %401 : vector<2x16xf32>
    %cst_168 = arith.constant 5.000000e-01 : f32
    %408 = vector.broadcast %cst_168 : f32 to vector<2x16xf32>
    %409 = arith.cmpf ogt, %407, %408 : vector<2x16xf32>
    %410 = arith.extui %409 : vector<2x16xi1> to vector<2x16xi32>
    %411 = arith.sitofp %410 : vector<2x16xi32> to vector<2x16xf32>
    %c5 = arith.constant 5 : index
    %c0_169 = arith.constant 0 : index
    %c0_170 = arith.constant 0 : index
    %412 = vector.load %arg10[%c5, %c0_169, %c0_170] : memref<8x2x16xf32, #tpu.memory_space<vmem>>, vector<1x2x16xf32>
    %413 = vector.shape_cast %412 : vector<1x2x16xf32> to vector<2x16xf32>
    %414 = vector.shape_cast %411 : vector<2x16xf32> to vector<1x2x16xf32>
    tpu.vector_store %arg10[%c5, %c0_169, %c0_170], %414 {strides = array<i32>} : memref<8x2x16xf32, #tpu.memory_space<vmem>>, vector<1x2x16xf32>,
    %c192 = arith.constant 192 : index
    %c0_171 = arith.constant 0 : index
    %415 = vector.load %arg11[%c192, %c0_171] : memref<256x128xf32, #tpu.memory_space<vmem>>, vector<32x128xf32>
    %cst_172 = arith.constant 1.000000e+00 : f32
    %416 = vector.broadcast %cst_172 : f32 to vector<32x128xf32>
    %417 = arith.subf %416, %366 : vector<32x128xf32>
    %cst_173 = arith.constant 2.000000e-01 : f32
    %418 = vector.broadcast %cst_173 : f32 to vector<32x128xf32>
    %419 = arith.mulf %418, %417 : vector<32x128xf32>
    %420 = arith.mulf %362, %419 : vector<32x128xf32>
    %421 = arith.addf %420, %415 : vector<32x128xf32>
    %cst_174 = arith.constant 5.000000e-01 : f32
    %422 = vector.broadcast %cst_174 : f32 to vector<32x128xf32>
    %423 = arith.cmpf ogt, %421, %422 : vector<32x128xf32>
    %424 = arith.extui %423 : vector<32x128xi1> to vector<32x128xi32>
    %425 = arith.sitofp %424 : vector<32x128xi32> to vector<32x128xf32>
    %cst_175 = arith.constant dense<0.000000e+00> : vector<8x128xf32>
    %426 = tpu.matmul %7, %425, %cst_175 {dimension_numbers = #tpu.dot_dimension_numbers<[1], [0], [0], [1], [0, 0, 1, 1], [], []>} : vector<8x32xf32>, vector<32x128xf32>, vector<8x128xf32> -> vector<8x128xf32>
    %cst_176 = arith.constant dense<0.000000e+00> : vector<8x32xf32>
    %427 = tpu.matmul %426, %8, %cst_176 {dimension_numbers = #tpu.dot_dimension_numbers<[1], [0], [0], [1], [0, 0, 1, 1], [], []>} : vector<8x128xf32>, vector<128x32xf32>, vector<8x32xf32> -> vector<8x32xf32>
    %cst_177 = arith.constant 1.000000e+00 : f32
    %428 = vector.broadcast %cst_177 : f32 to vector<8x32xf32>
    %429 = arith.subf %428, %378 : vector<8x32xf32>
    %cst_178 = arith.constant 2.000000e-01 : f32
    %430 = vector.broadcast %cst_178 : f32 to vector<8x32xf32>
    %431 = arith.mulf %430, %429 : vector<8x32xf32>
    %432 = arith.mulf %374, %431 : vector<8x32xf32>
    %433 = arith.addf %432, %427 : vector<8x32xf32>
    %cst_179 = arith.constant 5.000000e-01 : f32
    %434 = vector.broadcast %cst_179 : f32 to vector<8x32xf32>
    %435 = arith.cmpf ogt, %433, %434 : vector<8x32xf32>
    %436 = arith.extui %435 : vector<8x32xi1> to vector<8x32xi32>
    %437 = arith.sitofp %436 : vector<8x32xi32> to vector<8x32xf32>
    %cst_180 = arith.constant dense<0.000000e+00> : vector<8x192xf32>
    %438 = tpu.matmul %437, %9, %cst_180 {dimension_numbers = #tpu.dot_dimension_numbers<[1], [0], [0], [1], [0, 0, 1, 1], [], []>} : vector<8x32xf32>, vector<32x192xf32>, vector<8x192xf32> -> vector<8x192xf32>
    %439 = vector.extract_strided_slice %438 {offsets = [0, 0], sizes = [8, 64], strides = [1, 1]} : vector<8x192xf32> to vector<8x64xf32>
    %440 = arith.addf %14, %439 : vector<8x64xf32>
    %441 = vector.extract_strided_slice %438 {offsets = [0, 64], sizes = [8, 64], strides = [1, 1]} : vector<8x192xf32> to vector<8x64xf32>
    %c1_i32_181 = arith.constant 1 : i32
    %442 = tpu.dynamic_rotate %441 by %c1_i32_181 dim 0 : vector<8x64xf32>, i32 -> vector<8x64xf32>
    %443 = arith.select %33, %442, %52 : vector<8x64xi1>, vector<8x64xf32>
    %444 = arith.addf %440, %443 : vector<8x64xf32>
    %445 = vector.extract_strided_slice %438 {offsets = [0, 128], sizes = [8, 64], strides = [1, 1]} : vector<8x192xf32> to vector<8x64xf32>
    %c7_i32_182 = arith.constant 7 : i32
    %446 = tpu.dynamic_rotate %445 by %c7_i32_182 dim 0 : vector<8x64xf32>, i32 -> vector<8x64xf32>
    %447 = arith.select %51, %446, %52 : vector<8x64xi1>, vector<8x64xf32>
    %448 = arith.addf %444, %447 : vector<8x64xf32>
    %cst_183 = arith.constant 1.000000e+00 : f32
    %449 = vector.broadcast %cst_183 : f32 to vector<8x64xf32>
    %450 = arith.subf %449, %399 : vector<8x64xf32>
    %cst_184 = arith.constant 2.000000e-01 : f32
    %451 = vector.broadcast %cst_184 : f32 to vector<8x64xf32>
    %452 = arith.mulf %451, %450 : vector<8x64xf32>
    %453 = arith.mulf %395, %452 : vector<8x64xf32>
    %454 = arith.addf %453, %448 : vector<8x64xf32>
    %cst_185 = arith.constant 5.000000e-01 : f32
    %455 = vector.broadcast %cst_185 : f32 to vector<8x64xf32>
    %456 = arith.cmpf ogt, %454, %455 : vector<8x64xf32>
    %457 = arith.extui %456 : vector<8x64xi1> to vector<8x64xi32>
    %458 = arith.sitofp %457 : vector<8x64xi32> to vector<8x64xf32>
    %cst_186 = arith.constant dense<0.000000e+00> : vector<2x64xf32>
    %459 = tpu.matmul %10, %458, %cst_186 {dimension_numbers = #tpu.dot_dimension_numbers<[1], [0], [0], [1], [0, 0, 1, 1], [], []>} : vector<2x8xf32>, vector<8x64xf32>, vector<2x64xf32> -> vector<2x64xf32>
    %cst_187 = arith.constant dense<0.000000e+00> : vector<2x16xf32>
    %460 = tpu.matmul %459, %11, %cst_187 {dimension_numbers = #tpu.dot_dimension_numbers<[1], [0], [0], [1], [0, 0, 1, 1], [], []>} : vector<2x64xf32>, vector<64x16xf32>, vector<2x16xf32> -> vector<2x16xf32>
    %cst_188 = arith.constant 1.000000e+00 : f32
    %461 = vector.broadcast %cst_188 : f32 to vector<2x16xf32>
    %462 = arith.subf %461, %411 : vector<2x16xf32>
    %cst_189 = arith.constant 2.000000e-01 : f32
    %463 = vector.broadcast %cst_189 : f32 to vector<2x16xf32>
    %464 = arith.mulf %463, %462 : vector<2x16xf32>
    %465 = arith.mulf %407, %464 : vector<2x16xf32>
    %466 = arith.addf %465, %460 : vector<2x16xf32>
    %cst_190 = arith.constant 5.000000e-01 : f32
    %467 = vector.broadcast %cst_190 : f32 to vector<2x16xf32>
    %468 = arith.cmpf ogt, %466, %467 : vector<2x16xf32>
    %469 = arith.extui %468 : vector<2x16xi1> to vector<2x16xi32>
    %470 = arith.sitofp %469 : vector<2x16xi32> to vector<2x16xf32>
    %c6 = arith.constant 6 : index
    %c0_191 = arith.constant 0 : index
    %c0_192 = arith.constant 0 : index
    %471 = vector.load %arg10[%c6, %c0_191, %c0_192] : memref<8x2x16xf32, #tpu.memory_space<vmem>>, vector<1x2x16xf32>
    %472 = vector.shape_cast %471 : vector<1x2x16xf32> to vector<2x16xf32>
    %473 = vector.shape_cast %470 : vector<2x16xf32> to vector<1x2x16xf32>
    tpu.vector_store %arg10[%c6, %c0_191, %c0_192], %473 {strides = array<i32>} : memref<8x2x16xf32, #tpu.memory_space<vmem>>, vector<1x2x16xf32>,
    %c224 = arith.constant 224 : index
    %c0_193 = arith.constant 0 : index
    %474 = vector.load %arg11[%c224, %c0_193] : memref<256x128xf32, #tpu.memory_space<vmem>>, vector<32x128xf32>
    %cst_194 = arith.constant 1.000000e+00 : f32
    %475 = vector.broadcast %cst_194 : f32 to vector<32x128xf32>
    %476 = arith.subf %475, %425 : vector<32x128xf32>
    %cst_195 = arith.constant 2.000000e-01 : f32
    %477 = vector.broadcast %cst_195 : f32 to vector<32x128xf32>
    %478 = arith.mulf %477, %476 : vector<32x128xf32>
    %479 = arith.mulf %421, %478 : vector<32x128xf32>
    %480 = arith.addf %479, %474 : vector<32x128xf32>
    %cst_196 = arith.constant 5.000000e-01 : f32
    %481 = vector.broadcast %cst_196 : f32 to vector<32x128xf32>
    %482 = arith.cmpf ogt, %480, %481 : vector<32x128xf32>
    %483 = arith.extui %482 : vector<32x128xi1> to vector<32x128xi32>
    %484 = arith.sitofp %483 : vector<32x128xi32> to vector<32x128xf32>
    %cst_197 = arith.constant dense<0.000000e+00> : vector<8x128xf32>
    %485 = tpu.matmul %7, %484, %cst_197 {dimension_numbers = #tpu.dot_dimension_numbers<[1], [0], [0], [1], [0, 0, 1, 1], [], []>} : vector<8x32xf32>, vector<32x128xf32>, vector<8x128xf32> -> vector<8x128xf32>
    %cst_198 = arith.constant dense<0.000000e+00> : vector<8x32xf32>
    %486 = tpu.matmul %485, %8, %cst_198 {dimension_numbers = #tpu.dot_dimension_numbers<[1], [0], [0], [1], [0, 0, 1, 1], [], []>} : vector<8x128xf32>, vector<128x32xf32>, vector<8x32xf32> -> vector<8x32xf32>
    %cst_199 = arith.constant 1.000000e+00 : f32
    %487 = vector.broadcast %cst_199 : f32 to vector<8x32xf32>
    %488 = arith.subf %487, %437 : vector<8x32xf32>
    %cst_200 = arith.constant 2.000000e-01 : f32
    %489 = vector.broadcast %cst_200 : f32 to vector<8x32xf32>
    %490 = arith.mulf %489, %488 : vector<8x32xf32>
    %491 = arith.mulf %433, %490 : vector<8x32xf32>
    %492 = arith.addf %491, %486 : vector<8x32xf32>
    %cst_201 = arith.constant 5.000000e-01 : f32
    %493 = vector.broadcast %cst_201 : f32 to vector<8x32xf32>
    %494 = arith.cmpf ogt, %492, %493 : vector<8x32xf32>
    %495 = arith.extui %494 : vector<8x32xi1> to vector<8x32xi32>
    %496 = arith.sitofp %495 : vector<8x32xi32> to vector<8x32xf32>
    %cst_202 = arith.constant dense<0.000000e+00> : vector<8x192xf32>
    %497 = tpu.matmul %496, %9, %cst_202 {dimension_numbers = #tpu.dot_dimension_numbers<[1], [0], [0], [1], [0, 0, 1, 1], [], []>} : vector<8x32xf32>, vector<32x192xf32>, vector<8x192xf32> -> vector<8x192xf32>
    %498 = vector.extract_strided_slice %497 {offsets = [0, 0], sizes = [8, 64], strides = [1, 1]} : vector<8x192xf32> to vector<8x64xf32>
    %499 = arith.addf %14, %498 : vector<8x64xf32>
    %500 = vector.extract_strided_slice %497 {offsets = [0, 64], sizes = [8, 64], strides = [1, 1]} : vector<8x192xf32> to vector<8x64xf32>
    %c1_i32_203 = arith.constant 1 : i32
    %501 = tpu.dynamic_rotate %500 by %c1_i32_203 dim 0 : vector<8x64xf32>, i32 -> vector<8x64xf32>
    %502 = arith.select %33, %501, %52 : vector<8x64xi1>, vector<8x64xf32>
    %503 = arith.addf %499, %502 : vector<8x64xf32>
    %504 = vector.extract_strided_slice %497 {offsets = [0, 128], sizes = [8, 64], strides = [1, 1]} : vector<8x192xf32> to vector<8x64xf32>
    %c7_i32_204 = arith.constant 7 : i32
    %505 = tpu.dynamic_rotate %504 by %c7_i32_204 dim 0 : vector<8x64xf32>, i32 -> vector<8x64xf32>
    %506 = arith.select %51, %505, %52 : vector<8x64xi1>, vector<8x64xf32>
    %507 = arith.addf %503, %506 : vector<8x64xf32>
    %cst_205 = arith.constant 1.000000e+00 : f32
    %508 = vector.broadcast %cst_205 : f32 to vector<8x64xf32>
    %509 = arith.subf %508, %458 : vector<8x64xf32>
    %cst_206 = arith.constant 2.000000e-01 : f32
    %510 = vector.broadcast %cst_206 : f32 to vector<8x64xf32>
    %511 = arith.mulf %510, %509 : vector<8x64xf32>
    %512 = arith.mulf %454, %511 : vector<8x64xf32>
    %513 = arith.addf %512, %507 : vector<8x64xf32>
    %cst_207 = arith.constant 5.000000e-01 : f32
    %514 = vector.broadcast %cst_207 : f32 to vector<8x64xf32>
    %515 = arith.cmpf ogt, %513, %514 : vector<8x64xf32>
    %516 = arith.extui %515 : vector<8x64xi1> to vector<8x64xi32>
    %517 = arith.sitofp %516 : vector<8x64xi32> to vector<8x64xf32>
    %cst_208 = arith.constant dense<0.000000e+00> : vector<2x64xf32>
    %518 = tpu.matmul %10, %517, %cst_208 {dimension_numbers = #tpu.dot_dimension_numbers<[1], [0], [0], [1], [0, 0, 1, 1], [], []>} : vector<2x8xf32>, vector<8x64xf32>, vector<2x64xf32> -> vector<2x64xf32>
    %cst_209 = arith.constant dense<0.000000e+00> : vector<2x16xf32>
    %519 = tpu.matmul %518, %11, %cst_209 {dimension_numbers = #tpu.dot_dimension_numbers<[1], [0], [0], [1], [0, 0, 1, 1], [], []>} : vector<2x64xf32>, vector<64x16xf32>, vector<2x16xf32> -> vector<2x16xf32>
    %cst_210 = arith.constant 1.000000e+00 : f32
    %520 = vector.broadcast %cst_210 : f32 to vector<2x16xf32>
    %521 = arith.subf %520, %470 : vector<2x16xf32>
    %cst_211 = arith.constant 2.000000e-01 : f32
    %522 = vector.broadcast %cst_211 : f32 to vector<2x16xf32>
    %523 = arith.mulf %522, %521 : vector<2x16xf32>
    %524 = arith.mulf %466, %523 : vector<2x16xf32>
    %525 = arith.addf %524, %519 : vector<2x16xf32>
    %cst_212 = arith.constant 5.000000e-01 : f32
    %526 = vector.broadcast %cst_212 : f32 to vector<2x16xf32>
    %527 = arith.cmpf ogt, %525, %526 : vector<2x16xf32>
    %528 = arith.extui %527 : vector<2x16xi1> to vector<2x16xi32>
    %529 = arith.sitofp %528 : vector<2x16xi32> to vector<2x16xf32>
    %c7 = arith.constant 7 : index
    %c0_213 = arith.constant 0 : index
    %c0_214 = arith.constant 0 : index
    %530 = vector.load %arg10[%c7, %c0_213, %c0_214] : memref<8x2x16xf32, #tpu.memory_space<vmem>>, vector<1x2x16xf32>
    %531 = vector.shape_cast %530 : vector<1x2x16xf32> to vector<2x16xf32>
    %532 = vector.shape_cast %529 : vector<2x16xf32> to vector<1x2x16xf32>
    tpu.vector_store %arg10[%c7, %c0_213, %c0_214], %532 {strides = array<i32>} : memref<8x2x16xf32, #tpu.memory_space<vmem>>, vector<1x2x16xf32>,
    return
  }
  func.func @transform_0(%arg0: i32) -> (i32, i32) {
    %c0_i32 = arith.constant 0 : i32
    %c0_i32_0 = arith.constant 0 : i32
    %c0_i32_1 = arith.constant 0 : i32
    return %c0_i32, %c0_i32_0 : i32, i32
  }
  func.func @transform_1(%arg0: i32) -> (i32, i32) {
    %c0_i32 = arith.constant 0 : i32
    %c0_i32_0 = arith.constant 0 : i32
    %c0_i32_1 = arith.constant 0 : i32
    return %c0_i32, %c0_i32_0 : i32, i32
  }
  func.func @transform_2(%arg0: i32) -> (i32, i32) {
    %c0_i32 = arith.constant 0 : i32
    %c0_i32_0 = arith.constant 0 : i32
    %c0_i32_1 = arith.constant 0 : i32
    return %c0_i32, %c0_i32_0 : i32, i32
  }
  func.func @transform_3(%arg0: i32) -> (i32, i32) {
    %c0_i32 = arith.constant 0 : i32
    %c0_i32_0 = arith.constant 0 : i32
    %c0_i32_1 = arith.constant 0 : i32
    return %c0_i32, %c0_i32_0 : i32, i32
  }
  func.func @transform_4(%arg0: i32) -> (i32, i32) {
    %c0_i32 = arith.constant 0 : i32
    %c0_i32_0 = arith.constant 0 : i32
    %c0_i32_1 = arith.constant 0 : i32
    return %c0_i32, %c0_i32_0 : i32, i32
  }
  func.func @transform_5(%arg0: i32) -> (i32, i32) {
    %c0_i32 = arith.constant 0 : i32
    %c0_i32_0 = arith.constant 0 : i32
    %c0_i32_1 = arith.constant 0 : i32
    return %c0_i32, %c0_i32_0 : i32, i32
  }
  func.func @transform_6(%arg0: i32) -> (i32, i32) {
    %c0_i32 = arith.constant 0 : i32
    %c0_i32_0 = arith.constant 0 : i32
    %c0_i32_1 = arith.constant 0 : i32
    return %c0_i32, %c0_i32_0 : i32, i32
  }
  func.func @transform_7(%arg0: i32) -> (i32, i32) {
    %c0_i32 = arith.constant 0 : i32
    %c0_i32_0 = arith.constant 0 : i32
    %c0_i32_1 = arith.constant 0 : i32
    return %c0_i32, %c0_i32_0 : i32, i32
  }
  func.func @transform_8(%arg0: i32) -> (i32, i32) {
    %c0_i32 = arith.constant 0 : i32
    %c0_i32_0 = arith.constant 0 : i32
    %c0_i32_1 = arith.constant 0 : i32
    return %c0_i32, %c0_i32_0 : i32, i32
  }
  func.func @transform_9(%arg0: i32) -> (i32, i32, i32) {
    %c0_i32 = arith.constant 0 : i32
    %c0_i32_0 = arith.constant 0 : i32
    %c0_i32_1 = arith.constant 0 : i32
    %c0_i32_2 = arith.constant 0 : i32
    return %c0_i32, %c0_i32_0, %c0_i32_1 : i32, i32, i32
  }
}

</mosaic_0001>

<bundles_post_ra>
// kernel: tpu_custom_call.1
= control target key start
LH: loop header
LB: loop body
LE: loop exit
PB: predicated region body
PF: predicated region fallthrough
CT: control target
= control target key end

     0   :  { %s3740_s0 = inlined_call_operand.vmem [shape: f32[256,200], index: 0, kind: input, shape index: {}]   ;;  %s3741_s1 = inlined_call_operand.vmem [shape: f32[200,128], index: 1, kind: input, shape index: {}]   ;;  %s3742_s2 = inlined_call_operand.vmem [shape: f32[1,128], index: 2, kind: input, shape index: {}]   ;;  %s3743_s3 = inlined_call_operand.vmem [shape: f32[8,32], index: 3, kind: input, shape index: {}]   ;;  %s3744_s4 = inlined_call_operand.vmem [shape: f32[128,32], index: 4, kind: input, shape index: {}]   ;;  %s3745_s5 = inlined_call_operand.vmem [shape: f32[32,192], index: 5, kind: input, shape index: {}]   ;;  %s3746_s6 = inlined_call_operand.vmem [shape: f32[1,64], index: 6, kind: input, shape index: {}]   ;;  %s3747_s7 = inlined_call_operand.vmem [shape: f32[2,8], index: 7, kind: input, shape index: {}]   ;;  %s3748_s8 = inlined_call_operand.vmem [shape: f32[64,16], index: 8, kind: input, shape index: {}]   ;;  %s3749_s9 = inlined_call_operand.hbm [shape: f32[8,2,16], index: 9, kind: output, shape index: {}]  }
   0x1   :  { %v112_v0 = vld [vmem:[%s3741_s1 + $0x78] sm:$0xff]  ;;  %v111_v1 = vld [vmem:[%s3741_s1 + $0x70] sm:$0xff]  ;;  %v110_v2 = vld [vmem:[%s3741_s1 + $0x68] sm:$0xff] }
   0x2   :  { %223 = vmatpush.msra.mxu0 %v112_v0  ;;  %v121_v3 = vld [vmem:[%s3741_s1 + $0xc0] sm:$0xff]  ;;  %v120_v4 = vld [vmem:[%s3741_s1 + $0xb8] sm:$0xff]  ;;  %v119_v6 = vld [vmem:[%s3741_s1 + $0xb0] sm:$0xff] }
   0x3   :  { %v109_v5 = vld [vmem:[%s3741_s1 + $0x60] sm:$0xff]  ;;  %343 = vmatpush.msra.mxu1 %v121_v3  ;;  %v108_v7 = vld [vmem:[%s3741_s1 + $0x58] sm:$0xff]  ;;  %v118_v8 = vld [vmem:[%s3741_s1 + $0xa8] sm:$0xff] }
   0x4   :  { %224 = vmatpush.msra.mxu0 %v111_v1  ;;  %v107_v9 = vld [vmem:[%s3741_s1 + $0x50] sm:$0xff]  ;;  %v106_v10 = vld [vmem:[%s3741_s1 + $0x48] sm:$0xff]  ;;  %v117_v11 = vld [vmem:[%s3741_s1 + $0xa0] sm:$0xff] }
   0x5   :  { %344 = vmatpush.msra.mxu1 %v120_v4 }
   0x6   :  { %225 = vmatpush.msra.mxu0 %v110_v2 }
   0x7   :  { %345 = vmatpush.msra.mxu1 %v119_v6 }
   0x8   :  { %226 = vmatpush.msra.mxu0 %v109_v5 }
   0x9   :  { %346 = vmatpush.msra.mxu1 %v118_v8 }
   0xa   :  { %227 = vmatpush.msra.mxu0 %v108_v7 }
   0xb   :  { %14 = vsyncpa [#allocation4], 0  ;;  %v116_v12 = vld [vmem:[%s3741_s1 + $0x98] sm:$0xff]  ;;  %v105_v13 = vld [vmem:[%s3741_s1 + $0x40] sm:$0xff]  ;;  %347 = vmatpush.msra.mxu1 %v117_v11  ;;  %vm126_vm0 = vcmask 588800   ;;  %vm555_vm5 = vcmask 261120  }
   0xc   :  { %228 = vmatpush.msra.mxu0 %v107_v9  ;;  %v115_v14 = vld [vmem:[%s3741_s1 + $0x90] sm:$0xff]  ;;  %v104_v15 = vld [vmem:[%s3741_s1 + $0x38] sm:$0xff]  ;;  %v114_v16 = vld [vmem:[%s3741_s1 + $0x88] sm:$0xff]  ;;  %s2307_s20 = smov 64   ;;  %s2063_s24 = sshll.u32 %s3749_s9, 4  ;;  %s2064_s24 = int_to_ptr.hbm [resolvable:$true] %s2063_s24 }
   0xd   :  { %348 = vmatpush.msra.mxu1 %v116_v12  ;;  %v103_v17 = vld [vmem:[%s3741_s1 + $0x30] sm:$0xff]  ;;  %v113_v18 = vld [vmem:[%s3741_s1 + $0x80] sm:$0xff]  ;;  %v102_v19 = vld [vmem:[%s3741_s1 + $0x28] sm:$0xff]  ;;  %s2309_s25 = smov 32   ;;  %s2310_s26 = smov 2  }
   0xe   :  { %229 = vmatpush.msra.mxu0 %v106_v10  ;;  %v34_v20 = vld [vmem:[%s3740_s0 + $0x8] sm:$0xff]  ;;  %v101_v21 = vld [vmem:[%s3741_s1 + $0x20] sm:$0xff]  ;;  %v100_v22 = vld [vmem:[%s3741_s1 + $0x18] sm:$0xff] }
   0xf   :  { %349 = vmatpush.msra.mxu1 %v115_v14  ;;  %v99_v23 = vld [vmem:[%s3741_s1 + $0x10] sm:$0xff]  ;;  %v98_v24 = vld [vmem:[%s3741_s1 + $0x8] sm:$0xff]  ;;  %v36_v25 = vld [vmem:[%s3740_s0 + $0x18] sm:$0xff] }
  0x10   :  { %230 = vmatpush.msra.mxu0 %v105_v13  ;;  %v97_v26 = vld [vmem:[%s3741_s1] sm:$0xff]  ;;  %v38_v28 = vld [vmem:[%s3740_s0 + $0x28] sm:$0xff]  ;;  %v35_v29 = vld [vmem:[%s3740_s0 + $0x10] sm:$0xff] }
  0x11   :  { %350 = vmatpush.msra.mxu1 %v114_v16  ;;  %v33_v27 = vld [vmem:[%s3740_s0] sm:$0xff]  ;;  %v40_v30 = vld [vmem:[%s3740_s0 + $0x38] sm:$0xff]  ;;  %v42_v32 = vld [vmem:[%s3740_s0 + $0x48] sm:$0xff] }
  0x12   :  { %231 = vmatpush.msra.mxu0 %v104_v15  ;;  %v37_v31 = vld [vmem:[%s3740_s0 + $0x20] sm:$0xff]  ;;  %v39_v33 = vld [vmem:[%s3740_s0 + $0x30] sm:$0xff]  ;;  %v44_v34 = vld [vmem:[%s3740_s0 + $0x58] sm:$0xff] }
  0x13   :  { %351 = vmatpush.msra.mxu1 %v113_v18  ;;  %v41_v35 = vld [vmem:[%s3740_s0 + $0x40] sm:$0xff]  ;;  %v46_v36 = vld [vmem:[%s3740_s0 + $0x68] sm:$0xff]  ;;  %v43_v37 = vld [vmem:[%s3740_s0 + $0x50] sm:$0xff] }
  0x14   :  { %232 = vmatpush.msra.mxu0 %v103_v17  ;;  %2075 = vmatmul.msk.f32.vlgmr.msra.gmra.mxu1 %vm126_vm0, %v34_v20  ;;  %v48_v38 = vld [vmem:[%s3740_s0 + $0x78] sm:$0xff]  ;;  %v45_v39 = vld [vmem:[%s3740_s0 + $0x60] sm:$0xff]  ;;  %v50_v40 = vld [vmem:[%s3740_s0 + $0x88] sm:$0xff] }
  0x15   :  { %v47_v41 = vld [vmem:[%s3740_s0 + $0x70] sm:$0xff]  ;;  %v52_v42 = vld [vmem:[%s3740_s0 + $0x98] sm:$0xff]  ;;  %v49_v43 = vld [vmem:[%s3740_s0 + $0x80] sm:$0xff] }
  0x16   :  { %233 = vmatpush.msra.mxu0 %v102_v19  ;;  %v54_v44 = vld [vmem:[%s3740_s0 + $0xa8] sm:$0xff]  ;;  %v51_v45 = vld [vmem:[%s3740_s0 + $0x90] sm:$0xff]  ;;  %v56_v46 = vld [vmem:[%s3740_s0 + $0xb8] sm:$0xff] }
  0x17   :  { %v53_v47 = vld [vmem:[%s3740_s0 + $0xa0] sm:$0xff]  ;;  %v58_v48 = vld [vmem:[%s3740_s0 + $0xc8] sm:$0xff]  ;;  %v55_v49 = vld [vmem:[%s3740_s0 + $0xb0] sm:$0xff] }
  0x18   :  { %234 = vmatpush.msra.mxu0 %v101_v21  ;;  %v60_v50 = vld [vmem:[%s3740_s0 + $0xd8] sm:$0xff]  ;;  %v57_v51 = vld [vmem:[%s3740_s0 + $0xc0] sm:$0xff]  ;;  %v62_v52 = vld [vmem:[%s3740_s0 + $0xe8] sm:$0xff] }
  0x19   :  { %v59_v53 = vld [vmem:[%s3740_s0 + $0xd0] sm:$0xff]  ;;  %v64_v54 = vld [vmem:[%s3740_s0 + $0xf8] sm:$0xff]  ;;  %v61_v55 = vld [vmem:[%s3740_s0 + $0xe0] sm:$0xff] }
  0x1a   :  { %235 = vmatpush.msra.mxu0 %v100_v22  ;;  %v66_v57 = vld [vmem:[%s3740_s0 + $0x108] sm:$0xff]  ;;  %v63_v58 = vld [vmem:[%s3740_s0 + $0xf0] sm:$0xff]  ;;  %v68_v60 = vld [vmem:[%s3740_s0 + $0x118] sm:$0xff] }
  0x1b   :  { %v65_v62 = vld [vmem:[%s3740_s0 + $0x100] sm:$0xff]  ;;  %v2564_v63 = vld [vmem:[%s3744_s4 + $0x78] sm:$0xff]  ;;  %v2571_v0 = vld [vmem:[%s3744_s4 + $0x70] sm:$0xff] }
  0x1c   :  { %236 = vmatpush.msra.mxu0 %v99_v23  ;;  %2076 = vmatmul.msk.f32.gmra.mxu1 %vm126_vm0, %v36_v25  ;;  %v2577_v1 = vld [vmem:[%s3744_s4 + $0x68] sm:$0xff]  ;;  %v2587_v3 = vld [vmem:[%s3744_s4 + $0x60] sm:$0xff]  ;;  %v67_v6 = vld [vmem:[%s3740_s0 + $0x110] sm:$0xff] }
  0x1d   :  { %579 = vmatpush.msra.mxu3 %v2564_v63  ;;  %v70_v2 = vld [vmem:[%s3740_s0 + $0x128] sm:$0xff]  ;;  %v2598_v7 = vld [vmem:[%s3744_s4 + $0x58] sm:$0xff]  ;;  %v2604_v8 = vld [vmem:[%s3742_s2] ss:$0 sm:$0xff] }
  0x1e   :  { %237 = vmatpush.msra.mxu0 %v98_v24  ;;  %v2610_v9 = vld [vmem:[%s3744_s4 + $0x50] sm:$0xff]  ;;  %v2617_v10 = vld [vmem:[%s3744_s4 + $0x48] sm:$0xff]  ;;  %v2622_v11 = vld [vmem:[%s3744_s4 + $0x40] sm:$0xff] }
  0x1f   :  { %580 = vmatpush.msra.mxu3 %v2571_v0  ;;  %v72_v13 = vld [vmem:[%s3740_s0 + $0x138] sm:$0xff]  ;;  %v69_v15 = vld [vmem:[%s3740_s0 + $0x120] sm:$0xff]  ;;  %v2646_v19 = vld [vmem:[%s3744_s4 + $0x30] sm:$0xff] }
  0x20   :  { %238 = vmatpush.msra.mxu0 %v97_v26  ;;  %v2639_v17 = vld [vmem:[%s3744_s4 + $0x38] sm:$0xff]  ;;  %v2653_v20 = vld [vmem:[%s3744_s4 + $0x28] sm:$0xff]  ;;  %v2658_v21 = vld [vmem:[%s3744_s4 + $0x20] sm:$0xff] }
  0x21   :  { %239 = vmatmul.f32.vlgmr.msra.gmra.mxu0 %v33_v27  ;;  %581 = vmatpush.msra.mxu3 %v2577_v1  ;;  %v74_v23 = vld [vmem:[%s3740_s0 + $0x148] sm:$0xff]  ;;  %v71_v26 = vld [vmem:[%s3740_s0 + $0x130] sm:$0xff]  ;;  %v2305_v27 = vmov 0.0  }
  0x22   :  { %1917 = vmatpush.msrb.mxu0 %v2564_v63 }
  0x23   :  { %582 = vmatpush.msra.mxu3 %v2587_v3 }
  0x24   :  { %2077 = vmatmul.msk.f32.gmra.mxu1 %vm126_vm0, %v38_v28  ;;  %1918 = vmatpush.msrb.mxu0 %v2571_v0 }
  0x25   :  { %583 = vmatpush.msra.mxu3 %v2598_v7 }
  0x26   :  { %1919 = vmatpush.msrb.mxu0 %v2577_v1 }
  0x27   :  { %584 = vmatpush.msra.mxu3 %v2610_v9 }
  0x28   :  { %1920 = vmatpush.msrb.mxu0 %v2587_v3 }
  0x29   :  { %242 = vmatmul.f32.gmra.mxu0 %v35_v29  ;;  %585 = vmatpush.msra.mxu3 %v2617_v10  ;;  %v2678_v29 = vld [vmem:[%s3744_s4 + $0x18] sm:$0xff] }
  0x2a   :  { %1921 = vmatpush.msrb.mxu0 %v2598_v7 }
  0x2b   :  { %586 = vmatpush.msra.mxu3 %v2622_v11 }
  0x2c   :  { %2078 = vmatmul.msk.f32.gmra.mxu1 %vm126_vm0, %v40_v30  ;;  %1922 = vmatpush.msrb.mxu0 %v2610_v9 }
  0x2d   :  { %587 = vmatpush.msra.mxu3 %v2639_v17 }
  0x2e   :  { %1923 = vmatpush.msrb.mxu0 %v2617_v10 }
  0x2f   :  { %588 = vmatpush.msra.mxu3 %v2646_v19 }
  0x30   :  { %1924 = vmatpush.msrb.mxu0 %v2622_v11 }
  0x31   :  { %245 = vmatmul.f32.gmra.mxu0 %v37_v31  ;;  %589 = vmatpush.msra.mxu3 %v2653_v20 }
  0x32   :  { %1925 = vmatpush.msrb.mxu0 %v2639_v17 }
  0x33   :  { %590 = vmatpush.msra.mxu3 %v2658_v21 }
  0x34   :  { %2079 = vmatmul.msk.f32.gmra.mxu1 %vm126_vm0, %v42_v32  ;;  %1926 = vmatpush.msrb.mxu0 %v2646_v19 }
  0x35   :  { %591 = vmatpush.msra.mxu3 %v2678_v29 }
  0x36   :  { %1927 = vmatpush.msrb.mxu0 %v2653_v20 }
  0x38   :  { %1928 = vmatpush.msrb.mxu0 %v2658_v21 }
  0x39   :  { %248 = vmatmul.f32.gmra.mxu0 %v39_v33  ;;  %v2687_v33 = vld [vmem:[%s3744_s4 + $0x10] sm:$0xff] }
  0x3a   :  { %1929 = vmatpush.msrb.mxu0 %v2678_v29  ;;  %592 = vmatpush.msra.mxu3 %v2687_v33 }
  0x3c   :  { %2080 = vmatmul.msk.f32.gmra.mxu1 %vm126_vm0, %v44_v34  ;;  %1930 = vmatpush.msrb.mxu0 %v2687_v33 }
  0x41   :  { %251 = vmatmul.f32.gmra.mxu0 %v41_v35 }
  0x44   :  { %2081 = vmatmul.msk.f32.gmra.mxu1 %vm126_vm0, %v46_v36 }
  0x49   :  { %254 = vmatmul.f32.gmra.mxu0 %v43_v37  ;;  %v2698_v37 = vld [vmem:[%s3744_s4 + $0x8] sm:$0xff] }
  0x4a   :  { %593 = vmatpush.msra.mxu3 %v2698_v37  ;;  %1931 = vmatpush.msrb.mxu0 %v2698_v37 }
  0x4c   :  { %2082 = vmatmul.msk.f32.gmra.mxu1 %vm126_vm0, %v48_v38  ;;  %v2703_v38 = vld [vmem:[%s3744_s4] sm:$0xff] }
  0x4d   :  { %594 = vmatpush.msra.mxu3 %v2703_v38  ;;  %1932 = vmatpush.msrb.mxu0 %v2703_v38 }
  0x51   :  { %257 = vmatmul.f32.gmra.mxu0 %v45_v39  ;;  %v76_v39 = vld [vmem:[%s3740_s0 + $0x158] sm:$0xff] }
  0x54   :  { %2083 = vmatmul.msk.f32.gmra.mxu1 %vm126_vm0, %v50_v40  ;;  %v2306_v40 = vmov 1.0  }
  0x59   :  { %260 = vmatmul.f32.gmra.mxu0 %v47_v41 }
  0x5c   :  { %2084 = vmatmul.msk.f32.gmra.mxu1 %vm126_vm0, %v52_v42 }
  0x61   :  { %263 = vmatmul.f32.gmra.mxu0 %v49_v43 }
  0x64   :  { %2085 = vmatmul.msk.f32.gmra.mxu1 %vm126_vm0, %v54_v44  ;;  %v73_v44 = vld [vmem:[%s3740_s0 + $0x140] sm:$0xff] }
  0x69   :  { %266 = vmatmul.f32.gmra.mxu0 %v51_v45 }
  0x6c   :  { %2086 = vmatmul.msk.f32.gmra.mxu1 %vm126_vm0, %v56_v46  ;;  %v2733_v46 = vld [vmem:[%s3743_s3] sm:$0xff] }
  0x71   :  { %269 = vmatmul.f32.gmra.mxu0 %v53_v47 }
  0x74   :  { %2087 = vmatmul.msk.f32.gmra.mxu1 %vm126_vm0, %v58_v48 }
  0x79   :  { %272 = vmatmul.f32.gmra.mxu0 %v55_v49 }
  0x7c   :  { %2088 = vmatmul.msk.f32.gmra.mxu1 %vm126_vm0, %v60_v50 }
  0x81   :  { %275 = vmatmul.f32.gmra.mxu0 %v57_v51  ;;  %v78_v51 = vld [vmem:[%s3740_s0 + $0x168] sm:$0xff] }
  0x84   :  { %2089 = vmatmul.msk.f32.gmra.mxu1 %vm126_vm0, %v62_v52 }
  0x89   :  { %278 = vmatmul.f32.gmra.mxu0 %v59_v53 }
  0x8c   :  { %2090 = vmatmul.msk.f32.gmra.mxu1 %vm126_vm0, %v64_v54 }
  0x91   :  { %281 = vmatmul.f32.gmra.mxu0 %v61_v55  ;;  %v353_v56 = vpop.f32.mrf.mxu1 }
  0x94   :  { %2091 = vmatmul.msk.f32.gmra.mxu1 %vm126_vm0, %v66_v57 }
  0x99   :  { %284 = vmatmul.f32.gmra.mxu0 %v63_v58  ;;  %v2552_v59 = vpop.f32.mrf.mxu1 }
  0x9c   :  { %2092 = vmatmul.msk.f32.gmra.mxu1 %vm126_vm0, %v68_v60 }
  0x9e   :  { %v240_v61 = vpop.f32.mrf.mxu0 }
  0x9f   :  { %v241_v12 = vadd.f32 %v2604_v8, %v240_v61 }
  0xa1   :  { %287 = vmatmul.f32.gmra.mxu0 %v65_v62  ;;  %v359_v4 = vpop.f32.mrf.mxu1  ;;  %v354_v18 = vadd.f32 %v353_v56, %v241_v12  ;;  %v75_v56 = vld [vmem:[%s3740_s0 + $0x150] sm:$0xff] }
  0xa3   :  { %vm543_vm1 = vcmp.gt.f32.partialorder %v354_v18, 0.5 }
  0xa4   :  { %2093 = vmatmul.msk.f32.gmra.mxu1 %vm126_vm0, %v70_v2  ;;  %v2107_v28 = vsel %vm543_vm1, 1.0, %v2305_v27 }
  0xa5   :  { %v717_v36 = vsub.f32 1.0, %v2107_v28 }
  0xa6   :  { %v243_v5 = vpop.f32.mrf.mxu0 }
  0xa7   :  { %v244_v22 = vadd.f32 %v2604_v8, %v243_v5  ;;  %v721_v41 = vmul.f32 0.2, %v717_v36 }
  0xa9   :  { %290 = vmatmul.f32.gmra.mxu0 %v67_v6  ;;  %v362_v16 = vpop.f32.mrf.mxu1  ;;  %v357_v30 = vadd.f32 %v2552_v59, %v244_v22  ;;  %v725_v49 = vmul.f32 %v721_v41, %v354_v18 }
  0xab   :  { %vm544_vm3 = vcmp.gt.f32.partialorder %v357_v30, 0.5 }
  0xac   :  { %2094 = vmatmul.msk.f32.gmra.mxu1 %vm126_vm0, %v72_v13  ;;  %v2108_v43 = vsel %vm544_vm3, 1.0, %v2305_v27 }
  0xad   :  { %v718_v48 = vsub.f32 1.0, %v2108_v43 }
  0xae   :  { %v246_v14 = vpop.f32.mrf.mxu0 }
  0xaf   :  { %v247_v24 = vadd.f32 %v2604_v8, %v246_v14  ;;  %v722_v53 = vmul.f32 0.2, %v718_v48 }
  0xb1   :  { %293 = vmatmul.f32.gmra.mxu0 %v69_v15  ;;  %v365_v32 = vpop.f32.mrf.mxu1  ;;  %v2690_v34 = vadd.f32 %v359_v4, %v247_v24  ;;  %v726_v61 = vmul.f32 %v722_v53, %v357_v30  ;;  %v80_v4 = vld [vmem:[%s3740_s0 + $0x178] sm:$0xff] }
  0xb3   :  { %vm545_vm4 = vcmp.gt.f32.partialorder %v2690_v34, 0.5 }
  0xb4   :  { %2095 = vmatmul.msk.f32.gmra.mxu1 %vm126_vm0, %v74_v23  ;;  %v2109_v54 = vsel %vm545_vm4, 1.0, %v2305_v27 }
  0xb5   :  { %v719_v60 = vsub.f32 1.0, %v2109_v54  ;;  %v81_v54 = vld [vmem:[%s3740_s0 + $0x180] sm:$0xff] }
  0xb6   :  { %v249_v25 = vpop.f32.mrf.mxu0 }
  0xb7   :  { %v250_v31 = vadd.f32 %v2604_v8, %v249_v25  ;;  %v723_v13 = vmul.f32 0.2, %v719_v60  ;;  %v85_v60 = vld [vmem:[%s3740_s0 + $0x1a0] sm:$0xff] }
  0xb9   :  { %v2692_v35 = vadd.f32 %v362_v16, %v250_v31  ;;  %296 = vmatmul.f32.gmra.mxu0 %v71_v26  ;;  %v368_v50 = vpop.f32.mrf.mxu1  ;;  %v77_v16 = vld [vmem:[%s3740_s0 + $0x160] sm:$0xff]  ;;  %v727_v25 = vmul.f32 %v723_v13, %v2690_v34 }
  0xba   :  { %v93_v13 = vld [vmem:[%s3740_s0 + $0x1e0] sm:$0xff] }
  0xbb   :  { %vm546_vm2 = vcmp.gt.f32.partialorder %v2692_v35, 0.5 }
  0xbc   :  { %2111 = vmatpush.msk.msra.mxu2 %vm546_vm2, %v2306_v40  ;;  %2096 = vmatmul.msk.f32.gmra.mxu1 %vm126_vm0, %v76_v39  ;;  %v2110_v14 = vsel %vm546_vm2, 1.0, %v2305_v27 }
  0xbd   :  { %v720_v24 = vsub.f32 1.0, %v2110_v14  ;;  %v95_v14 = vld [vmem:[%s3740_s0 + $0x1f0] sm:$0xff] }
  0xbe   :  { %v252_v42 = vpop.f32.mrf.mxu0  ;;  %2112 = vmatpush.msk.msra.mxu2 %vm545_vm4, %v2306_v40 }
  0xbf   :  { %v253_v45 = vadd.f32 %v2604_v8, %v252_v42  ;;  %v724_v36 = vmul.f32 0.2, %v720_v24  ;;  %v79_v42 = vld [vmem:[%s3740_s0 + $0x170] sm:$0xff] }
  0xc0   :  { %2113 = vmatpush.msk.msra.mxu2 %vm544_vm3, %v2306_v40 }
  0xc1   :  { %v366_v47 = vadd.f32 %v365_v32, %v253_v45  ;;  %299 = vmatmul.f32.gmra.mxu0 %v73_v44  ;;  %v371_v12 = vpop.f32.mrf.mxu1  ;;  %v82_v32 = vld [vmem:[%s3740_s0 + $0x188] sm:$0xff]  ;;  %v728_v45 = vmul.f32 %v724_v36, %v2692_v35 }
  0xc2   :  { %2114 = vmatpush.msk.msra.mxu2 %vm543_vm1, %v2306_v40 }
  0xc3   :  { %2115 = vmatmul.msk.f32.vlgmr.msra.gmra.mxu2 %vm555_vm5, %v2733_v46  ;;  %v2742_v52 = vadd.f32 %v725_v49, %v366_v47 }
  0xc4   :  { %2097 = vmatmul.msk.f32.gmra.mxu1 %vm126_vm0, %v78_v51  ;;  %v84_v51 = vld [vmem:[%s3740_s0 + $0x198] sm:$0xff] }
  0xc5   :  { %vm733_vm6 = vcmp.gt.f32.partialorder %v2742_v52, 0.5 }
  0xc6   :  { %v255_v55 = vpop.f32.mrf.mxu0  ;;  %v2124_v57 = vsel %vm733_vm6, 1.0, %v2305_v27 }
  0xc7   :  { %v256_v58 = vadd.f32 %v2604_v8, %v255_v55  ;;  %v909_v59 = vsub.f32 1.0, %v2124_v57 }
  0xc9   :  { %v369_v62 = vadd.f32 %v368_v50, %v256_v58  ;;  %302 = vmatmul.f32.gmra.mxu0 %v75_v56  ;;  %v913_v2 = vmul.f32 0.2, %v909_v59  ;;  %v374_v41 = vpop.f32.mrf.mxu1  ;;  %v86_v56 = vld [vmem:[%s3740_s0 + $0x1a8] sm:$0xff]  ;;  %v83_v58 = vld [vmem:[%s3740_s0 + $0x190] sm:$0xff]  ;;  %v88_v59 = vld [vmem:[%s3740_s0 + $0x1b8] sm:$0xff] }
  0xcb   :  { %v730_v5 = vadd.f32 %v726_v61, %v369_v62  ;;  %v2760_v6 = vmul.f32 %v913_v2, %v2742_v52  ;;  %v90_v52 = vld [vmem:[%s3740_s0 + $0x1c8] sm:$0xff]  ;;  %v87_v61 = vld [vmem:[%s3740_s0 + $0x1b0] sm:$0xff]  ;;  %v92_v62 = vld [vmem:[%s3740_s0 + $0x1d8] sm:$0xff] }
  0xcc   :  { %2098 = vmatmul.msk.f32.gmra.mxu1 %vm126_vm0, %v80_v4  ;;  %v89_v2 = vld [vmem:[%s3740_s0 + $0x1c0] sm:$0xff]  ;;  %v94_v4 = vld [vmem:[%s3740_s0 + $0x1e8] sm:$0xff] }
  0xcd   :  { %vm734_vm7 = vcmp.gt.f32.partialorder %v730_v5, 0.5 }
  0xce   :  { %v258_v15 = vpop.f32.mrf.mxu0  ;;  %v2125_v18 = vsel %vm734_vm7, 1.0, %v2305_v27 }
  0xcf   :  { %v259_v22 = vadd.f32 %v2604_v8, %v258_v15  ;;  %v910_v23 = vsub.f32 1.0, %v2125_v18 }
  0xd1   :  { %v372_v26 = vadd.f32 %v371_v12, %v259_v22  ;;  %305 = vmatmul.f32.gmra.mxu0 %v77_v16  ;;  %v914_v28 = vmul.f32 0.2, %v910_v23  ;;  %v96_v12 = vld [vmem:[%s3740_s0 + $0x1f8] sm:$0xff]  ;;  %v377_v16 = vpop.f32.mrf.mxu1 }
  0xd3   :  { %v731_v30 = vadd.f32 %v727_v25, %v372_v26  ;;  %v2773_v31 = vmul.f32 %v914_v28, %v730_v5  ;;  %v91_v5 = vld [vmem:[%s3740_s0 + $0x1d0] sm:$0xff] }
  0xd4   :  { %2099 = vmatmul.msk.f32.gmra.mxu1 %vm126_vm0, %v82_v32 }
  0xd5   :  { %vm735_vm8 = vcmp.gt.f32.partialorder %v731_v30, 0.5 }
  0xd6   :  { %v261_v39 = vpop.f32.mrf.mxu0  ;;  %v2126_v34 = vsel %vm735_vm8, 1.0, %v2305_v27 }
  0xd7   :  { %v262_v43 = vadd.f32 %v2604_v8, %v261_v39  ;;  %v911_v44 = vsub.f32 1.0, %v2126_v34 }
  0xd9   :  { %v375_v47 = vadd.f32 %v374_v41, %v262_v43  ;;  %308 = vmatmul.f32.gmra.mxu0 %v79_v42  ;;  %v915_v48 = vmul.f32 0.2, %v911_v44  ;;  %v380_v23 = vpop.f32.mrf.mxu1 }
  0xdb   :  { %v732_v49 = vadd.f32 %v728_v45, %v375_v47  ;;  %v2786_v50 = vmul.f32 %v915_v48, %v731_v30 }
  0xdc   :  { %2100 = vmatmul.msk.f32.gmra.mxu1 %vm126_vm0, %v84_v51  ;;  %v2925_v51 = vld [vmem:[%s3745_s5 + $0x38] sm:$0xff] }
  0xdd   :  { %vm736_vm9 = vcmp.gt.f32.partialorder %v732_v49, 0.5 }
  0xde   :  { %v2127_v53 = vsel %vm736_vm9, 1.0, %v2305_v27  ;;  %2128 = vmatpush.msk.msrb.mxu3 %vm736_vm9, %v2306_v40  ;;  %v264_v15 = vpop.f32.mrf.mxu0 }
  0xdf   :  { %v912_v35 = vsub.f32 1.0, %v2127_v53  ;;  %v265_v41 = vadd.f32 %v2604_v8, %v264_v15  ;;  %v2931_v53 = vld [vmem:[%s3745_s5 + $0x28] sm:$0xff] }
  0xe0   :  { %2129 = vmatpush.msk.msrb.mxu3 %vm735_vm8, %v2306_v40 }
  0xe1   :  { %v916_v55 = vmul.f32 0.2, %v912_v35  ;;  %311 = vmatmul.f32.gmra.mxu0 %v81_v54  ;;  %v383_v25 = vpop.f32.mrf.mxu1  ;;  %v378_v44 = vadd.f32 %v377_v16, %v265_v41  ;;  %v2937_v54 = vld [vmem:[%s3745_s5 + $0x18] sm:$0xff]  ;;  %v2943_v35 = vld [vmem:[%s3745_s5 + $0x8] sm:$0xff] }
  0xe2   :  { %2130 = vmatpush.msk.msrb.mxu3 %vm734_vm7, %v2306_v40 }
  0xe3   :  { %v920_v57 = vmul.f32 %v916_v55, %v732_v49  ;;  %v2885_v48 = vadd.f32 %v2760_v6, %v378_v44  ;;  %v2901_v6 = vld [vmem:[%s3745_s5 + $0x30] sm:$0xff] }
  0xe4   :  { %2131 = vmatpush.msk.msrb.mxu3 %vm733_vm6, %v2306_v40  ;;  %2101 = vmatmul.msk.f32.gmra.mxu1 %vm126_vm0, %v86_v56  ;;  %v2913_v49 = vld [vmem:[%s3745_s5 + $0x10] sm:$0xff] }
  0xe5   :  { %vm925_vm13 = vcmp.gt.f32.partialorder %v2885_v48, 0.5  ;;  %617 = vmatpush.msrb.mxu2 %v2901_v6 }
  0xe6   :  { %v267_v18 = vpop.f32.mrf.mxu0 }
  0xe7   :  { %v268_v36 = vadd.f32 %v2604_v8, %v267_v18 }
  0xe9   :  { %314 = vmatmul.f32.gmra.mxu0 %v83_v58  ;;  %v386_v30 = vpop.f32.mrf.mxu1  ;;  %v381_v34 = vadd.f32 %v380_v23, %v268_v36  ;;  %v2141_v23 = vsel %vm925_vm13, 1.0, %v2305_v27 }
  0xeb   :  { %v2876_v47 = vadd.f32 %v2773_v31, %v381_v34  ;;  %v2906_v31 = vld [vmem:[%s3745_s5 + $0x20] sm:$0xff] }
  0xec   :  { %2102 = vmatmul.msk.f32.gmra.mxu1 %vm126_vm0, %v88_v59  ;;  %618 = vmatpush.msrb.mxu2 %v2906_v31 }
  0xed   :  { %vm926_vm12 = vcmp.gt.f32.partialorder %v2876_v47, 0.5 }
  0xee   :  { %v270_v24 = vpop.f32.mrf.mxu0  ;;  %619 = vmatpush.msrb.mxu2 %v2913_v49  ;;  %v2142_v16 = vsel %vm926_vm12, 1.0, %v2305_v27 }
  0xef   :  { %v271_v32 = vadd.f32 %v2604_v8, %v270_v24 }
  0xf1   :  { %317 = vmatmul.f32.gmra.mxu0 %v85_v60  ;;  %v384_v42 = vadd.f32 %v383_v25, %v271_v32  ;;  %v389_v56 = vpop.f32.mrf.mxu1 }
  0xf3   :  { %v2872_v45 = vadd.f32 %v2786_v50, %v384_v42  ;;  %v2919_v50 = vld [vmem:[%s3745_s5] sm:$0xff] }
  0xf4   :  { %2103 = vmatmul.msk.f32.gmra.mxu1 %vm126_vm0, %v90_v52  ;;  %620 = vmatpush.msrb.mxu2 %v2919_v50 }
  0xf5   :  { %vm927_vm11 = vcmp.gt.f32.partialorder %v2872_v45, 0.5 }
  0xf6   :  { %v273_v26 = vpop.f32.mrf.mxu0  ;;  %637 = vmatpush.msra.mxu2 %v2925_v51 }
  0xf7   :  { %v274_v28 = vadd.f32 %v2604_v8, %v273_v26  ;;  %v1102_v26 = vsub.f32 1.0, %v2142_v16 }
  0xf8   :  { %638 = vmatpush.msra.mxu2 %v2931_v53 }
  0xf9   :  { %320 = vmatmul.f32.gmra.mxu0 %v87_v61  ;;  %v387_v39 = vadd.f32 %v386_v30, %v274_v28  ;;  %v1101_v30 = vsub.f32 1.0, %v2141_v23  ;;  %v1106_v42 = vmul.f32 0.2, %v1102_v26 }
  0xfa   :  { %639 = vmatpush.msra.mxu2 %v2937_v54 }
  0xfb   :  { %v2868_v43 = vadd.f32 %v920_v57, %v387_v39 }
  0xfc   :  { %2104 = vmatmul.msk.f32.gmra.mxu1 %vm126_vm0, %v92_v62  ;;  %640 = vmatpush.msra.mxu2 %v2943_v35 }
  0xfd   :  { %vm928_vm10 = vcmp.gt.f32.partialorder %v2868_v43, 0.5 }
  0xfe   :  { %v276_v55 = vpop.f32.mrf.mxu0 }
  0xff   :  { %v277_v41 = vadd.f32 %v2604_v8, %v276_v55 }
 0x101   :  { %323 = vmatmul.f32.gmra.mxu0 %v89_v2  ;;  %v392_v2 = vpop.f32.mrf.mxu1 }
 0x104   :  { %2105 = vmatmul.msk.f32.gmra.mxu1 %vm126_vm0, %v94_v4 }
 0x106   :  { %v279_v60 = vpop.f32.mrf.mxu0 }
 0x107   :  { %v280_v32 = vadd.f32 %v2604_v8, %v279_v60  ;;  %v390_v60 = vadd.f32 %v389_v56, %v277_v41 }
 0x109   :  { %326 = vmatmul.f32.gmra.mxu0 %v91_v5  ;;  %v395_v5 = vpop.f32.mrf.mxu1 }
 0x10c   :  { %2106 = vmatmul.msk.f32.gmra.mxu1 %vm126_vm0, %v96_v12  ;;  %v2144_v12 = vsel %vm928_vm10, 1.0, %v2305_v27 }
 0x10d   :  { %v1104_v15 = vsub.f32 1.0, %v2144_v12 }
 0x10e   :  { %v282_v4 = vpop.f32.mrf.mxu0 }
 0x10f   :  { %v1108_v25 = vmul.f32 0.2, %v1104_v15  ;;  %v283_v28 = vadd.f32 %v2604_v8, %v282_v4 }
 0x111   :  { %329 = vmatmul.f32.gmra.mxu0 %v93_v13  ;;  %v2143_v13 = vsel %vm927_vm11, 1.0, %v2305_v27  ;;  %v398_v24 = vpop.f32.mrf.mxu1  ;;  %v396_v34 = vadd.f32 %v395_v5, %v283_v28  ;;  %v1112_v44 = vmul.f32 %v1108_v25, %v2868_v43 }
 0x112   :  { %v1103_v18 = vsub.f32 1.0, %v2143_v13 }
 0x114   :  { %v1107_v36 = vmul.f32 0.2, %v1103_v18 }
 0x119   :  { %332 = vmatmul.f32.gmra.mxu0 %v95_v14  ;;  %v285_v14 = vpop.f32.mrf.mxu0  ;;  %v401_v56 = vpop.f32.mrf.mxu1 }
 0x146   :  { %v576_v22 = vpop.f32.mrf.mxu2 }
 0x147   :  { %595 = vmatmul.f32.vlgmr.msra.gmra.mxu3 %v576_v22  ;;  %v286_v22 = vadd.f32 %v2604_v8, %v285_v14  ;;  %v404_v14 = vpop.f32.mrf.mxu1 }
 0x148   :  { %765 = vmatpush.msra.mxu3 %v2564_v63 }
 0x149   :  { %v399_v39 = vadd.f32 %v398_v24, %v286_v22 }
 0x14a   :  { %766 = vmatpush.msra.mxu3 %v2571_v0 }
 0x14c   :  { %767 = vmatpush.msra.mxu3 %v2577_v1 }
 0x14e   :  { %768 = vmatpush.msra.mxu3 %v2587_v3 }
 0x14f   :  { %2132 = vmatmul.msk.f32.vlgmr.msrb.gmra.mxu3 %vm555_vm5, %v2733_v46 }
 0x150   :  { %769 = vmatpush.msra.mxu3 %v2598_v7 }
 0x152   :  { %770 = vmatpush.msra.mxu3 %v2610_v9 }
 0x154   :  { %771 = vmatpush.msra.mxu3 %v2617_v10 }
 0x156   :  { %772 = vmatpush.msra.mxu3 %v2622_v11 }
 0x158   :  { %773 = vmatpush.msra.mxu3 %v2639_v17 }
 0x15a   :  { %774 = vmatpush.msra.mxu3 %v2646_v19 }
 0x15c   :  { %775 = vmatpush.msra.mxu3 %v2653_v20 }
 0x15e   :  { %776 = vmatpush.msra.mxu3 %v2658_v21 }
 0x160   :  { %777 = vmatpush.msra.mxu3 %v2678_v29 }
 0x162   :  { %778 = vmatpush.msra.mxu3 %v2687_v33 }
 0x164   :  { %779 = vmatpush.msra.mxu3 %v2698_v37 }
 0x166   :  { %780 = vmatpush.msra.mxu3 %v2703_v38 }
 0x168   :  { %2145 = vmatpush.msk.msrb.mxu3 %vm928_vm10, %v2306_v40  ;;  %vm660_vm10 = vcmask 64512  }
 0x16a   :  { %2146 = vmatpush.msk.msrb.mxu3 %vm927_vm11, %v2306_v40 }
 0x16c   :  { %2147 = vmatpush.msk.msrb.mxu3 %vm926_vm12, %v2306_v40 }
 0x16e   :  { %2148 = vmatpush.msk.msrb.mxu3 %vm925_vm13, %v2306_v40 }
 0x1ca   :  { %v596_v57 = vpop.f32.mrf.mxu3 }
 0x1cb   :  { %vm599_vm14 = vcmp.gt.f32.partialorder %v596_v57, 0.5 }
 0x1cc   :  { %v2116_v58 = vsel %vm599_vm14, 1.0, %v2305_v27 }
 0x1cd   :  { %v785_v59 = vsub.f32 1.0, %v2116_v58  ;;  %2117 = vmatmul.msk.f32.vlgmr.msrb.gmra.mxu2 %vm555_vm5, %v2116_v58 }
 0x1cf   :  { %v786_v52 = vmul.f32 0.2, %v785_v59  ;;  %v1111_v59 = vmul.f32 %v1107_v36, %v2872_v45 }
 0x1d1   :  { %v2948_v61 = vmul.f32 %v786_v52, %v596_v57  ;;  %v1105_v57 = vmul.f32 0.2, %v1101_v30  ;;  %v2984_v52 = vadd.f32 %v1112_v44, %v399_v39  ;;  %v2988_v4 = vadd.f32 %v1111_v59, %v396_v34 }
 0x1d2   :  { %v762_v62 = vpop.f32.mrf.mxu3 }
 0x1d3   :  { %781 = vmatmul.f32.vlgmr.msra.gmra.mxu3 %v762_v62  ;;  %v1110_v62 = vmul.f32 %v1106_v42, %v2876_v47  ;;  %v1109_v55 = vmul.f32 %v1105_v57, %v2885_v48  ;;  %vm1120_vm15 = vcmp.gt.f32.partialorder %v2984_v52, 0.5  ;;  %vm1119_vm0 = vcmp.gt.f32.partialorder %v2988_v4, 0.5  ;;  %v288_v48 = vpop.f32.mrf.mxu0 }
 0x1d4   :  { %957 = vmatpush.msra.mxu3 %v2564_v63  ;;  %v2161_v16 = vsel %vm1120_vm15, 1.0, %v2305_v27  ;;  %v2160_v18 = vsel %vm1119_vm0, 1.0, %v2305_v27 }
 0x1d5   :  { %2118 = vmatmul.msk.f32.vlgmr.msra.gmra.mxu2 %vm555_vm5, %v2116_v58  ;;  %v393_v58 = vadd.f32 %v392_v2, %v280_v32  ;;  %v2999_v45 = vadd.f32 %v1109_v55, %v390_v60  ;;  %v1296_v23 = vsub.f32 1.0, %v2161_v16  ;;  %v1295_v25 = vsub.f32 1.0, %v2160_v18 }
 0x1d6   :  { %958 = vmatpush.msra.mxu3 %v2571_v0 }
 0x1d7   :  { %v2992_v43 = vadd.f32 %v1110_v62, %v393_v58  ;;  %vm1117_vm2 = vcmp.gt.f32.partialorder %v2999_v45, 0.5  ;;  %v1300_v36 = vmul.f32 0.2, %v1296_v23  ;;  %v1299_v42 = vmul.f32 0.2, %v1295_v25 }
 0x1d8   :  { %959 = vmatpush.msra.mxu3 %v2577_v1  ;;  %v2158_v28 = vsel %vm1117_vm2, 1.0, %v2305_v27  ;;  %v289_v58 = vadd.f32 %v2604_v8, %v288_v48 }
 0x1d9   :  { %vm1118_vm1 = vcmp.gt.f32.partialorder %v2992_v43, 0.5  ;;  %v1293_v41 = vsub.f32 1.0, %v2158_v28  ;;  %v1304_v60 = vmul.f32 %v1300_v36, %v2984_v52 }
 0x1da   :  { %960 = vmatpush.msra.mxu3 %v2587_v3  ;;  %v2159_v24 = vsel %vm1118_vm1, 1.0, %v2305_v27 }
 0x1db   :  { %2149 = vmatmul.msk.f32.vlgmr.msrb.gmra.mxu3 %vm555_vm5, %v2733_v46  ;;  %v291_v12 = vpop.f32.mrf.mxu0  ;;  %v1294_v32 = vsub.f32 1.0, %v2159_v24  ;;  %v1297_v62 = vmul.f32 0.2, %v1293_v41 }
 0x1dc   :  { %961 = vmatpush.msra.mxu3 %v2598_v7  ;;  %v292_v34 = vadd.f32 %v2604_v8, %v291_v12  ;;  %v402_v12 = vadd.f32 %v401_v56, %v289_v58  ;;  %v3085_v56 = vld [vmem:[%s3746_s6] ss:$0 sm:$0xff] }
 0x1dd   :  { %v1298_v57 = vmul.f32 0.2, %v1294_v32  ;;  %v1301_v48 = vmul.f32 %v1297_v62, %v2999_v45 }
 0x1de   :  { %962 = vmatpush.msra.mxu3 %v2610_v9  ;;  %v405_v55 = vadd.f32 %v404_v14, %v292_v34 }
 0x1e0   :  { %963 = vmatpush.msra.mxu3 %v2617_v10 }
 0x1e2   :  { %964 = vmatpush.msra.mxu3 %v2622_v11 }
 0x1e3   :  { %v294_v15 = vpop.f32.mrf.mxu0 }
 0x1e4   :  { %965 = vmatpush.msra.mxu3 %v2639_v17  ;;  %v295_v39 = vadd.f32 %v2604_v8, %v294_v15  ;;  %v1302_v15 = vmul.f32 %v1298_v57, %v2992_v43  ;;  %v519_v43 = vlaneseq }
 0x1e6   :  { %966 = vmatpush.msra.mxu3 %v2646_v19  ;;  %v3061_v52 = vadd.f32 %v1302_v15, %v405_v55  ;;  %v520_v45 = vshrl.u32 %v519_v43, 7 }
 0x1e8   :  { %967 = vmatpush.msra.mxu3 %v2653_v20  ;;  %vm1310_vm6 = vcmp.gt.f32.partialorder %v3061_v52, 0.5  ;;  %v525_v14 = vand.u32 3, %v520_v45  ;;  %v3130_v45 = vld [vmem:[%s3748_s8 + $0x38] sm:$0xff] }
 0x1e9   :  { %1844 = vmatpush.msrb.mxu1 %v3130_v45 }
 0x1ea   :  { %968 = vmatpush.msra.mxu3 %v2658_v21  ;;  %vm3087_vm8 = vcmp.ne.s32.totalorder %v525_v14, 0  ;;  %vm3093_vm9 = vcmp.ne.s32.totalorder %v525_v14, 3 }
 0x1eb   :  { %v297_v22 = vpop.f32.mrf.mxu0 }
 0x1ec   :  { %969 = vmatpush.msra.mxu3 %v2678_v29  ;;  %v298_v26 = vadd.f32 %v2604_v8, %v297_v22 }
 0x1ee   :  { %970 = vmatpush.msra.mxu3 %v2687_v33 }
 0x1f0   :  { %971 = vmatpush.msra.mxu3 %v2698_v37 }
 0x1f2   :  { %972 = vmatpush.msra.mxu3 %v2703_v38 }
 0x1f3   :  { %v3117_v58 = vpop.f32.mrf.mxu0 }
 0x1f4   :  { %2162 = vmatpush.msk.msrb.mxu3 %vm1120_vm15, %v2306_v40 }
 0x1f6   :  { %2163 = vmatpush.msk.msrb.mxu3 %vm1119_vm0, %v2306_v40 }
 0x1f8   :  { %2164 = vmatpush.msk.msrb.mxu3 %vm1118_vm1, %v2306_v40  ;;  %vm684_vm1 = vcmask 523264  }
 0x1fa   :  { %2165 = vmatpush.msk.msrb.mxu3 %vm1117_vm2, %v2306_v40 }
 0x250   :  { %v3013_v47 = vpop.f32.mrf.mxu2 }
 0x251   :  { %647 = vrot.lane.b32.xlu0 %v3013_v47, %s2307_s20  ;;  %v645_v25 = vadd.f32 %v3085_v56, %v3013_v47 }
 0x256   :  { %v782_v2 = vpop.f32.mrf.mxu3 }
 0x257   :  { %v3018_v5 = vadd.f32 %v2948_v61, %v782_v2  ;;  %v407_v61 = vpop.f32.mrf.mxu1  ;;  %v1303_v2 = vmul.f32 %v1299_v42, %v2988_v4  ;;  %v3068_v4 = vadd.f32 %v1301_v48, %v402_v12  ;;  %v303_v12 = vpop.f32.mrf.mxu0 }
 0x258   :  { %v408_v59 = vadd.f32 %v407_v61, %v295_v39  ;;  %v642_v61 = vpop.f32.mrf.mxu2  ;;  %v3104_v39 = vld [vmem:[%s3747_s7] sm:$0x3] }
 0x259   :  { %vm1309_vm7 = vcmp.gt.f32.partialorder %v3068_v4, 0.5  ;;  %v653_v23 = vrot.slane %v642_v61, 1  ;;  %vm789_vm12 = vcmp.gt.f32.partialorder %v3018_v5, 0.5  ;;  %v3182_v61 = vld [vmem:[%s3748_s8 + $0x8] sm:$0xff] }
 0x25a   :  { %v3057_v16 = vadd.f32 %v1303_v2, %v408_v59 }
 0x25b   :  { %v654_v32 = vsel %vm3093_vm9, %v653_v23, 0.0 }
 0x25c   :  { %vm1311_vm4 = vcmp.gt.f32.partialorder %v3057_v16, 0.5 }
 0x25e   :  { %v954_v13 = vpop.f32.mrf.mxu3 }
 0x25f   :  { %973 = vmatmul.f32.vlgmr.msra.gmra.mxu3 %v954_v13  ;;  %v410_v30 = vpop.f32.mrf.mxu1  ;;  %v306_v43 = vpop.f32.mrf.mxu0 }
 0x260   :  { %1149 = vmatpush.msra.mxu3 %v2564_v63  ;;  %v411_v44 = vadd.f32 %v410_v30, %v298_v26 }
 0x262   :  { %1150 = vmatpush.msra.mxu3 %v2571_v0  ;;  %v3053_v13 = vadd.f32 %v1304_v60, %v411_v44  ;;  %v3114_v44 = vsel %vm789_vm12, 1.0, %v2305_v27 }
 0x263   :  { %v977_v57 = vsub.f32 1.0, %v3114_v44 }
 0x264   :  { %1151 = vmatpush.msra.mxu3 %v2577_v1  ;;  %vm1312_vm3 = vcmp.gt.f32.partialorder %v3053_v13, 0.5 }
 0x265   :  { %v978_v59 = vmul.f32 0.2, %v977_v57  ;;  %v301_v57 = vadd.f32 %v2604_v8, %v3117_v58 }
 0x266   :  { %1152 = vmatpush.msra.mxu3 %v2587_v3 }
 0x267   :  { %2166 = vmatmul.msk.f32.vlgmr.msrb.gmra.mxu3 %vm555_vm5, %v2733_v46  ;;  %v3119_v60 = vpop.f32.mrf.mxu1  ;;  %v979_v62 = vmul.f32 %v978_v59, %v3018_v5  ;;  %v3135_v5 = vld [vmem:[%s3748_s8 + $0x30] sm:$0xff]  ;;  %v309_v14 = vpop.f32.mrf.mxu0 }
 0x268   :  { %1153 = vmatpush.msra.mxu3 %v2598_v7  ;;  %1845 = vmatpush.msrb.mxu1 %v3135_v5 }
 0x26a   :  { %1154 = vmatpush.msra.mxu3 %v2610_v9 }
 0x26c   :  { %1155 = vmatpush.msra.mxu3 %v2617_v10 }
 0x26e   :  { %1156 = vmatpush.msra.mxu3 %v2622_v11 }
 0x26f   :  { %v416_v48 = vpop.f32.mrf.mxu1 }
 0x270   :  { %1157 = vmatpush.msra.mxu3 %v2639_v17 }
 0x272   :  { %1158 = vmatpush.msra.mxu3 %v2646_v19 }
 0x274   :  { %1159 = vmatpush.msra.mxu3 %v2653_v20 }
 0x276   :  { %1160 = vmatpush.msra.mxu3 %v2658_v21 }
 0x278   :  { %1161 = vmatpush.msra.mxu3 %v2678_v29 }
 0x27a   :  { %1162 = vmatpush.msra.mxu3 %v2687_v33 }
 0x27c   :  { %1163 = vmatpush.msra.mxu3 %v2698_v37 }
 0x27e   :  { %1164 = vmatpush.msra.mxu3 %v2703_v38 }
 0x280   :  { %2179 = vmatpush.msk.msrb.mxu3 %vm1312_vm3, %v2306_v40 }
 0x282   :  { %2180 = vmatpush.msk.msrb.mxu3 %vm1311_vm4, %v2306_v40 }
 0x284   :  { %2181 = vmatpush.msk.msrb.mxu3 %vm1310_vm6, %v2306_v40 }
 0x286   :  { %2182 = vmatpush.msk.msrb.mxu3 %vm1309_vm7, %v2306_v40 }
 0x2c3   :  { %v648_v22 = vpop.permute.xlu0 %647 }
 0x2c4   :  { %v650_v24 = vrot.slane %v648_v22, 7 }
 0x2c6   :  { %v651_v28 = vsel %vm3087_vm8, %v650_v24, 0.0  ;;  %v310_v24 = vadd.f32 %v2604_v8, %v309_v14 }
 0x2c7   :  { %v652_v30 = vadd.f32 %v651_v28, %v645_v25  ;;  %v2175_v25 = vsel %vm1309_vm7, 1.0, %v2305_v27 }
 0x2c9   :  { %v655_v36 = vadd.f32 %v654_v32, %v652_v30  ;;  %v307_v32 = vadd.f32 %v2604_v8, %v306_v43 }
 0x2cb   :  { %vm657_vm11 = vcmp.gt.f32.partialorder %v655_v36, 0.5 }
 0x2cc   :  { %v2119_v47 = vsel %vm657_vm11, 1.0, %v2305_v27  ;;  %2120 = vmatpush.msk.msrb.mxu2 %vm657_vm11, %v2306_v40  ;;  %vm711_vm11 = vcmask 123904  }
 0x2cd   :  { %v846_v41 = vsub.f32 1.0, %v2119_v47  ;;  %2121 = vmatmul.msk.f32.vlgmr.msrb.gmra.mxu2 %vm660_vm10, %v3104_v39 }
 0x2ce   :  { %696 = vmatpush.msra.mxu2 %v3130_v45 }
 0x2cf   :  { %v847_v42 = vmul.f32 0.2, %v846_v41  ;;  %v304_v41 = vadd.f32 %v2604_v8, %v303_v12  ;;  %v414_v12 = vadd.f32 %v3119_v60, %v301_v57 }
 0x2d0   :  { %697 = vmatpush.msra.mxu2 %v3135_v5 }
 0x2d1   :  { %v3110_v34 = vmul.f32 %v847_v42, %v655_v36  ;;  %v1485_v36 = vsub.f32 1.0, %v2175_v25  ;;  %v3300_v25 = vld [vmem:[%s3744_s4 + $0x58] sm:$0xff] }
 0x2e2   :  { %v974_v55 = vpop.f32.mrf.mxu3 }
 0x2e3   :  { %v3122_v2 = vadd.f32 %v979_v62, %v974_v55  ;;  %v1489_v55 = vmul.f32 0.2, %v1485_v36 }
 0x2e5   :  { %v1493_v8 = vmul.f32 %v1489_v55, %v3068_v4  ;;  %vm981_vm2 = vcmp.gt.f32.partialorder %v3122_v2, 0.5  ;;  %v3345_v55 = vld [vmem:[%s3744_s4 + $0x30] sm:$0xff] }
 0x2ea   :  { %v1146_v15 = vpop.f32.mrf.mxu3 }
 0x2eb   :  { %1165 = vmatmul.f32.vlgmr.msra.gmra.mxu3 %v1146_v15  ;;  %v417_v15 = vadd.f32 %v416_v48, %v304_v41 }
 0x2ec   :  { %1341 = vmatpush.msra.mxu3 %v2564_v63  ;;  %v3144_v63 = vld [vmem:[%s3748_s8 + $0x28] sm:$0xff] }
 0x2ed   :  { %698 = vmatpush.msra.mxu2 %v3144_v63  ;;  %1846 = vmatpush.msrb.mxu1 %v3144_v63 }
 0x2ee   :  { %1342 = vmatpush.msra.mxu3 %v2571_v0  ;;  %v419_v0 = vpop.f32.mrf.mxu1 }
 0x2ef   :  { %v420_v59 = vadd.f32 %v419_v0, %v307_v32  ;;  %v3321_v32 = vld [vmem:[%s3744_s4 + $0x40] sm:$0xff] }
 0x2f0   :  { %1343 = vmatpush.msra.mxu3 %v2577_v1  ;;  %v3152_v1 = vld [vmem:[%s3748_s8 + $0x20] sm:$0xff] }
 0x2f1   :  { %699 = vmatpush.msra.mxu2 %v3152_v1  ;;  %1847 = vmatpush.msrb.mxu1 %v3152_v1 }
 0x2f2   :  { %1344 = vmatpush.msra.mxu3 %v2587_v3  ;;  %v3160_v3 = vld [vmem:[%s3748_s8 + $0x18] sm:$0xff] }
 0x2f3   :  { %2183 = vmatmul.msk.f32.vlgmr.msrb.gmra.mxu3 %vm555_vm5, %v2733_v46  ;;  %700 = vmatpush.msra.mxu2 %v3160_v3 }
 0x2f4   :  { %1345 = vmatpush.msra.mxu3 %v2598_v7  ;;  %v2178_v7 = vsel %vm1312_vm3, 1.0, %v2305_v27  ;;  %1848 = vmatpush.msrb.mxu1 %v3160_v3 }
 0x2f5   :  { %v1488_v22 = vsub.f32 1.0, %v2178_v7 }
 0x2f6   :  { %1346 = vmatpush.msra.mxu3 %v2610_v9  ;;  %v3171_v9 = vld [vmem:[%s3748_s8 + $0x10] sm:$0xff] }
 0x2f7   :  { %701 = vmatpush.msra.mxu2 %v3171_v9  ;;  %1849 = vmatpush.msrb.mxu1 %v3171_v9  ;;  %v1492_v30 = vmul.f32 0.2, %v1488_v22 }
 0x2f8   :  { %1347 = vmatpush.msra.mxu3 %v2617_v10  ;;  %v2177_v10 = vsel %vm1311_vm4, 1.0, %v2305_v27 }
 0x2f9   :  { %v1487_v23 = vsub.f32 1.0, %v2177_v10  ;;  %702 = vmatpush.msra.mxu2 %v3182_v61  ;;  %1850 = vmatpush.msrb.mxu1 %v3182_v61  ;;  %v1496_v62 = vmul.f32 %v1492_v30, %v3053_v13  ;;  %v3312_v30 = vld [vmem:[%s3744_s4 + $0x48] sm:$0xff] }
 0x2fa   :  { %1348 = vmatpush.msra.mxu3 %v2622_v11  ;;  %v2176_v11 = vsel %vm1310_vm6, 1.0, %v2305_v27 }
 0x2fb   :  { %v1486_v28 = vsub.f32 1.0, %v2176_v11  ;;  %v1491_v47 = vmul.f32 0.2, %v1487_v23  ;;  %v3280_v11 = vld [vmem:[%s3744_s4 + $0x70] sm:$0xff] }
 0x2fc   :  { %1349 = vmatpush.msra.mxu3 %v2639_v17  ;;  %v422_v17 = vpop.f32.mrf.mxu1 }
 0x2fd   :  { %v1490_v42 = vmul.f32 0.2, %v1486_v28  ;;  %v3306_v28 = vld [vmem:[%s3744_s4 + $0x50] sm:$0xff] }
 0x2fe   :  { %1350 = vmatpush.msra.mxu3 %v2646_v19  ;;  %v423_v19 = vadd.f32 %v422_v17, %v310_v24  ;;  %v3292_v24 = vld [vmem:[%s3744_s4 + $0x60] sm:$0xff] }
 0x300   :  { %1351 = vmatpush.msra.mxu3 %v2653_v20  ;;  %v1495_v20 = vmul.f32 %v1491_v47, %v3057_v16  ;;  %v3207_v43 = vadd.f32 %v1496_v62, %v423_v19  ;;  %v3330_v19 = vld [vmem:[%s3744_s4 + $0x38] sm:$0xff] }
 0x302   :  { %1352 = vmatpush.msra.mxu3 %v2658_v21  ;;  %v1494_v21 = vmul.f32 %v1490_v42, %v3061_v52  ;;  %v3212_v7 = vadd.f32 %v1495_v20, %v420_v59  ;;  %vm1504_vm13 = vcmp.gt.f32.partialorder %v3207_v43, 0.5  ;;  %v312_v52 = vpop.f32.mrf.mxu0  ;;  %v3339_v59 = vld [vmem:[%s3742_s2] ss:$0 sm:$0xff] }
 0x304   :  { %1353 = vmatpush.msra.mxu3 %v2678_v29  ;;  %v3216_v13 = vadd.f32 %v1494_v21, %v417_v15  ;;  %v3223_v29 = vadd.f32 %v1493_v8, %v414_v12  ;;  %vm1503_vm14 = vcmp.gt.f32.partialorder %v3212_v7, 0.5  ;;  %v3266_v58 = vpop.f32.mrf.mxu1 }
 0x305   :  { %v2194_v36 = vsel %vm1503_vm14, 1.0, %v2305_v27 }
 0x306   :  { %1354 = vmatpush.msra.mxu3 %v2687_v33  ;;  %vm1502_vm15 = vcmp.gt.f32.partialorder %v3216_v13, 0.5  ;;  %vm1501_vm0 = vcmp.gt.f32.partialorder %v3223_v29, 0.5  ;;  %v3240_v33 = vld [vmem:[%s3748_s8] sm:$0xff]  ;;  %v1679_v57 = vsub.f32 1.0, %v2194_v36 }
 0x307   :  { %703 = vmatpush.msra.mxu2 %v3240_v33  ;;  %1851 = vmatpush.msrb.mxu1 %v3240_v33  ;;  %v2193_v42 = vsel %vm1502_vm15, 1.0, %v2305_v27  ;;  %v2192_v15 = vsel %vm1501_vm0, 1.0, %v2305_v27 }
 0x308   :  { %1355 = vmatpush.msra.mxu3 %v2698_v37  ;;  %v1678_v12 = vsub.f32 1.0, %v2193_v42 }
 0x309   :  { %807 = vmatpush.msrb.mxu2 %v2901_v6  ;;  %1959 = vmatpush.msra.mxu1 %v2901_v6 }
 0x30a   :  { %1356 = vmatpush.msra.mxu3 %v2703_v38  ;;  %v3263_v38 = vsel %vm981_vm2, 1.0, %v2305_v27  ;;  %v315_v10 = vpop.f32.mrf.mxu0 }
 0x30b   :  { %808 = vmatpush.msrb.mxu2 %v2906_v31  ;;  %1960 = vmatpush.msra.mxu1 %v2906_v31  ;;  %v1169_v16 = vsub.f32 1.0, %v3263_v38 }
 0x30c   :  { %2196 = vmatpush.msk.msrb.mxu3 %vm1504_vm13, %v2306_v40  ;;  %v428_v22 = vpop.f32.mrf.mxu1 }
 0x30d   :  { %809 = vmatpush.msrb.mxu2 %v2913_v49  ;;  %1961 = vmatpush.msra.mxu1 %v2913_v49  ;;  %v1170_v4 = vmul.f32 0.2, %v1169_v16  ;;  %v1677_v16 = vsub.f32 1.0, %v2192_v15  ;;  %v2265_v15 = vld [vmem:[%s3744_s4 + $0x10] sm:$0xff] }
 0x30e   :  { %2197 = vmatpush.msk.msrb.mxu3 %vm1503_vm14, %v2306_v40 }
 0x30f   :  { %810 = vmatpush.msrb.mxu2 %v2919_v50  ;;  %1962 = vmatpush.msra.mxu1 %v2919_v50  ;;  %v1171_v60 = vmul.f32 %v1170_v4, %v3122_v2  ;;  %v3286_v2 = vld [vmem:[%s3744_s4 + $0x68] sm:$0xff]  ;;  %v1683_v4 = vmul.f32 0.2, %v1679_v57  ;;  %v1681_v42 = vmul.f32 0.2, %v1677_v16 }
 0x310   :  { %2198 = vmatpush.msk.msrb.mxu3 %vm1502_vm15, %v2306_v40 }
 0x312   :  { %2199 = vmatpush.msk.msrb.mxu3 %vm1501_vm0, %v2306_v40  ;;  %v318_v23 = vpop.f32.mrf.mxu0 }
 0x313   :  { %v319_v8 = vadd.f32 %v3339_v59, %v318_v23  ;;  %v313_v23 = vadd.f32 %v3339_v59, %v312_v52 }
 0x314   :  { %v431_v17 = vpop.f32.mrf.mxu1 }
 0x315   :  { %v432_v36 = vadd.f32 %v431_v17, %v319_v8  ;;  %v426_v52 = vadd.f32 %v3266_v58, %v313_v23 }
 0x31a   :  { %v321_v47 = vpop.f32.mrf.mxu0 }
 0x31b   :  { %v322_v62 = vadd.f32 %v3339_v59, %v321_v47 }
 0x31c   :  { %v434_v20 = vpop.f32.mrf.mxu1 }
 0x350   :  { %v681_v37 = vpop.f32.mrf.mxu2 }
 0x351   :  { %2122 = vmatmul.msk.f32.vlgmr.msra.gmra.mxu2 %vm684_vm1, %v681_v37  ;;  %v3355_v37 = vld [vmem:[%s3744_s4 + $0x28] sm:$0xff] }
 0x352   :  { %827 = vmatpush.msra.mxu2 %v2925_v51 }
 0x354   :  { %828 = vmatpush.msra.mxu2 %v2931_v53 }
 0x356   :  { %829 = vmatpush.msra.mxu2 %v2937_v54 }
 0x358   :  { %830 = vmatpush.msra.mxu2 %v2943_v35 }
 0x359   :  { %2134 = vmatmul.msk.f32.vlgmr.msrb.gmra.mxu2 %vm555_vm5, %v3114_v44 }
 0x361   :  { %2135 = vmatmul.msk.f32.vlgmr.msra.gmra.mxu2 %vm555_vm5, %v3114_v44  ;;  %v3274_v44 = vld [vmem:[%s3744_s4 + $0x78] sm:$0xff] }
 0x36e   :  { %v1166_v48 = vpop.f32.mrf.mxu3 }
 0x36f   :  { %v3269_v0 = vadd.f32 %v1171_v60, %v1166_v48  ;;  %v316_v60 = vadd.f32 %v3339_v59, %v315_v10  ;;  %v435_v48 = vadd.f32 %v434_v20, %v322_v62  ;;  %v1687_v10 = vmul.f32 %v1683_v4, %v3212_v7  ;;  %v2266_v20 = vld [vmem:[%s3744_s4 + $0x8] sm:$0xff] }
 0x370   :  { %v1685_v7 = vmul.f32 %v1681_v42, %v3223_v29 }
 0x371   :  { %v429_v57 = vadd.f32 %v428_v22, %v316_v60  ;;  %v3375_v17 = vadd.f32 %v1687_v10, %v432_v36  ;;  %v3426_v36 = vld [vmem:[%s3743_s3] sm:$0xff] }
 0x373   :  { %vm1695_vm4 = vcmp.gt.f32.partialorder %v3375_v17, 0.5 }
 0x376   :  { %v1338_v14 = vpop.f32.mrf.mxu3 }
 0x377   :  { %1357 = vmatmul.f32.vlgmr.msra.gmra.mxu3 %v1338_v14  ;;  %v2263_v14 = vld [vmem:[%s3744_s4 + $0x20] sm:$0xff] }
 0x378   :  { %1533 = vmatpush.msra.mxu3 %v3274_v44 }
 0x37a   :  { %1534 = vmatpush.msra.mxu3 %v3280_v11 }
 0x37c   :  { %1535 = vmatpush.msra.mxu3 %v3286_v2 }
 0x37e   :  { %1536 = vmatpush.msra.mxu3 %v3292_v24 }
 0x37f   :  { %2200 = vmatmul.msk.f32.vlgmr.msrb.gmra.mxu3 %vm555_vm5, %v2733_v46  ;;  %v2195_v46 = vsel %vm1504_vm13, 1.0, %v2305_v27  ;;  %vm1173_vm13 = vcmp.gt.f32.partialorder %v3269_v0, 0.5 }
 0x380   :  { %1537 = vmatpush.msra.mxu3 %v3300_v25  ;;  %v1680_v41 = vsub.f32 1.0, %v2195_v46  ;;  %v1682_v46 = vmul.f32 0.2, %v1678_v12  ;;  %v2267_v12 = vld [vmem:[%s3744_s4] sm:$0xff]  ;;  %v3415_v8 = vsel %vm1173_vm13, 1.0, %v2305_v27 }
 0x381   :  { %v1361_v16 = vsub.f32 1.0, %v3415_v8 }
 0x382   :  { %1538 = vmatpush.msra.mxu3 %v3306_v28  ;;  %v1684_v21 = vmul.f32 0.2, %v1680_v41  ;;  %v2264_v41 = vld [vmem:[%s3744_s4 + $0x18] sm:$0xff] }
 0x383   :  { %v1362_v4 = vmul.f32 0.2, %v1361_v16 }
 0x384   :  { %1539 = vmatpush.msra.mxu3 %v3312_v30  ;;  %v1688_v47 = vmul.f32 %v1684_v21, %v3207_v43  ;;  %v1686_v43 = vmul.f32 %v1682_v46, %v3216_v13  ;;  %v3390_v13 = vadd.f32 %v1685_v7, %v426_v52 }
 0x385   :  { %v1363_v60 = vmul.f32 %v1362_v4, %v3269_v0 }
 0x386   :  { %1540 = vmatpush.msra.mxu3 %v3321_v32  ;;  %v3368_v62 = vadd.f32 %v1688_v47, %v435_v48  ;;  %v3381_v22 = vadd.f32 %v1686_v43, %v429_v57  ;;  %vm1693_vm7 = vcmp.gt.f32.partialorder %v3390_v13, 0.5 }
 0x388   :  { %1541 = vmatpush.msra.mxu3 %v3330_v19  ;;  %vm1696_vm3 = vcmp.gt.f32.partialorder %v3368_v62, 0.5  ;;  %vm1694_vm6 = vcmp.gt.f32.partialorder %v3381_v22, 0.5 }
 0x38a   :  { %1542 = vmatpush.msra.mxu3 %v3345_v55 }
 0x38c   :  { %1543 = vmatpush.msra.mxu3 %v3355_v37 }
 0x38e   :  { %1544 = vmatpush.msra.mxu3 %v2263_v14 }
 0x390   :  { %1545 = vmatpush.msra.mxu3 %v2264_v41 }
 0x392   :  { %1546 = vmatpush.msra.mxu3 %v2265_v15 }
 0x394   :  { %1547 = vmatpush.msra.mxu3 %v2266_v20 }
 0x396   :  { %1548 = vmatpush.msra.mxu3 %v2267_v12 }
 0x398   :  { %2213 = vmatpush.msk.msrb.mxu3 %vm1696_vm3, %v2306_v40 }
 0x39a   :  { %2214 = vmatpush.msk.msrb.mxu3 %vm1695_vm4, %v2306_v40 }
 0x39c   :  { %2215 = vmatpush.msk.msrb.mxu3 %vm1694_vm6, %v2306_v40 }
 0x39e   :  { %2216 = vmatpush.msk.msrb.mxu3 %vm1693_vm7, %v2306_v40 }
 0x3d4   :  { %v3404_v29 = vpop.f32.mrf.mxu2 }
 0x3d5   :  { %vm708_vm12 = vcmp.gt.f32.partialorder %v3404_v29, 0.5 }
 0x3d6   :  { %v3408_v58 = vsel %vm708_vm12, 1.0, %v2305_v27 }
 0x3d7   :  { %712 = vst.msk [vmem:[#allocation3] sm:$0x3] %vm711_vm11, %v3408_v58 }
 0x3dc   :  { %v812_v21 = vpop.f32.mrf.mxu2 }
 0x3dd   :  { %837 = vrot.lane.b32.xlu0 %v812_v21, %s2307_s20 }
 0x3e4   :  { %v832_v0 = vpop.f32.mrf.mxu2 }
 0x3fa   :  { %v1358_v48 = vpop.f32.mrf.mxu3 }
 0x3fb   :  { %v1364_v46 = vadd.f32 %v1363_v60, %v1358_v48 }
 0x3fd   :  { %vm1365_vm15 = vcmp.gt.f32.partialorder %v1364_v46, 0.5 }
 0x402   :  { %v1530_v23 = vpop.f32.mrf.mxu3 }
 0x403   :  { %1549 = vmatmul.f32.vlgmr.msra.gmra.mxu3 %v1530_v23 }
 0x404   :  { %1725 = vmatpush.msra.mxu3 %v3274_v44 }
 0x406   :  { %1726 = vmatpush.msra.mxu3 %v3280_v11  ;;  %v843_v11 = vrot.slane %v832_v0, 1 }
 0x408   :  { %1727 = vmatpush.msra.mxu3 %v3286_v2 }
 0x40a   :  { %1728 = vmatpush.msra.mxu3 %v3292_v24  ;;  %v835_v24 = vadd.f32 %v3085_v56, %v812_v21 }
 0x40b   :  { %2217 = vmatmul.msk.f32.vlgmr.msrb.gmra.mxu3 %vm555_vm5, %v3426_v36 }
 0x40c   :  { %1729 = vmatpush.msra.mxu3 %v3300_v25 }
 0x40e   :  { %1730 = vmatpush.msra.mxu3 %v3306_v28 }
 0x410   :  { %1731 = vmatpush.msra.mxu3 %v3312_v30  ;;  %v844_v30 = vsel %vm3093_vm9, %v843_v11, 0.0 }
 0x412   :  { %1732 = vmatpush.msra.mxu3 %v3321_v32 }
 0x414   :  { %1733 = vmatpush.msra.mxu3 %v3330_v19 }
 0x416   :  { %1734 = vmatpush.msra.mxu3 %v3345_v55 }
 0x418   :  { %1735 = vmatpush.msra.mxu3 %v3355_v37 }
 0x41a   :  { %1736 = vmatpush.msra.mxu3 %v2263_v14 }
 0x41c   :  { %1737 = vmatpush.msra.mxu3 %v2264_v41 }
 0x41e   :  { %1738 = vmatpush.msra.mxu3 %v2265_v15 }
 0x420   :  { %1739 = vmatpush.msra.mxu3 %v2266_v20  ;;  %v896_v20 = vsub.f32 1.0, %v3408_v58 }
 0x422   :  { %1740 = vmatpush.msra.mxu3 %v2267_v12  ;;  %v897_v7 = vmul.f32 0.2, %v896_v20 }
 0x424   :  { %2036 = vmatpush.msrb.mxu3 %v3130_v45  ;;  %v898_v12 = vmul.f32 %v897_v7, %v3404_v29 }
 0x426   :  { %2037 = vmatpush.msrb.mxu3 %v3135_v5 }
 0x428   :  { %2038 = vmatpush.msrb.mxu3 %v3144_v63 }
 0x42a   :  { %2039 = vmatpush.msrb.mxu3 %v3152_v1 }
 0x42c   :  { %2040 = vmatpush.msrb.mxu3 %v3160_v3 }
 0x42e   :  { %2041 = vmatpush.msrb.mxu3 %v3171_v9 }
 0x430   :  { %2042 = vmatpush.msrb.mxu3 %v3182_v61 }
 0x432   :  { %2043 = vmatpush.msrb.mxu3 %v3240_v33 }
 0x44f   :  { %v838_v44 = vpop.permute.xlu0 %837 }
 0x450   :  { %v840_v2 = vrot.slane %v838_v44, 7 }
 0x452   :  { %v841_v25 = vsel %vm3087_vm8, %v840_v2, 0.0 }
 0x453   :  { %v842_v28 = vadd.f32 %v841_v25, %v835_v24 }
 0x455   :  { %v845_v32 = vadd.f32 %v844_v30, %v842_v28 }
 0x457   :  { %v849_v19 = vadd.f32 %v3110_v34, %v845_v32  ;;  %v3468_v34 = vsel %vm1365_vm15, 1.0, %v2305_v27 }
 0x458   :  { %v1553_v41 = vsub.f32 1.0, %v3468_v34 }
 0x459   :  { %vm850_vm14 = vcmp.gt.f32.partialorder %v849_v19, 0.5 }
 0x45a   :  { %v2136_v55 = vsel %vm850_vm14, 1.0, %v2305_v27  ;;  %2137 = vmatpush.msk.msrb.mxu2 %vm850_vm14, %v2306_v40  ;;  %v1554_v42 = vmul.f32 0.2, %v1553_v41 }
 0x45b   :  { %v1038_v37 = vsub.f32 1.0, %v2136_v55  ;;  %2138 = vmatmul.msk.f32.vlgmr.msrb.gmra.mxu2 %vm660_vm10, %v3104_v39 }
 0x45c   :  { %884 = vmatpush.msra.mxu2 %v3130_v45  ;;  %v1555_v57 = vmul.f32 %v1554_v42, %v1364_v46 }
 0x45d   :  { %v1039_v14 = vmul.f32 0.2, %v1038_v37 }
 0x45e   :  { %885 = vmatpush.msra.mxu2 %v3135_v5 }
 0x45f   :  { %v1040_v47 = vmul.f32 %v1039_v14, %v849_v19 }
 0x460   :  { %886 = vmatpush.msra.mxu2 %v3144_v63 }
 0x462   :  { %887 = vmatpush.msra.mxu2 %v3152_v1 }
 0x464   :  { %888 = vmatpush.msra.mxu2 %v3160_v3 }
 0x466   :  { %889 = vmatpush.msra.mxu2 %v3171_v9 }
 0x468   :  { %890 = vmatpush.msra.mxu2 %v3182_v61 }
 0x46a   :  { %891 = vmatpush.msra.mxu2 %v3240_v33 }
 0x46c   :  { %999 = vmatpush.msrb.mxu2 %v2901_v6 }
 0x46e   :  { %1000 = vmatpush.msrb.mxu2 %v2906_v31 }
 0x470   :  { %1001 = vmatpush.msrb.mxu2 %v2913_v49 }
 0x472   :  { %1002 = vmatpush.msrb.mxu2 %v2919_v50 }
 0x486   :  { %v1550_v10 = vpop.f32.mrf.mxu3 }
 0x487   :  { %v3471_v15 = vadd.f32 %v1555_v57, %v1550_v10 }
 0x48e   :  { %v1722_v52 = vpop.f32.mrf.mxu3 }
 0x48f   :  { %1741 = vmatmul.f32.vlgmr.msra.gmra.mxu3 %v1722_v52 }
 0x4de   :  { %v870_v43 = vpop.f32.mrf.mxu2 }
 0x4df   :  { %2139 = vmatmul.msk.f32.vlgmr.msra.gmra.mxu2 %vm684_vm1, %v870_v43 }
 0x4e0   :  { %1019 = vmatpush.msra.mxu2 %v2925_v51 }
 0x4e2   :  { %1020 = vmatpush.msra.mxu2 %v2931_v53 }
 0x4e4   :  { %1021 = vmatpush.msra.mxu2 %v2937_v54 }
 0x4e6   :  { %1022 = vmatpush.msra.mxu2 %v2943_v35 }
 0x4e7   :  { %2151 = vmatmul.msk.f32.vlgmr.msrb.gmra.mxu2 %vm555_vm5, %v3263_v38 }
 0x4ef   :  { %2152 = vmatmul.msk.f32.vlgmr.msra.gmra.mxu2 %vm555_vm5, %v3263_v38 }
 0x562   :  { %v893_v21 = vpop.f32.mrf.mxu2 }
 0x563   :  { %v899_v16 = vadd.f32 %v898_v12, %v893_v21 }
 0x565   :  { %vm900_vm0 = vcmp.gt.f32.partialorder %v899_v16, 0.5 }
 0x566   :  { %v2140_v4 = vsel %vm900_vm0, 1.0, %v2305_v27  ;;  %vm1557_vm0 = vcmp.gt.f32.partialorder %v3471_v15, 0.5 }
 0x567   :  { %904 = vst.msk [vmem:[#allocation3 + $0x2] sm:$0x3] %vm711_vm11, %v2140_v4  ;;  %v1088_v60 = vsub.f32 1.0, %v2140_v4  ;;  %v3546_v4 = vld [vmem:[%s3745_s5 + $0x20] sm:$0xff] }
 0x569   :  { %v1089_v48 = vmul.f32 0.2, %v1088_v60  ;;  %v3552_v60 = vld [vmem:[%s3745_s5 + $0x10] sm:$0xff] }
 0x56a   :  { %v1004_v46 = vpop.f32.mrf.mxu2 }
 0x56b   :  { %1029 = vrot.lane.b32.xlu1 %v1004_v46, %s2307_s20  ;;  %v1090_v23 = vmul.f32 %v1089_v48, %v899_v16  ;;  %v1027_v11 = vadd.f32 %v3085_v56, %v1004_v46  ;;  %v3540_v16 = vld [vmem:[%s3745_s5 + $0x30] sm:$0xff]  ;;  %v3558_v48 = vld [vmem:[%s3745_s5] sm:$0xff] }
 0x572   :  { %v1024_v0 = vpop.f32.mrf.mxu2 }
 0x573   :  { %v1035_v44 = vrot.slane %v1024_v0, 1  ;;  %v3571_v0 = vld [vmem:[%s3745_s5 + $0x28] sm:$0xff] }
 0x575   :  { %v1036_v24 = vsel %vm3093_vm9, %v1035_v44, 0.0  ;;  %v3583_v44 = vld [vmem:[%s3745_s5 + $0x8] sm:$0xff] }
 0x5dd   :  { %v1030_v38 = vpop.permute.xlu1 %1029 }
 0x5de   :  { %v1032_v58 = vrot.slane %v1030_v38, 7  ;;  %v3577_v38 = vld [vmem:[%s3745_s5 + $0x18] sm:$0xff] }
 0x5e0   :  { %v1033_v29 = vsel %vm3087_vm8, %v1032_v58, 0.0 }
 0x5e1   :  { %v1034_v2 = vadd.f32 %v1033_v29, %v1027_v11 }
 0x5e3   :  { %v1037_v25 = vadd.f32 %v1036_v24, %v1034_v2 }
 0x5e5   :  { %v1041_v28 = vadd.f32 %v1040_v47, %v1037_v25 }
 0x5e7   :  { %vm1042_vm2 = vcmp.gt.f32.partialorder %v1041_v28, 0.5 }
 0x5e8   :  { %v2153_v30 = vsel %vm1042_vm2, 1.0, %v2305_v27  ;;  %2154 = vmatpush.msk.msrb.mxu2 %vm1042_vm2, %v2306_v40 }
 0x5e9   :  { %v1230_v32 = vsub.f32 1.0, %v2153_v30  ;;  %2155 = vmatmul.msk.f32.vlgmr.msrb.gmra.mxu2 %vm660_vm10, %v3104_v39 }
 0x5ea   :  { %1076 = vmatpush.msra.mxu2 %v3130_v45 }
 0x5eb   :  { %v1231_v19 = vmul.f32 0.2, %v1230_v32 }
 0x5ec   :  { %1077 = vmatpush.msra.mxu2 %v3135_v5 }
 0x5ed   :  { %v1232_v55 = vmul.f32 %v1231_v19, %v1041_v28 }
 0x5ee   :  { %1078 = vmatpush.msra.mxu2 %v3144_v63 }
 0x5f0   :  { %1079 = vmatpush.msra.mxu2 %v3152_v1 }
 0x5f2   :  { %1080 = vmatpush.msra.mxu2 %v3160_v3 }
 0x5f4   :  { %1081 = vmatpush.msra.mxu2 %v3171_v9 }
 0x5f6   :  { %1082 = vmatpush.msra.mxu2 %v3182_v61 }
 0x5f8   :  { %1083 = vmatpush.msra.mxu2 %v3240_v33 }
 0x5fa   :  { %1191 = vmatpush.msrb.mxu2 %v2901_v6 }
 0x5fc   :  { %1192 = vmatpush.msrb.mxu2 %v2906_v31 }
 0x5fe   :  { %1193 = vmatpush.msrb.mxu2 %v2913_v49 }
 0x600   :  { %1194 = vmatpush.msrb.mxu2 %v2919_v50 }
 0x66c   :  { %v1062_v37 = vpop.f32.mrf.mxu2 }
 0x66d   :  { %2156 = vmatmul.msk.f32.vlgmr.msra.gmra.mxu2 %vm684_vm1, %v1062_v37 }
 0x66e   :  { %1211 = vmatpush.msra.mxu2 %v2925_v51 }
 0x670   :  { %1212 = vmatpush.msra.mxu2 %v2931_v53 }
 0x672   :  { %1213 = vmatpush.msra.mxu2 %v2937_v54 }
 0x674   :  { %1214 = vmatpush.msra.mxu2 %v2943_v35 }
 0x675   :  { %2168 = vmatmul.msk.f32.vlgmr.msrb.gmra.mxu2 %vm555_vm5, %v3415_v8 }
 0x67d   :  { %2169 = vmatmul.msk.f32.vlgmr.msra.gmra.mxu2 %vm555_vm5, %v3415_v8 }
 0x6f0   :  { %v1085_v6 = vpop.f32.mrf.mxu2 }
 0x6f1   :  { %v1091_v31 = vadd.f32 %v1090_v23, %v1085_v6  ;;  %v3565_v23 = vld [vmem:[%s3745_s5 + $0x38] sm:$0xff] }
 0x6f3   :  { %vm1092_vm12 = vcmp.gt.f32.partialorder %v1091_v31, 0.5 }
 0x6f4   :  { %v2157_v49 = vsel %vm1092_vm12, 1.0, %v2305_v27 }
 0x6f5   :  { %1096 = vst.msk [vmem:[#allocation3 + $0x4] sm:$0x3] %vm711_vm11, %v2157_v49  ;;  %v1280_v50 = vsub.f32 1.0, %v2157_v49 }
 0x6f7   :  { %v1281_v51 = vmul.f32 0.2, %v1280_v50 }
 0x6f8   :  { %v1196_v53 = vpop.f32.mrf.mxu2 }
 0x6f9   :  { %1221 = vrot.lane.b32.xlu1 %v1196_v53, %s2307_s20  ;;  %v1282_v54 = vmul.f32 %v1281_v51, %v1091_v31  ;;  %v1219_v42 = vadd.f32 %v3085_v56, %v1196_v53 }
 0x700   :  { %v1216_v35 = vpop.f32.mrf.mxu2 }
 0x701   :  { %v1227_v47 = vrot.slane %v1216_v35, 1 }
 0x703   :  { %v1228_v10 = vsel %vm3093_vm9, %v1227_v47, 0.0  ;;  %v2201_v47 = vsel %vm1557_vm0, 1.0, %v2305_v27 }
 0x76b   :  { %v1222_v14 = vpop.permute.xlu1 %1221 }
 0x76c   :  { %v1224_v41 = vrot.slane %v1222_v14, 7 }
 0x76e   :  { %v1225_v8 = vsel %vm3087_vm8, %v1224_v41, 0.0 }
 0x76f   :  { %v1226_v57 = vadd.f32 %v1225_v8, %v1219_v42 }
 0x771   :  { %v1229_v52 = vadd.f32 %v1228_v10, %v1226_v57 }
 0x773   :  { %v1233_v43 = vadd.f32 %v1232_v55, %v1229_v52 }
 0x775   :  { %vm1234_vm13 = vcmp.gt.f32.partialorder %v1233_v43, 0.5 }
 0x776   :  { %v2170_v20 = vsel %vm1234_vm13, 1.0, %v2305_v27  ;;  %2171 = vmatpush.msk.msrb.mxu2 %vm1234_vm13, %v2306_v40 }
 0x777   :  { %v1422_v7 = vsub.f32 1.0, %v2170_v20  ;;  %2172 = vmatmul.msk.f32.vlgmr.msrb.gmra.mxu2 %vm660_vm10, %v3104_v39 }
 0x778   :  { %1268 = vmatpush.msra.mxu2 %v3130_v45 }
 0x779   :  { %v1423_v12 = vmul.f32 0.2, %v1422_v7 }
 0x77a   :  { %1269 = vmatpush.msra.mxu2 %v3135_v5 }
 0x77b   :  { %v1424_v21 = vmul.f32 %v1423_v12, %v1233_v43 }
 0x77c   :  { %1270 = vmatpush.msra.mxu2 %v3144_v63 }
 0x77e   :  { %1271 = vmatpush.msra.mxu2 %v3152_v1 }
 0x780   :  { %1272 = vmatpush.msra.mxu2 %v3160_v3 }
 0x782   :  { %1273 = vmatpush.msra.mxu2 %v3171_v9 }
 0x784   :  { %1274 = vmatpush.msra.mxu2 %v3182_v61 }
 0x786   :  { %1275 = vmatpush.msra.mxu2 %v3240_v33 }
 0x788   :  { %1383 = vmatpush.msrb.mxu2 %v3540_v16 }
 0x78a   :  { %1384 = vmatpush.msrb.mxu2 %v3546_v4 }
 0x78c   :  { %1385 = vmatpush.msrb.mxu2 %v3552_v60 }
 0x78e   :  { %1386 = vmatpush.msrb.mxu2 %v3558_v48 }
 0x7fa   :  { %v1254_v46 = vpop.f32.mrf.mxu2 }
 0x7fb   :  { %2173 = vmatmul.msk.f32.vlgmr.msra.gmra.mxu2 %vm684_vm1, %v1254_v46 }
 0x7fc   :  { %1403 = vmatpush.msra.mxu2 %v3565_v23 }
 0x7fe   :  { %1404 = vmatpush.msra.mxu2 %v3571_v0 }
 0x800   :  { %1405 = vmatpush.msra.mxu2 %v3577_v38 }
 0x802   :  { %1406 = vmatpush.msra.mxu2 %v3583_v44 }
 0x803   :  { %2185 = vmatmul.msk.f32.vlgmr.msrb.gmra.mxu2 %vm555_vm5, %v3468_v34 }
 0x80b   :  { %2186 = vmatmul.msk.f32.vlgmr.msra.gmra.mxu2 %vm555_vm5, %v3468_v34 }
 0x87e   :  { %v1277_v58 = vpop.f32.mrf.mxu2 }
 0x87f   :  { %v1283_v11 = vadd.f32 %v1282_v54, %v1277_v58 }
 0x881   :  { %vm1284_vm14 = vcmp.gt.f32.partialorder %v1283_v11, 0.5 }
 0x882   :  { %v2174_v29 = vsel %vm1284_vm14, 1.0, %v2305_v27 }
 0x883   :  { %1288 = vst.msk [vmem:[#allocation3 + $0x6] sm:$0x3] %vm711_vm11, %v2174_v29  ;;  %v1472_v2 = vsub.f32 1.0, %v2174_v29 }
 0x885   :  { %v1473_v24 = vmul.f32 0.2, %v1472_v2 }
 0x886   :  { %v1388_v25 = vpop.f32.mrf.mxu2 }
 0x887   :  { %1413 = vrot.lane.b32.xlu2 %v1388_v25, %s2307_s20  ;;  %v1474_v28 = vmul.f32 %v1473_v24, %v1283_v11  ;;  %v1411_v37 = vadd.f32 %v3085_v56, %v1388_v25 }
 0x88e   :  { %v1408_v30 = vpop.f32.mrf.mxu2 }
 0x88f   :  { %v1419_v19 = vrot.slane %v1408_v30, 1 }
 0x891   :  { %v1420_v31 = vsel %vm3093_vm9, %v1419_v19, 0.0  ;;  %v437_v19 = vpop.f32.mrf.mxu1 }
 0x8e1   :  { %v1414_v32 = vpop.permute.xlu2 %1413 }
 0x8e2   :  { %v1416_v55 = vrot.slane %v1414_v32, 7  ;;  %v324_v32 = vpop.f32.mrf.mxu0 }
 0x8e4   :  { %v1417_v34 = vsel %vm3087_vm8, %v1416_v55, 0.0 }
 0x8e5   :  { %v1418_v6 = vadd.f32 %v1417_v34, %v1411_v37  ;;  %v440_v37 = vpop.f32.mrf.mxu1 }
 0x8e7   :  { %v1421_v49 = vadd.f32 %v1420_v31, %v1418_v6  ;;  %v2212_v31 = vsel %vm1696_vm3, 1.0, %v2305_v27 }
 0x8e9   :  { %v1425_v50 = vadd.f32 %v1424_v21, %v1421_v49  ;;  %v2211_v49 = vsel %vm1695_vm4, 1.0, %v2305_v27 }
 0x8ea   :  { %v327_v55 = vpop.f32.mrf.mxu0 }
 0x8eb   :  { %vm1426_vm15 = vcmp.gt.f32.partialorder %v1425_v50, 0.5 }
 0x8ec   :  { %v2187_v51 = vsel %vm1426_vm15, 1.0, %v2305_v27  ;;  %2188 = vmatpush.msk.msrb.mxu2 %vm1426_vm15, %v2306_v40 }
 0x8ed   :  { %v1614_v53 = vsub.f32 1.0, %v2187_v51  ;;  %2189 = vmatmul.msk.f32.vlgmr.msrb.gmra.mxu2 %vm660_vm10, %v3104_v39  ;;  %v443_v6 = vpop.f32.mrf.mxu1  ;;  %v2210_v51 = vsel %vm1694_vm6, 1.0, %v2305_v27 }
 0x8ee   :  { %1460 = vmatpush.msra.mxu2 %v3130_v45 }
 0x8ef   :  { %v1615_v54 = vmul.f32 0.2, %v1614_v53  ;;  %v1872_v53 = vsub.f32 1.0, %v2212_v31 }
 0x8f0   :  { %1461 = vmatpush.msra.mxu2 %v3135_v5 }
 0x8f1   :  { %v1616_v35 = vmul.f32 %v1615_v54, %v1425_v50 }
 0x8f2   :  { %1462 = vmatpush.msra.mxu2 %v3144_v63  ;;  %v330_v34 = vpop.f32.mrf.mxu0 }
 0x8f4   :  { %1463 = vmatpush.msra.mxu2 %v3152_v1 }
 0x8f6   :  { %1464 = vmatpush.msra.mxu2 %v3160_v3 }
 0x8f8   :  { %1465 = vmatpush.msra.mxu2 %v3171_v9 }
 0x8fa   :  { %1466 = vmatpush.msra.mxu2 %v3182_v61  ;;  %v333_v50 = vpop.f32.mrf.mxu0 }
 0x8fc   :  { %1467 = vmatpush.msra.mxu2 %v3240_v33 }
 0x8fe   :  { %1575 = vmatpush.msrb.mxu2 %v3540_v16 }
 0x900   :  { %1576 = vmatpush.msrb.mxu2 %v3546_v4 }
 0x902   :  { %1577 = vmatpush.msrb.mxu2 %v3552_v60 }
 0x904   :  { %1578 = vmatpush.msrb.mxu2 %v3558_v48 }
 0x970   :  { %v1446_v14 = vpop.f32.mrf.mxu2 }
 0x971   :  { %2190 = vmatmul.msk.f32.vlgmr.msra.gmra.mxu2 %vm684_vm1, %v1446_v14  ;;  %v1871_v14 = vsub.f32 1.0, %v2211_v49 }
 0x972   :  { %1595 = vmatpush.msra.mxu2 %v3565_v23 }
 0x974   :  { %1596 = vmatpush.msra.mxu2 %v3571_v0 }
 0x976   :  { %1597 = vmatpush.msra.mxu2 %v3577_v38 }
 0x978   :  { %1598 = vmatpush.msra.mxu2 %v3583_v44 }
 0x979   :  { %2202 = vmatmul.msk.f32.vlgmr.msrb.gmra.mxu2 %vm555_vm5, %v2201_v47 }
 0x981   :  { %2203 = vmatmul.msk.f32.vlgmr.msra.gmra.mxu2 %vm555_vm5, %v2201_v47 }
 0x9f4   :  { %v1469_v41 = vpop.f32.mrf.mxu2 }
 0x9f5   :  { %v1475_v42 = vadd.f32 %v1474_v28, %v1469_v41 }
 0x9f7   :  { %vm1476_vm2 = vcmp.gt.f32.partialorder %v1475_v42, 0.5 }
 0x9f8   :  { %v2191_v8 = vsel %vm1476_vm2, 1.0, %v2305_v27 }
 0x9f9   :  { %1480 = vst.msk [vmem:[#allocation3 + $0x8] sm:$0x3] %vm711_vm11, %v2191_v8  ;;  %v1664_v57 = vsub.f32 1.0, %v2191_v8  ;;  %v446_v8 = vpop.f32.mrf.mxu1 }
 0x9fb   :  { %v1665_v10 = vmul.f32 0.2, %v1664_v57 }
 0x9fc   :  { %v1580_v52 = vpop.f32.mrf.mxu2 }
 0x9fd   :  { %1605 = vrot.lane.b32.xlu2 %v1580_v52, %s2307_s20  ;;  %v1666_v43 = vmul.f32 %v1665_v10, %v1475_v42  ;;  %v1603_v46 = vadd.f32 %v3085_v56, %v1580_v52  ;;  %v1870_v42 = vsub.f32 1.0, %v2210_v51  ;;  %v1876_v52 = vmul.f32 0.2, %v1872_v53 }
 0xa04   :  { %v1600_v20 = vpop.f32.mrf.mxu2 }
 0xa05   :  { %v1611_v12 = vrot.slane %v1600_v20, 1  ;;  %v3687_v20 = vld [vmem:[%s3746_s6] ss:$0 sm:$0xff] }
 0xa07   :  { %v1612_v29 = vsel %vm3093_vm9, %v1611_v12, 0.0 }
 0xa57   :  { %v1606_v7 = vpop.permute.xlu2 %1605 }
 0xa58   :  { %v1608_v21 = vrot.slane %v1606_v7, 7 }
 0xa5a   :  { %v1609_v58 = vsel %vm3087_vm8, %v1608_v21, 0.0 }
 0xa5b   :  { %v1610_v11 = vadd.f32 %v1609_v58, %v1603_v46  ;;  %v1875_v46 = vmul.f32 0.2, %v1871_v14  ;;  %v328_v58 = vadd.f32 %v3339_v59, %v327_v55 }
 0xa5d   :  { %v1613_v2 = vadd.f32 %v1612_v29, %v1610_v11 }
 0xa5f   :  { %v1617_v24 = vadd.f32 %v1616_v35, %v1613_v2  ;;  %v2209_v35 = vsel %vm1693_vm7, 1.0, %v2305_v27  ;;  %v1874_v2 = vmul.f32 0.2, %v1870_v42 }
 0xa60   :  { %v1869_v12 = vsub.f32 1.0, %v2209_v35 }
 0xa61   :  { %vm1618_vm12 = vcmp.gt.f32.partialorder %v1617_v24, 0.5 }
 0xa62   :  { %v2204_v25 = vsel %vm1618_vm12, 1.0, %v2305_v27  ;;  %2205 = vmatpush.msk.msrb.mxu2 %vm1618_vm12, %v2306_v40 }
 0xa63   :  { %v1806_v28 = vsub.f32 1.0, %v2204_v25  ;;  %2206 = vmatmul.msk.f32.vlgmr.msrb.gmra.mxu2 %vm660_vm10, %v3104_v39  ;;  %v1745_v39 = vsub.f32 1.0, %v2201_v47  ;;  %v334_v47 = vadd.f32 %v3339_v59, %v333_v50  ;;  %v325_v25 = vadd.f32 %v3339_v59, %v324_v32 }
 0xa64   :  { %1652 = vmatpush.msra.mxu2 %v3130_v45 }
 0xa65   :  { %v1807_v56 = vmul.f32 0.2, %v1806_v28  ;;  %v1746_v45 = vmul.f32 0.2, %v1745_v39  ;;  %v447_v11 = vadd.f32 %v446_v8, %v334_v47 }
 0xa66   :  { %1653 = vmatpush.msra.mxu2 %v3135_v5  ;;  %v1742_v5 = vpop.f32.mrf.mxu3 }
 0xa67   :  { %v3637_v30 = vmul.f32 %v1807_v56, %v1617_v24  ;;  %v1880_v56 = vmul.f32 %v1876_v52, %v3368_v62 }
 0xa68   :  { %1654 = vmatpush.msra.mxu2 %v3144_v63  ;;  %v1747_v63 = vmul.f32 %v1746_v45, %v3471_v15  ;;  %v1873_v45 = vmul.f32 0.2, %v1869_v12 }
 0xa6a   :  { %1655 = vmatpush.msra.mxu2 %v3152_v1 }
 0xa6c   :  { %1656 = vmatpush.msra.mxu2 %v3160_v3  ;;  %v3650_v3 = vadd.f32 %v1747_v63, %v1742_v5  ;;  %v441_v5 = vadd.f32 %v440_v37, %v328_v58  ;;  %v1879_v63 = vmul.f32 %v1875_v46, %v3375_v17  ;;  %v2278_v17 = vld [vmem:[%s3747_s7] sm:$0x3]  ;;  %s2308_s7 = smov [#allocation3]  }
 0xa6e   :  { %1657 = vmatpush.msra.mxu2 %v3171_v9  ;;  %vm1749_vm13 = vcmp.gt.f32.partialorder %v3650_v3, 0.5 }
 0xa6f   :  { %v3658_v9 = vsel %vm1749_vm13, 1.0, %v2305_v27 }
 0xa70   :  { %1658 = vmatpush.msra.mxu2 %v3182_v61  ;;  %v1937_v55 = vsub.f32 1.0, %v3658_v9 }
 0xa72   :  { %1659 = vmatpush.msra.mxu2 %v3240_v33 }
 0xa74   :  { %1767 = vmatpush.msrb.mxu2 %v3540_v16 }
 0xa76   :  { %1768 = vmatpush.msrb.mxu2 %v3546_v4 }
 0xa78   :  { %1769 = vmatpush.msrb.mxu2 %v3552_v60 }
 0xa7a   :  { %1770 = vmatpush.msrb.mxu2 %v3558_v48 }
 0xae6   :  { %v1638_v1 = vpop.f32.mrf.mxu2 }
 0xae7   :  { %2207 = vmatmul.msk.f32.vlgmr.msra.gmra.mxu2 %vm684_vm1, %v1638_v1  ;;  %v1884_v1 = vadd.f32 %v1880_v56, %v447_v11 }
 0xae8   :  { %1787 = vmatpush.msra.mxu2 %v3565_v23 }
 0xae9   :  { %vm1888_vm4 = vcmp.gt.f32.partialorder %v1884_v1, 0.5 }
 0xaea   :  { %1788 = vmatpush.msra.mxu2 %v3571_v0 }
 0xaec   :  { %1789 = vmatpush.msra.mxu2 %v3577_v38 }
 0xaee   :  { %1790 = vmatpush.msra.mxu2 %v3583_v44 }
 0xaef   :  { %2219 = vmatmul.msk.f32.vlgmr.msrb.gmra.mxu2 %vm555_vm5, %v3658_v9 }
 0xaf7   :  { %2220 = vmatmul.msk.f32.vlgmr.msra.gmra.mxu2 %vm555_vm5, %v3658_v9 }
 0xb6a   :  { %v1661_v61 = vpop.f32.mrf.mxu2 }
 0xb6b   :  { %v1667_v33 = vadd.f32 %v1666_v43, %v1661_v61  ;;  %v331_v43 = vadd.f32 %v3339_v59, %v330_v34  ;;  %v1877_v59 = vmul.f32 %v1873_v45, %v3390_v13 }
 0xb6d   :  { %vm1668_vm14 = vcmp.gt.f32.partialorder %v1667_v33, 0.5  ;;  %v444_v28 = vadd.f32 %v443_v6, %v331_v43 }
 0xb6e   :  { %v2208_v15 = vsel %vm1668_vm14, 1.0, %v2305_v27 }
 0xb6f   :  { %1672 = vst.msk [vmem:[#allocation3 + $0xa] sm:$0x3] %vm711_vm11, %v2208_v15  ;;  %v1856_v16 = vsub.f32 1.0, %v2208_v15  ;;  %v1878_v15 = vmul.f32 %v1874_v2, %v3381_v22 }
 0xb71   :  { %v1857_v4 = vmul.f32 0.2, %v1856_v16  ;;  %v1883_v16 = vadd.f32 %v1879_v63, %v444_v28  ;;  %v1882_v62 = vadd.f32 %v1878_v15, %v441_v5 }
 0xb72   :  { %v1772_v60 = vpop.f32.mrf.mxu2 }
 0xb73   :  { %1797 = vrot.lane.b32.xlu0 %v1772_v60, %s2307_s20  ;;  %v3668_v48 = vmul.f32 %v1857_v4, %v1667_v33  ;;  %v1795_v7 = vadd.f32 %v3687_v20, %v1772_v60  ;;  %v438_v33 = vadd.f32 %v437_v19, %v325_v25  ;;  %vm1887_vm6 = vcmp.gt.f32.partialorder %v1883_v16, 0.5 }
 0xb74   :  { %vm1886_vm7 = vcmp.gt.f32.partialorder %v1882_v62, 0.5 }
 0xb75   :  { %v1881_v22 = vadd.f32 %v1877_v59, %v438_v33 }
 0xb77   :  { %vm1885_vm15 = vcmp.gt.f32.partialorder %v1881_v22, 0.5 }
 0xb7a   :  { %v1792_v54 = vpop.f32.mrf.mxu2 }
 0xb7b   :  { %v1803_v57 = vrot.slane %v1792_v54, 1 }
 0xb7d   :  { %v1804_v24 = vsel %vm3093_vm9, %v1803_v57, 0.0 }
 0xbe5   :  { %v1798_v41 = vpop.permute.xlu0 %1797 }
 0xbe6   :  { %v1800_v10 = vrot.slane %v1798_v41, 7 }
 0xbe8   :  { %v1801_v21 = vsel %vm3087_vm8, %v1800_v10, 0.0 }
 0xbe9   :  { %v1802_v29 = vadd.f32 %v1801_v21, %v1795_v7 }
 0xbeb   :  { %v1805_v39 = vadd.f32 %v1804_v24, %v1802_v29 }
 0xbed   :  { %v1809_v61 = vadd.f32 %v3637_v30, %v1805_v39 }
 0xbef   :  { %vm1810_vm3 = vcmp.gt.f32.partialorder %v1809_v61, 0.5 }
 0xbf0   :  { %v2221_v4 = vsel %vm1810_vm3, 1.0, %v2305_v27  ;;  %2222 = vmatpush.msk.msrb.mxu2 %vm1810_vm3, %v2306_v40 }
 0xbf1   :  { %v1998_v60 = vsub.f32 1.0, %v2221_v4  ;;  %2223 = vmatmul.msk.f32.vlgmr.msrb.gmra.mxu2 %vm660_vm10, %v2278_v17 }
 0xbf2   :  { %2230 = vmatpush.msk.msra.mxu2 %vm1888_vm4, %v2306_v40 }
 0xbf3   :  { %v1999_v30 = vmul.f32 0.2, %v1998_v60 }
 0xbf4   :  { %2231 = vmatpush.msk.msra.mxu2 %vm1887_vm6, %v2306_v40 }
 0xbf5   :  { %v2000_v32 = vmul.f32 %v1999_v30, %v1809_v61 }
 0xbf6   :  { %2232 = vmatpush.msk.msra.mxu2 %vm1886_vm7, %v2306_v40 }
 0xbf8   :  { %2233 = vmatpush.msk.msra.mxu2 %vm1885_vm15, %v2306_v40 }
 0xbf9   :  { %2234 = vmatmul.msk.f32.vlgmr.msra.gmra.mxu2 %vm555_vm5, %v3426_v36  ;;  %v1938_v36 = vmul.f32 0.2, %v1937_v55 }
 0xc74   :  { %v1830_v13 = vpop.f32.mrf.mxu2 }
 0xc75   :  { %2224 = vmatmul.msk.f32.vlgmr.msrb.gmra.mxu1 %vm684_vm1, %v1830_v13 }
 0xc76   :  { %1979 = vmatpush.msrb.mxu1 %v3565_v23 }
 0xc78   :  { %1980 = vmatpush.msrb.mxu1 %v3571_v0  ;;  %v1939_v0 = vmul.f32 %v1938_v36, %v3650_v3 }
 0xc7a   :  { %1981 = vmatpush.msrb.mxu1 %v3577_v38 }
 0xc7c   :  { %v1914_v19 = vpop.f32.mrf.mxu2  ;;  %1982 = vmatpush.msrb.mxu1 %v3583_v44 }
 0xc7d   :  { %1933 = vmatmul.f32.vlgmr.msrb.gmra.mxu0 %v1914_v19 }
 0xcf2   :  { %v1853_v37 = vpop.f32.mrf.mxu1 }
 0xcf3   :  { %v1859_v34 = vadd.f32 %v3668_v48, %v1853_v37 }
 0xcf5   :  { %vm1860_vm0 = vcmp.gt.f32.partialorder %v1859_v34, 0.5 }
 0xcf6   :  { %v2225_v6 = vsel %vm1860_vm0, 1.0, %v2305_v27 }
 0xcf7   :  { %1864 = vst.msk [vmem:[#allocation3 + $0xc] sm:$0x3] %vm711_vm11, %v2225_v6  ;;  %v2048_v23 = vsub.f32 1.0, %v2225_v6 }
 0xcf9   :  { %v2049_v31 = vmul.f32 0.2, %v2048_v23 }
 0xcfa   :  { %v1934_v38 = vpop.f32.mrf.mxu0 }
 0xcfb   :  { %v1940_v49 = vadd.f32 %v1939_v0, %v1934_v38  ;;  %v2050_v50 = vmul.f32 %v2049_v31, %v1859_v34 }
 0xcfd   :  { %vm1941_vm2 = vcmp.gt.f32.partialorder %v1940_v49, 0.5 }
 0xcfe   :  { %v2235_v44 = vsel %vm1941_vm2, 1.0, %v2305_v27 }
 0xcff   :  { %2236 = vmatmul.msk.f32.vlgmr.msra.gmra.mxu1 %vm555_vm5, %v2235_v44 }
 0xd07   :  { %2237 = vmatmul.msk.f32.vlgmr.msrb.gmra.mxu1 %vm555_vm5, %v2235_v44 }
 0xd7c   :  { %v1964_v9 = vpop.f32.mrf.mxu1 }
 0xd7d   :  { %1989 = vrot.lane.b32.xlu1 %v1964_v9, %s2307_s20  ;;  %v1987_v3 = vadd.f32 %v3687_v20, %v1964_v9  ;;  %s2061_s20 = sshll.u32 %s2308_s7, 4  ;;  %s2062_s20 = int_to_ptr.vmem [resolvable:$true] %s2061_s20 }
 0xd84   :  { %v1984_v48 = vpop.f32.mrf.mxu1 }
 0xd85   :  { %v1995_v53 = vrot.slane %v1984_v48, 1 }
 0xd87   :  { %v1996_v47 = vsel %vm3093_vm9, %v1995_v53, 0.0 }
 0xdef   :  { %v1990_v51 = vpop.permute.xlu1 %1989 }
 0xdf0   :  { %v1992_v54 = vrot.slane %v1990_v51, 7 }
 0xdf2   :  { %v1993_v35 = vsel %vm3087_vm8, %v1992_v54, 0.0 }
 0xdf3   :  { %v1994_v14 = vadd.f32 %v1993_v35, %v1987_v3 }
 0xdf5   :  { %v1997_v41 = vadd.f32 %v1996_v47, %v1994_v14 }
 0xdf7   :  { %v2001_v42 = vadd.f32 %v2000_v32, %v1997_v41 }
 0xdf9   :  { %vm2002_vm12 = vcmp.gt.f32.partialorder %v2001_v42, 0.5 }
 0xdfa   :  { %2239 = vmatpush.msk.msrb.mxu2 %vm2002_vm12, %v2306_v40 }
 0xdfb   :  { %2240 = vmatmul.msk.f32.vlgmr.msrb.gmra.mxu2 %vm660_vm10, %v2278_v17 }
 0xe7e   :  { %v2022_v8 = vpop.f32.mrf.mxu2 }
 0xe7f   :  { %2241 = vmatmul.msk.f32.vlgmr.msrb.gmra.mxu3 %vm684_vm1, %v2022_v8 }
 0xf02   :  { %v2045_v18 = vpop.f32.mrf.mxu3 }
 0xf03   :  { %v2051_v57 = vadd.f32 %v2050_v50, %v2045_v18 }
 0xf05   :  { %vm2052_vm5 = vcmp.gt.f32.partialorder %v2051_v57, 0.5 }
 0xf06   :  { %v2242_v26 = vsel %vm2052_vm5, 1.0, %v2305_v27 }
 0xf07   :  { %2056 = vst.msk [vmem:[#allocation3 + $0xe] sm:$0x3] %vm711_vm11, %v2242_v26 }
 0xf08   :  { %2069 = dma.vmem_to_hbm [thread:$0]  %s2062_s20, 256, %s2064_s24, [#allocation4], %s2309_s25, %s2309_s25, %s2310_s26  }
 0xf09   :  { %2303 = dma.done.wait [#allocation4], 256  }
 0xf0a   :  { %2304 = vsyncadd [#allocation4], 4294967040 }
 0xf0b   :  { %2074 = vsyncpa [#allocation4], 1 }

</bundles_post_ra>
